<compile_context>
chip_gen: v7x
topology: tpu7x:2x2x1
jax: 0.10.0
libtpu: 0.0.40
codegen_flags: <defaults>
</compile_context>

<pallas_src>
from functools import partial

import jax
import jax.numpy as jnp
from jax import lax
from jax.experimental import pallas as pl
from jax.experimental.pallas import tpu as pltpu


# Fixed DeepCNN channel plan (Conv1d: 1->32->64->128->256) and fc1 width.
CHANS = ((1, 32), (32, 64), (64, 128), (128, 256))
HIDDEN = 128


def _layout(input_size):
    """Static row layout of the packed bf16 weight slab (lane width = 256)."""
    lf = input_size // 16                      # spatial length after 4 poolings
    c4 = CHANS[-1][1]

    def a16(n):                                # keep bf16 sublane tiles aligned
        return -(-n // 16) * 16

    offs = {}
    cur = 0
    for i, (cin, _) in enumerate(CHANS[1:], start=2):
        offs[f"conv{i}"] = cur
        cur = a16(cur + 3 * cin)
    offs["fc1"] = cur
    cur = a16(cur + lf * c4)
    offs["fc2"] = cur
    cur = a16(cur + HIDDEN)
    offs["rows"] = cur
    return offs, lf, c4


# ----------------------------------------------------------------------------
# In-kernel stages
# ----------------------------------------------------------------------------
def _conv1_stage(x, w_taps, bias, batch):
    """First Conv1d(1->C1,k=3,p=1)+ReLU+MaxPool1d(2), pure VPU/XLU.

    x: (M,1) f32 rows ordered r=b*L+l; w_taps: (3,C1) f32 (bf16-rounded values);
    bias: (1,C1) f32.  Returns (M//2, C1) f32.
    """
    m = x.shape[0]
    length = m // batch
    cout = w_taps.shape[-1]

    xr = x.astype(jnp.bfloat16).astype(jnp.float32)       # match reference's bf16 input
    row = lax.broadcasted_iota(jnp.int32, (m, 1), 0)
    not_first = (row % length) != 0
    not_last = (row % length) != (length - 1)

    prev = jnp.where(not_first, pltpu.roll(xr, shift=1, axis=0), 0.0)
    nxt = jnp.where(not_last, pltpu.roll(xr, shift=m - 1, axis=0), 0.0)

    acc = xr * w_taps[1:2, :] + prev * w_taps[0:1, :] + nxt * w_taps[2:3, :]
    acc = jnp.maximum(acc + bias, 0.0)
    return jnp.max(acc.reshape(m // 2, 2, cout), axis=1)


def _conv_stage(a, w_prev, w_ctr, w_next, bias, batch):
    """Conv1d(k=3,s=1,p=1)+ReLU+MaxPool1d(2) on batch-folded rows.

    a: (M,Cin) f32; w_*: (Cin,Cout) bf16; bias: (1,Cout) f32.  Returns (M//2,Cout) f32.
    Neighbours via pltpu.roll + boundary mask (padding=1 and batch boundaries).
    """
    m, _ = a.shape
    length = m // batch
    cout = w_ctr.shape[-1]

    row = lax.broadcasted_iota(jnp.int32, (m, 1), 0)
    not_first = (row % length) != 0
    not_last = (row % length) != (length - 1)

    ab = a.astype(jnp.bfloat16)
    prev = jnp.where(not_first, pltpu.roll(a, shift=1, axis=0), 0.0).astype(jnp.bfloat16)
    nxt = jnp.where(not_last, pltpu.roll(a, shift=m - 1, axis=0), 0.0).astype(jnp.bfloat16)

    acc = jnp.dot(ab, w_ctr, preferred_element_type=jnp.float32)
    acc = acc + jnp.dot(prev, w_prev, preferred_element_type=jnp.float32)
    acc = acc + jnp.dot(nxt, w_next, preferred_element_type=jnp.float32)

    acc = jnp.maximum(acc + bias, 0.0)                    # bias + ReLU in f32
    return jnp.max(acc.reshape(m // 2, 2, cout), axis=1)  # MaxPool1d(2); L stays even


def _make_kernel(batch, input_size, num_classes):
    offs, lf, c4 = _layout(input_size)
    hidden = HIDDEN

    def kernel(x_ref, wslab_ref, fslab_ref, o_ref):
        # --- Stage 1 (Cin=1), VPU path; taps/bias live in the small f32 slab ---
        c1 = CHANS[0][1]
        w1 = fslab_ref[0:3, 0:c1]                         # (3, C1)
        b1 = fslab_ref[3:4, 0:c1]                         # (1, C1)
        a = _conv1_stage(x_ref[...], w1, b1, batch)

        # --- Stages 2-4: MXU dots against the packed bf16 slab ---
        for i, (cin, cout) in enumerate(CHANS[1:], start=2):
            r0 = offs[f"conv{i}"]
            w_prev = wslab_ref[r0:r0 + cin, 0:cout]
            w_ctr = wslab_ref[r0 + cin:r0 + 2 * cin, 0:cout]
            w_next = wslab_ref[r0 + 2 * cin:r0 + 3 * cin, 0:cout]
            bias = fslab_ref[2 + i:3 + i, 0:cout]         # rows 4,5,6
            a = _conv_stage(a, w_prev, w_ctr, w_next, bias, batch)

        # --- Flatten (PyTorch NCL order is folded into the fc1 weight) + fc1 + ReLU ---
        # a: (B*Lf, C4) -> (B, Lf*C4) via leading-split reshape + lane-aligned concat.
        a3 = a.reshape(batch, lf, c4)
        a_flat = jnp.concatenate([a3[:, l, :] for l in range(lf)], axis=1)
        a_flat = a_flat.astype(jnp.bfloat16)              # (B, Lf*C4)

        w_fc1 = wslab_ref[offs["fc1"]:offs["fc1"] + lf * c4, 0:hidden]
        b_fc1 = fslab_ref[7:8, 0:hidden]
        h = jnp.dot(a_flat, w_fc1, preferred_element_type=jnp.float32) + b_fc1
        h = jnp.maximum(h, 0.0)

        # --- fc2 ---
        w_fc2 = wslab_ref[offs["fc2"]:offs["fc2"] + hidden, 0:num_classes]
        b_fc2 = fslab_ref[8:9, 0:num_classes]
        o_ref[...] = jnp.dot(h.astype(jnp.bfloat16), w_fc2,
                             preferred_element_type=jnp.float32) + b_fc2

    return kernel


# ----------------------------------------------------------------------------
# One-time parameter repacking into two slabs (hoisted out of the hot path)
# ----------------------------------------------------------------------------
def prepare_params(convs, fc1_w, fc1_b, fc2_w, fc2_b, input_size, num_classes):
    offs, lf, c4 = _layout(input_size)
    lane = c4                                             # 256
    hidden = fc1_w.shape[0]
    assert hidden == HIDDEN

    # bf16 weight slab: conv2..4 as (3*Cin, Cout) tap-major, fc1 pre-permuted, fc2^T.
    wslab = jnp.zeros((offs["rows"], lane), jnp.bfloat16)
    for i, (w, _) in enumerate(convs[1:], start=2):       # w: (Cout, Cin, 3)
        cout, cin, _ = w.shape
        w3k = jnp.transpose(w, (2, 1, 0)).reshape(3 * cin, cout).astype(jnp.bfloat16)
        r0 = offs[f"conv{i}"]
        wslab = wslab.at[r0:r0 + 3 * cin, 0:cout].set(w3k)
    # w_lc[l*C4 + c, h] = fc1_w[h, c*Lf + l]  (absorbs the NCL flatten order)
    w_lc = (fc1_w.reshape(hidden, c4, lf).transpose(2, 1, 0)
            .reshape(lf * c4, hidden).astype(jnp.bfloat16))
    wslab = wslab.at[offs["fc1"]:offs["fc1"] + lf * c4, 0:hidden].set(w_lc)
    wslab = wslab.at[offs["fc2"]:offs["fc2"] + hidden, 0:num_classes].set(
        fc2_w.T.astype(jnp.bfloat16))

    # f32 slab: conv1 taps (bf16-rounded values for the VPU path) + all biases.
    fslab = jnp.zeros((9, lane), jnp.float32)
    w1, b1 = convs[0]                                     # (C1, 1, 3), (C1,)
    c1 = w1.shape[0]
    taps = jnp.transpose(w1[:, 0, :], (1, 0))             # (3, C1), tap-major
    taps = taps.astype(jnp.bfloat16).astype(jnp.float32)
    fslab = fslab.at[0:3, 0:c1].set(taps)
    fslab = fslab.at[3:4, 0:c1].set(b1.reshape(1, -1).astype(jnp.float32))
    for i, (_, b) in enumerate(convs[1:], start=2):
        fslab = fslab.at[2 + i:3 + i, 0:b.shape[0]].set(
            b.reshape(1, -1).astype(jnp.float32))
    fslab = fslab.at[7:8, 0:hidden].set(fc1_b.reshape(1, -1).astype(jnp.float32))
    fslab = fslab.at[8:9, 0:num_classes].set(fc2_b.reshape(1, -1).astype(jnp.float32))
    return {"wslab": wslab, "fslab": fslab}


@partial(jax.jit, static_argnames=("num_classes",))
def deep_cnn_forward(x, wslab, fslab, *, num_classes):
    """x: (B, input_size) f32 — mirrors DeepCNN.forward."""
    batch, input_size = x.shape
    kernel = _make_kernel(batch, input_size, num_classes)
    x2 = x.reshape(batch * input_size, 1).astype(jnp.float32)   # batch folded into rows

    vmem = pl.BlockSpec(memory_space=pltpu.MemorySpace.VMEM)
    return pl.pallas_call(
        kernel,
        out_shape=jax.ShapeDtypeStruct((batch, num_classes), jnp.float32),
        in_specs=[vmem, vmem, vmem],
        out_specs=vmem,
    )(x2, wslab, fslab)


# ----------------------------------------------------------------------------
# Pure-JAX reference (PyTorch DeepCNN semantics; same bf16-operand / f32-accum contract)
# ----------------------------------------------------------------------------
def deep_cnn_reference(x, convs, fc1_w, fc1_b, fc2_w, fc2_b):
    h = x[:, None, :].astype(jnp.bfloat16)                # (B, 1, L) NCL
    for w, b in convs:
        h = lax.conv_general_dilated(
            h, w.astype(jnp.bfloat16), window_strides=(1,), padding=((1, 1),),
            dimension_numbers=("NCH", "OIH", "NCH"),
            preferred_element_type=jnp.float32)
        h = jnp.maximum(h + b[None, :, None], 0.0)
        h = lax.reduce_window(h, -jnp.inf, lax.max, (1, 1, 2), (1, 1, 2), "VALID")
        h = h.astype(jnp.bfloat16)
    flat = h.reshape(h.shape[0], -1)                      # NCL flatten
    hidden = jnp.dot(flat, fc1_w.T.astype(jnp.bfloat16),
                     preferred_element_type=jnp.float32) + fc1_b
    hidden = jnp.maximum(hidden, 0.0).astype(jnp.bfloat16)
    return jnp.dot(hidden, fc2_w.T.astype(jnp.bfloat16),
                   preferred_element_type=jnp.float32) + fc2_b


# ----------------------------------------------------------------------------
if __name__ == "__main__":
    input_size = 64          # must be divisible by 16 (four 2x pools)
    num_classes = 10
    batch = 2

    key = jax.random.PRNGKey(0)
    keys = jax.random.split(key, 13)

    convs = []
    ki = 0
    for cin, cout in CHANS:
        w = 0.1 * jax.random.normal(keys[ki], (cout, cin, 3), jnp.float32); ki += 1
        b = 0.1 * jax.random.normal(keys[ki], (cout,), jnp.float32); ki += 1
        convs.append((w, b))
    feat = CHANS[-1][1] * (input_size // 16)
    fc1_w = 0.1 * jax.random.normal(keys[ki], (HIDDEN, feat), jnp.float32); ki += 1
    fc1_b = 0.1 * jax.random.normal(keys[ki], (HIDDEN,), jnp.float32); ki += 1
    fc2_w = 0.1 * jax.random.normal(keys[ki], (num_classes, HIDDEN), jnp.float32); ki += 1
    fc2_b = 0.1 * jax.random.normal(keys[ki], (num_classes,), jnp.float32); ki += 1

    x = jax.random.normal(keys[12], (batch, input_size), jnp.float32)

    params = prepare_params(convs, fc1_w, fc1_b, fc2_w, fc2_b,
                            input_size, num_classes)      # one-time repack

    out = jax.block_until_ready(
        deep_cnn_forward(x, params["wslab"], params["fslab"], num_classes=num_classes))
    ref = jax.block_until_ready(
        deep_cnn_reference(x, convs, fc1_w, fc1_b, fc2_w, fc2_b))

    assert out.shape == (batch, num_classes), out.shape
    err = float(jnp.max(jnp.abs(out - ref)))
    if not bool(jnp.allclose(out, ref, rtol=2e-3, atol=2e-3)):
        raise AssertionError(f"mismatch vs reference, max abs err = {err}")
    print("KERNEL_OK")
</pallas_src>

<mosaic_0001>
module attributes {stable_mosaic.version = 11 : i64} {
  func.func @kernel(%arg0: memref<128x1xf32, #tpu.memory_space<vmem>>, %arg1: memref<1824x256xbf16, #tpu.memory_space<vmem>>, %arg2: memref<9x256xf32, #tpu.memory_space<vmem>>, %arg3: memref<2x10xf32, #tpu.memory_space<vmem>>) attributes {dimension_semantics = [], scalar_prefetch = 0 : i64, scratch_operands = 0 : i64, tpu.core_type = #tpu.core_type<tc>} {
    %c0 = arith.constant 0 : index
    %c0_0 = arith.constant 0 : index
    %0 = vector.load %arg2[%c0, %c0_0] : memref<9x256xf32, #tpu.memory_space<vmem>>, vector<3x32xf32>
    %c3 = arith.constant 3 : index
    %c0_1 = arith.constant 0 : index
    %1 = vector.load %arg2[%c3, %c0_1] : memref<9x256xf32, #tpu.memory_space<vmem>>, vector<1x32xf32>
    %c0_2 = arith.constant 0 : index
    %c0_3 = arith.constant 0 : index
    %2 = vector.load %arg0[%c0_2, %c0_3] : memref<128x1xf32, #tpu.memory_space<vmem>>, vector<128x1xf32>
    %3 = arith.truncf %2 : vector<128x1xf32> to vector<128x1xbf16>
    %4 = arith.extf %3 : vector<128x1xbf16> to vector<128x1xf32>
    %5 = tpu.iota {dimensions = array<i32: 0>} : vector<128x1xi32>
    %c64_i32 = arith.constant 64 : i32
    %c0_i32 = arith.constant 0 : i32
    %6 = arith.cmpi eq, %c64_i32, %c0_i32 : i32
    %c1_i32 = arith.constant 1 : i32
    %7 = arith.select %6, %c1_i32, %c64_i32 : i32
    %8 = vector.broadcast %7 : i32 to vector<128x1xi32>
    %9 = arith.remsi %5, %8 : vector<128x1xi32>
    %c0_i32_4 = arith.constant 0 : i32
    %10 = vector.broadcast %c0_i32_4 : i32 to vector<128x1xi32>
    %11 = arith.cmpi ne, %9, %10 : vector<128x1xi32>
    %c0_i32_5 = arith.constant 0 : i32
    %12 = vector.broadcast %c0_i32_5 : i32 to vector<128x1xi32>
    %13 = arith.cmpi slt, %9, %12 : vector<128x1xi32>
    %c0_i32_6 = arith.constant 0 : i32
    %14 = arith.cmpi slt, %7, %c0_i32_6 : i32
    %15 = vector.broadcast %14 : i1 to vector<128x1xi1>
    %16 = vector.broadcast %15 : vector<128x1xi1> to vector<128x1xi1>
    %17 = arith.xori %13, %16 : vector<128x1xi1>
    %18 = arith.andi %17, %11 : vector<128x1xi1>
    %19 = vector.broadcast %7 : i32 to vector<128x1xi32>
    %20 = arith.addi %9, %19 : vector<128x1xi32>
    %21 = arith.select %18, %20, %9 : vector<128x1xi1>, vector<128x1xi32>
    %c0_i32_7 = arith.constant 0 : i32
    %22 = vector.broadcast %c0_i32_7 : i32 to vector<128x1xi32>
    %23 = arith.cmpi ne, %21, %22 : vector<128x1xi32>
    %c64_i32_8 = arith.constant 64 : i32
    %c0_i32_9 = arith.constant 0 : i32
    %24 = arith.cmpi eq, %c64_i32_8, %c0_i32_9 : i32
    %c1_i32_10 = arith.constant 1 : i32
    %25 = arith.select %24, %c1_i32_10, %c64_i32_8 : i32
    %26 = vector.broadcast %25 : i32 to vector<128x1xi32>
    %27 = arith.remsi %5, %26 : vector<128x1xi32>
    %c0_i32_11 = arith.constant 0 : i32
    %28 = vector.broadcast %c0_i32_11 : i32 to vector<128x1xi32>
    %29 = arith.cmpi ne, %27, %28 : vector<128x1xi32>
    %c0_i32_12 = arith.constant 0 : i32
    %30 = vector.broadcast %c0_i32_12 : i32 to vector<128x1xi32>
    %31 = arith.cmpi slt, %27, %30 : vector<128x1xi32>
    %c0_i32_13 = arith.constant 0 : i32
    %32 = arith.cmpi slt, %25, %c0_i32_13 : i32
    %33 = vector.broadcast %32 : i1 to vector<128x1xi1>
    %34 = vector.broadcast %33 : vector<128x1xi1> to vector<128x1xi1>
    %35 = arith.xori %31, %34 : vector<128x1xi1>
    %36 = arith.andi %35, %29 : vector<128x1xi1>
    %37 = vector.broadcast %25 : i32 to vector<128x1xi32>
    %38 = arith.addi %27, %37 : vector<128x1xi32>
    %39 = arith.select %36, %38, %27 : vector<128x1xi1>, vector<128x1xi32>
    %c63_i32 = arith.constant 63 : i32
    %40 = vector.broadcast %c63_i32 : i32 to vector<128x1xi32>
    %41 = arith.cmpi ne, %39, %40 : vector<128x1xi32>
    %c1_i32_14 = arith.constant 1 : i32
    %42 = tpu.dynamic_rotate %4 by %c1_i32_14 dim 0 : vector<128x1xf32>, i32 -> vector<128x1xf32>
    %cst = arith.constant 0.000000e+00 : f32
    %43 = vector.broadcast %cst : f32 to vector<128x1xf32>
    %44 = arith.select %23, %42, %43 : vector<128x1xi1>, vector<128x1xf32>
    %c127_i32 = arith.constant 127 : i32
    %45 = tpu.dynamic_rotate %4 by %c127_i32 dim 0 : vector<128x1xf32>, i32 -> vector<128x1xf32>
    %cst_15 = arith.constant 0.000000e+00 : f32
    %46 = vector.broadcast %cst_15 : f32 to vector<128x1xf32>
    %47 = arith.select %41, %45, %46 : vector<128x1xi1>, vector<128x1xf32>
    %48 = vector.extract_strided_slice %0 {offsets = [1, 0], sizes = [1, 32], strides = [1, 1]} : vector<3x32xf32> to vector<1x32xf32>
    %49 = vector.broadcast %4 : vector<128x1xf32> to vector<128x32xf32>
    %50 = vector.broadcast %48 : vector<1x32xf32> to vector<128x32xf32>
    %51 = arith.mulf %49, %50 : vector<128x32xf32>
    %52 = vector.extract_strided_slice %0 {offsets = [0, 0], sizes = [1, 32], strides = [1, 1]} : vector<3x32xf32> to vector<1x32xf32>
    %53 = vector.broadcast %44 : vector<128x1xf32> to vector<128x32xf32>
    %54 = vector.broadcast %52 : vector<1x32xf32> to vector<128x32xf32>
    %55 = arith.mulf %53, %54 : vector<128x32xf32>
    %56 = arith.addf %51, %55 : vector<128x32xf32>
    %57 = vector.extract_strided_slice %0 {offsets = [2, 0], sizes = [1, 32], strides = [1, 1]} : vector<3x32xf32> to vector<1x32xf32>
    %58 = vector.broadcast %47 : vector<128x1xf32> to vector<128x32xf32>
    %59 = vector.broadcast %57 : vector<1x32xf32> to vector<128x32xf32>
    %60 = arith.mulf %58, %59 : vector<128x32xf32>
    %61 = arith.addf %56, %60 : vector<128x32xf32>
    %62 = vector.broadcast %1 : vector<1x32xf32> to vector<128x32xf32>
    %63 = arith.addf %61, %62 : vector<128x32xf32>
    %cst_16 = arith.constant 0.000000e+00 : f32
    %64 = vector.broadcast %cst_16 : f32 to vector<128x32xf32>
    %65 = arith.maximumf %63, %64 : vector<128x32xf32>
    %66 = vector.shape_cast %65 : vector<128x32xf32> to vector<64x2x32xf32>
    %cst_17 = arith.constant dense<0xFF800000> : vector<64x32xf32>
    %67 = vector.multi_reduction <maximumf>, %66, %cst_17 [1] : vector<64x2x32xf32> to vector<64x32xf32>
    %c0_18 = arith.constant 0 : index
    %c0_19 = arith.constant 0 : index
    %68 = vector.load %arg1[%c0_18, %c0_19] : memref<1824x256xbf16, #tpu.memory_space<vmem>>, vector<32x64xbf16>
    %c32 = arith.constant 32 : index
    %c0_20 = arith.constant 0 : index
    %69 = vector.load %arg1[%c32, %c0_20] : memref<1824x256xbf16, #tpu.memory_space<vmem>>, vector<32x64xbf16>
    %c64 = arith.constant 64 : index
    %c0_21 = arith.constant 0 : index
    %70 = vector.load %arg1[%c64, %c0_21] : memref<1824x256xbf16, #tpu.memory_space<vmem>>, vector<32x64xbf16>
    %c4 = arith.constant 4 : index
    %c0_22 = arith.constant 0 : index
    %71 = vector.load %arg2[%c4, %c0_22] : memref<9x256xf32, #tpu.memory_space<vmem>>, vector<1x64xf32>
    %72 = tpu.iota {dimensions = array<i32: 0>} : vector<64x1xi32>
    %c32_i32 = arith.constant 32 : i32
    %c0_i32_23 = arith.constant 0 : i32
    %73 = arith.cmpi eq, %c32_i32, %c0_i32_23 : i32
    %c1_i32_24 = arith.constant 1 : i32
    %74 = arith.select %73, %c1_i32_24, %c32_i32 : i32
    %75 = vector.broadcast %74 : i32 to vector<64x1xi32>
    %76 = arith.remsi %72, %75 : vector<64x1xi32>
    %c0_i32_25 = arith.constant 0 : i32
    %77 = vector.broadcast %c0_i32_25 : i32 to vector<64x1xi32>
    %78 = arith.cmpi ne, %76, %77 : vector<64x1xi32>
    %c0_i32_26 = arith.constant 0 : i32
    %79 = vector.broadcast %c0_i32_26 : i32 to vector<64x1xi32>
    %80 = arith.cmpi slt, %76, %79 : vector<64x1xi32>
    %c0_i32_27 = arith.constant 0 : i32
    %81 = arith.cmpi slt, %74, %c0_i32_27 : i32
    %82 = vector.broadcast %81 : i1 to vector<64x1xi1>
    %83 = vector.broadcast %82 : vector<64x1xi1> to vector<64x1xi1>
    %84 = arith.xori %80, %83 : vector<64x1xi1>
    %85 = arith.andi %84, %78 : vector<64x1xi1>
    %86 = vector.broadcast %74 : i32 to vector<64x1xi32>
    %87 = arith.addi %76, %86 : vector<64x1xi32>
    %88 = arith.select %85, %87, %76 : vector<64x1xi1>, vector<64x1xi32>
    %c0_i32_28 = arith.constant 0 : i32
    %89 = vector.broadcast %c0_i32_28 : i32 to vector<64x1xi32>
    %90 = arith.cmpi ne, %88, %89 : vector<64x1xi32>
    %c32_i32_29 = arith.constant 32 : i32
    %c0_i32_30 = arith.constant 0 : i32
    %91 = arith.cmpi eq, %c32_i32_29, %c0_i32_30 : i32
    %c1_i32_31 = arith.constant 1 : i32
    %92 = arith.select %91, %c1_i32_31, %c32_i32_29 : i32
    %93 = vector.broadcast %92 : i32 to vector<64x1xi32>
    %94 = arith.remsi %72, %93 : vector<64x1xi32>
    %c0_i32_32 = arith.constant 0 : i32
    %95 = vector.broadcast %c0_i32_32 : i32 to vector<64x1xi32>
    %96 = arith.cmpi ne, %94, %95 : vector<64x1xi32>
    %c0_i32_33 = arith.constant 0 : i32
    %97 = vector.broadcast %c0_i32_33 : i32 to vector<64x1xi32>
    %98 = arith.cmpi slt, %94, %97 : vector<64x1xi32>
    %c0_i32_34 = arith.constant 0 : i32
    %99 = arith.cmpi slt, %92, %c0_i32_34 : i32
    %100 = vector.broadcast %99 : i1 to vector<64x1xi1>
    %101 = vector.broadcast %100 : vector<64x1xi1> to vector<64x1xi1>
    %102 = arith.xori %98, %101 : vector<64x1xi1>
    %103 = arith.andi %102, %96 : vector<64x1xi1>
    %104 = vector.broadcast %92 : i32 to vector<64x1xi32>
    %105 = arith.addi %94, %104 : vector<64x1xi32>
    %106 = arith.select %103, %105, %94 : vector<64x1xi1>, vector<64x1xi32>
    %c31_i32 = arith.constant 31 : i32
    %107 = vector.broadcast %c31_i32 : i32 to vector<64x1xi32>
    %108 = arith.cmpi ne, %106, %107 : vector<64x1xi32>
    %109 = arith.truncf %67 : vector<64x32xf32> to vector<64x32xbf16>
    %c1_i32_35 = arith.constant 1 : i32
    %110 = tpu.dynamic_rotate %67 by %c1_i32_35 dim 0 : vector<64x32xf32>, i32 -> vector<64x32xf32>
    %cst_36 = arith.constant 0.000000e+00 : f32
    %111 = vector.shape_cast %90 : vector<64x1xi1> to vector<64x1xi1>
    %112 = vector.broadcast %111 : vector<64x1xi1> to vector<64x32xi1>
    %113 = vector.broadcast %cst_36 : f32 to vector<64x32xf32>
    %114 = arith.select %112, %110, %113 : vector<64x32xi1>, vector<64x32xf32>
    %115 = arith.truncf %114 : vector<64x32xf32> to vector<64x32xbf16>
    %c63_i32_37 = arith.constant 63 : i32
    %116 = tpu.dynamic_rotate %67 by %c63_i32_37 dim 0 : vector<64x32xf32>, i32 -> vector<64x32xf32>
    %cst_38 = arith.constant 0.000000e+00 : f32
    %117 = vector.shape_cast %108 : vector<64x1xi1> to vector<64x1xi1>
    %118 = vector.broadcast %117 : vector<64x1xi1> to vector<64x32xi1>
    %119 = vector.broadcast %cst_38 : f32 to vector<64x32xf32>
    %120 = arith.select %118, %116, %119 : vector<64x32xi1>, vector<64x32xf32>
    %121 = arith.truncf %120 : vector<64x32xf32> to vector<64x32xbf16>
    %cst_39 = arith.constant dense<0.000000e+00> : vector<64x64xf32>
    %122 = tpu.matmul %109, %69, %cst_39 {dimension_numbers = #tpu.dot_dimension_numbers<[1], [0], [0], [1], [0, 0, 1, 1], [], []>} : vector<64x32xbf16>, vector<32x64xbf16>, vector<64x64xf32> -> vector<64x64xf32>
    %cst_40 = arith.constant dense<0.000000e+00> : vector<64x64xf32>
    %123 = tpu.matmul %115, %68, %cst_40 {dimension_numbers = #tpu.dot_dimension_numbers<[1], [0], [0], [1], [0, 0, 1, 1], [], []>} : vector<64x32xbf16>, vector<32x64xbf16>, vector<64x64xf32> -> vector<64x64xf32>
    %124 = arith.addf %122, %123 : vector<64x64xf32>
    %cst_41 = arith.constant dense<0.000000e+00> : vector<64x64xf32>
    %125 = tpu.matmul %121, %70, %cst_41 {dimension_numbers = #tpu.dot_dimension_numbers<[1], [0], [0], [1], [0, 0, 1, 1], [], []>} : vector<64x32xbf16>, vector<32x64xbf16>, vector<64x64xf32> -> vector<64x64xf32>
    %126 = arith.addf %124, %125 : vector<64x64xf32>
    %127 = vector.broadcast %71 : vector<1x64xf32> to vector<64x64xf32>
    %128 = arith.addf %126, %127 : vector<64x64xf32>
    %cst_42 = arith.constant 0.000000e+00 : f32
    %129 = vector.broadcast %cst_42 : f32 to vector<64x64xf32>
    %130 = arith.maximumf %128, %129 : vector<64x64xf32>
    %131 = vector.shape_cast %130 : vector<64x64xf32> to vector<32x2x64xf32>
    %cst_43 = arith.constant dense<0xFF800000> : vector<32x64xf32>
    %132 = vector.multi_reduction <maximumf>, %131, %cst_43 [1] : vector<32x2x64xf32> to vector<32x64xf32>
    %c96 = arith.constant 96 : index
    %c0_44 = arith.constant 0 : index
    %133 = vector.load %arg1[%c96, %c0_44] : memref<1824x256xbf16, #tpu.memory_space<vmem>>, vector<64x128xbf16>
    %c160 = arith.constant 160 : index
    %c0_45 = arith.constant 0 : index
    %134 = vector.load %arg1[%c160, %c0_45] : memref<1824x256xbf16, #tpu.memory_space<vmem>>, vector<64x128xbf16>
    %c224 = arith.constant 224 : index
    %c0_46 = arith.constant 0 : index
    %135 = vector.load %arg1[%c224, %c0_46] : memref<1824x256xbf16, #tpu.memory_space<vmem>>, vector<64x128xbf16>
    %c5 = arith.constant 5 : index
    %c0_47 = arith.constant 0 : index
    %136 = vector.load %arg2[%c5, %c0_47] : memref<9x256xf32, #tpu.memory_space<vmem>>, vector<1x128xf32>
    %137 = tpu.iota {dimensions = array<i32: 0>} : vector<32x1xi32>
    %c16_i32 = arith.constant 16 : i32
    %c0_i32_48 = arith.constant 0 : i32
    %138 = arith.cmpi eq, %c16_i32, %c0_i32_48 : i32
    %c1_i32_49 = arith.constant 1 : i32
    %139 = arith.select %138, %c1_i32_49, %c16_i32 : i32
    %140 = vector.broadcast %139 : i32 to vector<32x1xi32>
    %141 = arith.remsi %137, %140 : vector<32x1xi32>
    %c0_i32_50 = arith.constant 0 : i32
    %142 = vector.broadcast %c0_i32_50 : i32 to vector<32x1xi32>
    %143 = arith.cmpi ne, %141, %142 : vector<32x1xi32>
    %c0_i32_51 = arith.constant 0 : i32
    %144 = vector.broadcast %c0_i32_51 : i32 to vector<32x1xi32>
    %145 = arith.cmpi slt, %141, %144 : vector<32x1xi32>
    %c0_i32_52 = arith.constant 0 : i32
    %146 = arith.cmpi slt, %139, %c0_i32_52 : i32
    %147 = vector.broadcast %146 : i1 to vector<32x1xi1>
    %148 = vector.broadcast %147 : vector<32x1xi1> to vector<32x1xi1>
    %149 = arith.xori %145, %148 : vector<32x1xi1>
    %150 = arith.andi %149, %143 : vector<32x1xi1>
    %151 = vector.broadcast %139 : i32 to vector<32x1xi32>
    %152 = arith.addi %141, %151 : vector<32x1xi32>
    %153 = arith.select %150, %152, %141 : vector<32x1xi1>, vector<32x1xi32>
    %c0_i32_53 = arith.constant 0 : i32
    %154 = vector.broadcast %c0_i32_53 : i32 to vector<32x1xi32>
    %155 = arith.cmpi ne, %153, %154 : vector<32x1xi32>
    %c16_i32_54 = arith.constant 16 : i32
    %c0_i32_55 = arith.constant 0 : i32
    %156 = arith.cmpi eq, %c16_i32_54, %c0_i32_55 : i32
    %c1_i32_56 = arith.constant 1 : i32
    %157 = arith.select %156, %c1_i32_56, %c16_i32_54 : i32
    %158 = vector.broadcast %157 : i32 to vector<32x1xi32>
    %159 = arith.remsi %137, %158 : vector<32x1xi32>
    %c0_i32_57 = arith.constant 0 : i32
    %160 = vector.broadcast %c0_i32_57 : i32 to vector<32x1xi32>
    %161 = arith.cmpi ne, %159, %160 : vector<32x1xi32>
    %c0_i32_58 = arith.constant 0 : i32
    %162 = vector.broadcast %c0_i32_58 : i32 to vector<32x1xi32>
    %163 = arith.cmpi slt, %159, %162 : vector<32x1xi32>
    %c0_i32_59 = arith.constant 0 : i32
    %164 = arith.cmpi slt, %157, %c0_i32_59 : i32
    %165 = vector.broadcast %164 : i1 to vector<32x1xi1>
    %166 = vector.broadcast %165 : vector<32x1xi1> to vector<32x1xi1>
    %167 = arith.xori %163, %166 : vector<32x1xi1>
    %168 = arith.andi %167, %161 : vector<32x1xi1>
    %169 = vector.broadcast %157 : i32 to vector<32x1xi32>
    %170 = arith.addi %159, %169 : vector<32x1xi32>
    %171 = arith.select %168, %170, %159 : vector<32x1xi1>, vector<32x1xi32>
    %c15_i32 = arith.constant 15 : i32
    %172 = vector.broadcast %c15_i32 : i32 to vector<32x1xi32>
    %173 = arith.cmpi ne, %171, %172 : vector<32x1xi32>
    %174 = arith.truncf %132 : vector<32x64xf32> to vector<32x64xbf16>
    %c1_i32_60 = arith.constant 1 : i32
    %175 = tpu.dynamic_rotate %132 by %c1_i32_60 dim 0 : vector<32x64xf32>, i32 -> vector<32x64xf32>
    %cst_61 = arith.constant 0.000000e+00 : f32
    %176 = vector.shape_cast %155 : vector<32x1xi1> to vector<32x1xi1>
    %177 = vector.broadcast %176 : vector<32x1xi1> to vector<32x64xi1>
    %178 = vector.broadcast %cst_61 : f32 to vector<32x64xf32>
    %179 = arith.select %177, %175, %178 : vector<32x64xi1>, vector<32x64xf32>
    %180 = arith.truncf %179 : vector<32x64xf32> to vector<32x64xbf16>
    %c31_i32_62 = arith.constant 31 : i32
    %181 = tpu.dynamic_rotate %132 by %c31_i32_62 dim 0 : vector<32x64xf32>, i32 -> vector<32x64xf32>
    %cst_63 = arith.constant 0.000000e+00 : f32
    %182 = vector.shape_cast %173 : vector<32x1xi1> to vector<32x1xi1>
    %183 = vector.broadcast %182 : vector<32x1xi1> to vector<32x64xi1>
    %184 = vector.broadcast %cst_63 : f32 to vector<32x64xf32>
    %185 = arith.select %183, %181, %184 : vector<32x64xi1>, vector<32x64xf32>
    %186 = arith.truncf %185 : vector<32x64xf32> to vector<32x64xbf16>
    %cst_64 = arith.constant dense<0.000000e+00> : vector<32x128xf32>
    %187 = tpu.matmul %174, %134, %cst_64 {dimension_numbers = #tpu.dot_dimension_numbers<[1], [0], [0], [1], [0, 0, 1, 1], [], []>} : vector<32x64xbf16>, vector<64x128xbf16>, vector<32x128xf32> -> vector<32x128xf32>
    %cst_65 = arith.constant dense<0.000000e+00> : vector<32x128xf32>
    %188 = tpu.matmul %180, %133, %cst_65 {dimension_numbers = #tpu.dot_dimension_numbers<[1], [0], [0], [1], [0, 0, 1, 1], [], []>} : vector<32x64xbf16>, vector<64x128xbf16>, vector<32x128xf32> -> vector<32x128xf32>
    %189 = arith.addf %187, %188 : vector<32x128xf32>
    %cst_66 = arith.constant dense<0.000000e+00> : vector<32x128xf32>
    %190 = tpu.matmul %186, %135, %cst_66 {dimension_numbers = #tpu.dot_dimension_numbers<[1], [0], [0], [1], [0, 0, 1, 1], [], []>} : vector<32x64xbf16>, vector<64x128xbf16>, vector<32x128xf32> -> vector<32x128xf32>
    %191 = arith.addf %189, %190 : vector<32x128xf32>
    %192 = vector.broadcast %136 : vector<1x128xf32> to vector<32x128xf32>
    %193 = arith.addf %191, %192 : vector<32x128xf32>
    %cst_67 = arith.constant 0.000000e+00 : f32
    %194 = vector.broadcast %cst_67 : f32 to vector<32x128xf32>
    %195 = arith.maximumf %193, %194 : vector<32x128xf32>
    %196 = vector.shape_cast %195 : vector<32x128xf32> to vector<16x2x128xf32>
    %cst_68 = arith.constant dense<0xFF800000> : vector<16x128xf32>
    %197 = vector.multi_reduction <maximumf>, %196, %cst_68 [1] : vector<16x2x128xf32> to vector<16x128xf32>
    %c288 = arith.constant 288 : index
    %c0_69 = arith.constant 0 : index
    %198 = vector.load %arg1[%c288, %c0_69] : memref<1824x256xbf16, #tpu.memory_space<vmem>>, vector<128x256xbf16>
    %c416 = arith.constant 416 : index
    %c0_70 = arith.constant 0 : index
    %199 = vector.load %arg1[%c416, %c0_70] : memref<1824x256xbf16, #tpu.memory_space<vmem>>, vector<128x256xbf16>
    %c544 = arith.constant 544 : index
    %c0_71 = arith.constant 0 : index
    %200 = vector.load %arg1[%c544, %c0_71] : memref<1824x256xbf16, #tpu.memory_space<vmem>>, vector<128x256xbf16>
    %c6 = arith.constant 6 : index
    %c0_72 = arith.constant 0 : index
    %201 = vector.load %arg2[%c6, %c0_72] : memref<9x256xf32, #tpu.memory_space<vmem>>, vector<1x256xf32>
    %202 = tpu.iota {dimensions = array<i32: 0>} : vector<16x1xi32>
    %c8_i32 = arith.constant 8 : i32
    %c0_i32_73 = arith.constant 0 : i32
    %203 = arith.cmpi eq, %c8_i32, %c0_i32_73 : i32
    %c1_i32_74 = arith.constant 1 : i32
    %204 = arith.select %203, %c1_i32_74, %c8_i32 : i32
    %205 = vector.broadcast %204 : i32 to vector<16x1xi32>
    %206 = arith.remsi %202, %205 : vector<16x1xi32>
    %c0_i32_75 = arith.constant 0 : i32
    %207 = vector.broadcast %c0_i32_75 : i32 to vector<16x1xi32>
    %208 = arith.cmpi ne, %206, %207 : vector<16x1xi32>
    %c0_i32_76 = arith.constant 0 : i32
    %209 = vector.broadcast %c0_i32_76 : i32 to vector<16x1xi32>
    %210 = arith.cmpi slt, %206, %209 : vector<16x1xi32>
    %c0_i32_77 = arith.constant 0 : i32
    %211 = arith.cmpi slt, %204, %c0_i32_77 : i32
    %212 = vector.broadcast %211 : i1 to vector<16x1xi1>
    %213 = vector.broadcast %212 : vector<16x1xi1> to vector<16x1xi1>
    %214 = arith.xori %210, %213 : vector<16x1xi1>
    %215 = arith.andi %214, %208 : vector<16x1xi1>
    %216 = vector.broadcast %204 : i32 to vector<16x1xi32>
    %217 = arith.addi %206, %216 : vector<16x1xi32>
    %218 = arith.select %215, %217, %206 : vector<16x1xi1>, vector<16x1xi32>
    %c0_i32_78 = arith.constant 0 : i32
    %219 = vector.broadcast %c0_i32_78 : i32 to vector<16x1xi32>
    %220 = arith.cmpi ne, %218, %219 : vector<16x1xi32>
    %c8_i32_79 = arith.constant 8 : i32
    %c0_i32_80 = arith.constant 0 : i32
    %221 = arith.cmpi eq, %c8_i32_79, %c0_i32_80 : i32
    %c1_i32_81 = arith.constant 1 : i32
    %222 = arith.select %221, %c1_i32_81, %c8_i32_79 : i32
    %223 = vector.broadcast %222 : i32 to vector<16x1xi32>
    %224 = arith.remsi %202, %223 : vector<16x1xi32>
    %c0_i32_82 = arith.constant 0 : i32
    %225 = vector.broadcast %c0_i32_82 : i32 to vector<16x1xi32>
    %226 = arith.cmpi ne, %224, %225 : vector<16x1xi32>
    %c0_i32_83 = arith.constant 0 : i32
    %227 = vector.broadcast %c0_i32_83 : i32 to vector<16x1xi32>
    %228 = arith.cmpi slt, %224, %227 : vector<16x1xi32>
    %c0_i32_84 = arith.constant 0 : i32
    %229 = arith.cmpi slt, %222, %c0_i32_84 : i32
    %230 = vector.broadcast %229 : i1 to vector<16x1xi1>
    %231 = vector.broadcast %230 : vector<16x1xi1> to vector<16x1xi1>
    %232 = arith.xori %228, %231 : vector<16x1xi1>
    %233 = arith.andi %232, %226 : vector<16x1xi1>
    %234 = vector.broadcast %222 : i32 to vector<16x1xi32>
    %235 = arith.addi %224, %234 : vector<16x1xi32>
    %236 = arith.select %233, %235, %224 : vector<16x1xi1>, vector<16x1xi32>
    %c7_i32 = arith.constant 7 : i32
    %237 = vector.broadcast %c7_i32 : i32 to vector<16x1xi32>
    %238 = arith.cmpi ne, %236, %237 : vector<16x1xi32>
    %239 = arith.truncf %197 : vector<16x128xf32> to vector<16x128xbf16>
    %c1_i32_85 = arith.constant 1 : i32
    %240 = tpu.dynamic_rotate %197 by %c1_i32_85 dim 0 : vector<16x128xf32>, i32 -> vector<16x128xf32>
    %cst_86 = arith.constant 0.000000e+00 : f32
    %241 = vector.shape_cast %220 : vector<16x1xi1> to vector<16x1xi1>
    %242 = vector.broadcast %241 : vector<16x1xi1> to vector<16x128xi1>
    %243 = vector.broadcast %cst_86 : f32 to vector<16x128xf32>
    %244 = arith.select %242, %240, %243 : vector<16x128xi1>, vector<16x128xf32>
    %245 = arith.truncf %244 : vector<16x128xf32> to vector<16x128xbf16>
    %c15_i32_87 = arith.constant 15 : i32
    %246 = tpu.dynamic_rotate %197 by %c15_i32_87 dim 0 : vector<16x128xf32>, i32 -> vector<16x128xf32>
    %cst_88 = arith.constant 0.000000e+00 : f32
    %247 = vector.shape_cast %238 : vector<16x1xi1> to vector<16x1xi1>
    %248 = vector.broadcast %247 : vector<16x1xi1> to vector<16x128xi1>
    %249 = vector.broadcast %cst_88 : f32 to vector<16x128xf32>
    %250 = arith.select %248, %246, %249 : vector<16x128xi1>, vector<16x128xf32>
    %251 = arith.truncf %250 : vector<16x128xf32> to vector<16x128xbf16>
    %cst_89 = arith.constant dense<0.000000e+00> : vector<16x256xf32>
    %252 = tpu.matmul %239, %199, %cst_89 {dimension_numbers = #tpu.dot_dimension_numbers<[1], [0], [0], [1], [0, 0, 1, 1], [], []>} : vector<16x128xbf16>, vector<128x256xbf16>, vector<16x256xf32> -> vector<16x256xf32>
    %cst_90 = arith.constant dense<0.000000e+00> : vector<16x256xf32>
    %253 = tpu.matmul %245, %198, %cst_90 {dimension_numbers = #tpu.dot_dimension_numbers<[1], [0], [0], [1], [0, 0, 1, 1], [], []>} : vector<16x128xbf16>, vector<128x256xbf16>, vector<16x256xf32> -> vector<16x256xf32>
    %254 = arith.addf %252, %253 : vector<16x256xf32>
    %cst_91 = arith.constant dense<0.000000e+00> : vector<16x256xf32>
    %255 = tpu.matmul %251, %200, %cst_91 {dimension_numbers = #tpu.dot_dimension_numbers<[1], [0], [0], [1], [0, 0, 1, 1], [], []>} : vector<16x128xbf16>, vector<128x256xbf16>, vector<16x256xf32> -> vector<16x256xf32>
    %256 = arith.addf %254, %255 : vector<16x256xf32>
    %257 = vector.broadcast %201 : vector<1x256xf32> to vector<16x256xf32>
    %258 = arith.addf %256, %257 : vector<16x256xf32>
    %cst_92 = arith.constant 0.000000e+00 : f32
    %259 = vector.broadcast %cst_92 : f32 to vector<16x256xf32>
    %260 = arith.maximumf %258, %259 : vector<16x256xf32>
    %261 = vector.shape_cast %260 : vector<16x256xf32> to vector<8x2x256xf32>
    %cst_93 = arith.constant dense<0xFF800000> : vector<8x256xf32>
    %262 = vector.multi_reduction <maximumf>, %261, %cst_93 [1] : vector<8x2x256xf32> to vector<8x256xf32>
    %263 = vector.shape_cast %262 : vector<8x256xf32> to vector<2x4x256xf32>
    %264 = vector.extract_strided_slice %263 {offsets = [0, 0, 0], sizes = [2, 1, 256], strides = [1, 1, 1]} : vector<2x4x256xf32> to vector<2x1x256xf32>
    %265 = vector.shape_cast %264 : vector<2x1x256xf32> to vector<2x256xf32>
    %266 = vector.extract_strided_slice %263 {offsets = [0, 1, 0], sizes = [2, 1, 256], strides = [1, 1, 1]} : vector<2x4x256xf32> to vector<2x1x256xf32>
    %267 = vector.shape_cast %266 : vector<2x1x256xf32> to vector<2x256xf32>
    %268 = vector.extract_strided_slice %263 {offsets = [0, 2, 0], sizes = [2, 1, 256], strides = [1, 1, 1]} : vector<2x4x256xf32> to vector<2x1x256xf32>
    %269 = vector.shape_cast %268 : vector<2x1x256xf32> to vector<2x256xf32>
    %270 = vector.extract_strided_slice %263 {offsets = [0, 3, 0], sizes = [2, 1, 256], strides = [1, 1, 1]} : vector<2x4x256xf32> to vector<2x1x256xf32>
    %271 = vector.shape_cast %270 : vector<2x1x256xf32> to vector<2x256xf32>
    %272 = tpu.concatenate %265, %267, %269, %271 in 1 : vector<2x256xf32>, vector<2x256xf32>, vector<2x256xf32>, vector<2x256xf32> -> vector<2x1024xf32>
    %273 = arith.truncf %272 : vector<2x1024xf32> to vector<2x1024xbf16>
    %c672 = arith.constant 672 : index
    %c0_94 = arith.constant 0 : index
    %274 = vector.load %arg1[%c672, %c0_94] : memref<1824x256xbf16, #tpu.memory_space<vmem>>, vector<1024x128xbf16>
    %c7 = arith.constant 7 : index
    %c0_95 = arith.constant 0 : index
    %275 = vector.load %arg2[%c7, %c0_95] : memref<9x256xf32, #tpu.memory_space<vmem>>, vector<1x128xf32>
    %cst_96 = arith.constant dense<0.000000e+00> : vector<2x128xf32>
    %276 = tpu.matmul %273, %274, %cst_96 {dimension_numbers = #tpu.dot_dimension_numbers<[1], [0], [0], [1], [0, 0, 1, 1], [], []>} : vector<2x1024xbf16>, vector<1024x128xbf16>, vector<2x128xf32> -> vector<2x128xf32>
    %277 = vector.broadcast %275 : vector<1x128xf32> to vector<2x128xf32>
    %278 = arith.addf %276, %277 : vector<2x128xf32>
    %cst_97 = arith.constant 0.000000e+00 : f32
    %279 = vector.broadcast %cst_97 : f32 to vector<2x128xf32>
    %280 = arith.maximumf %278, %279 : vector<2x128xf32>
    %c1696 = arith.constant 1696 : index
    %c0_98 = arith.constant 0 : index
    %281 = vector.load %arg1[%c1696, %c0_98] : memref<1824x256xbf16, #tpu.memory_space<vmem>>, vector<128x10xbf16>
    %c8 = arith.constant 8 : index
    %c0_99 = arith.constant 0 : index
    %282 = vector.load %arg2[%c8, %c0_99] : memref<9x256xf32, #tpu.memory_space<vmem>>, vector<1x10xf32>
    %283 = arith.truncf %280 : vector<2x128xf32> to vector<2x128xbf16>
    %cst_100 = arith.constant dense<0.000000e+00> : vector<2x10xf32>
    %284 = tpu.matmul %283, %281, %cst_100 {dimension_numbers = #tpu.dot_dimension_numbers<[1], [0], [0], [1], [0, 0, 1, 1], [], []>} : vector<2x128xbf16>, vector<128x10xbf16>, vector<2x10xf32> -> vector<2x10xf32>
    %285 = vector.broadcast %282 : vector<1x10xf32> to vector<2x10xf32>
    %286 = arith.addf %284, %285 : vector<2x10xf32>
    %c0_101 = arith.constant 0 : index
    %c0_102 = arith.constant 0 : index
    %287 = vector.load %arg3[%c0_101, %c0_102] : memref<2x10xf32, #tpu.memory_space<vmem>>, vector<2x10xf32>
    tpu.vector_store %arg3[%c0_101, %c0_102], %286 {strides = array<i32>} : memref<2x10xf32, #tpu.memory_space<vmem>>, vector<2x10xf32>,
    return
  }
}

</mosaic_0001>

<bundles_post_ra>
// kernel: deep_cnn_forward.1
= control target key start
LH: loop header
LB: loop body
LE: loop exit
PB: predicated region body
PF: predicated region fallthrough
CT: control target
= control target key end

     0   :  { %8 = vsyncpa [#allocation3], 0  ;;  %s7890_s0 = inlined_call_operand.vmem [shape: f32[128,1], index: 0, kind: input, shape index: {}]   ;;  %s7891_s1 = inlined_call_operand.hbm [shape: bf16[1824,256], index: 1, kind: input, shape index: {}]   ;;  %s7892_s2 = inlined_call_operand.vmem [shape: f32[9,256], index: 2, kind: input, shape index: {}]   ;;  %s7893_s3 = inlined_call_operand.hbm [shape: f32[2,10], index: 3, kind: output, shape index: {}]  }
   0x1   :  { %9 = vsyncpa [#allocation4], 0  ;;  %s6054_s12 = smov [#allocation2]   ;;  %s6006_s16 = scalar_lea.hbm %s7891_s1, 29184 }
   0x2   :  { %s17_s13 = sshll.u32 %s6054_s12, 4  ;;  %p6007_p0 = scmp.ne.s32.totalorder %s7891_s1, %s6006_s16  ;;  %s18_s13 = int_to_ptr.vmem [resolvable:$true] %s17_s13 }
   0x3   :  { %p6010_p1 = scmp.lt.u32.totalorder %s6006_s16, %s7891_s1 }
   0x5   :  { %p6012_p2 = pnand %p6010_p1, %p6007_p0 }
   0x7   :  { %6015 = shalt.err (!%p6012_p2)
}
   0x8   :  { %s6016_s21 = scalar_lea.vmem %s18_s13, 29184  ;;  %p6021_p4 = scmp.lt.s32.totalorder %s18_s13, %s18_s13 }
   0x9   :  { %p6017_p3 = scmp.ne.s32.totalorder %s18_s13, %s6016_s21  ;;  %p6022_p5 = scmp.lt.s32.totalorder %s6016_s21, %s6016_s21 }
   0xb   :  { %p6023_p6 = por %p6022_p5, %p6021_p4 }
   0xd   :  { %p6024_p7 = pnand %p6023_p6, %p6017_p3 }
   0xf   :  { %6027 = shalt.err (!%p6024_p7)
}
  0x10   :  { %s6055_s22 = smov 128   ;;  %s6056_s23 = smov 8  }
  0x11   :  { %23 = dma.hbm_to_vmem [thread:$0]  %s7891_s1, 29184, %s18_s13, [#allocation3], %s6055_s22, %s6055_s22, %s6056_s23  }
  0x12   :  { %6050 = dma.done.wait [#allocation3], 29184  }
  0x13   :  { %6051 = vsyncadd [#allocation3], 4294938112  ;;  %v72_v0 = vlaneseq  ;;  %v7896_v1 = vmov 0   ;;  %v6101_v3 = vld [vmem:[%s7890_s0 + $0x20] sm:$0xff]  ;;  %v6106_v4 = vld [vmem:[%s7890_s0 + $0x28] sm:$0xff]  ;;  %vm1127_vm6 = vcmask 254976  }
  0x14   :  { %5726 = vset.pattern.permute.xlu1 %v7896_v1  ;;  %5720 = vset.pattern.permute.xlu0 %v7896_v1  ;;  %v6111_v5 = vld [vmem:[%s7890_s0 + $0x30] sm:$0xff]  ;;  %v6116_v6 = vld [vmem:[%s7890_s0 + $0x38] sm:$0xff]  ;;  %v6121_v7 = vld [vmem:[%s7890_s0] sm:$0xff]  ;;  %v317_v17 = vrot.slane %v6101_v3, 7  ;;  %v318_v20 = vrot.slane %v6106_v4, 7  ;;  %v366_v43 = vrot.slane %v6101_v3, 1 }
  0x15   :  { %v6096_v2 = vshrl.u32 %v72_v0, 7  ;;  %v6126_v8 = vld [vmem:[%s7890_s0 + $0x8] sm:$0xff]  ;;  %v6133_v9 = vld [vmem:[%s7890_s0 + $0x70] sm:$0xff]  ;;  %v6138_v10 = vld [vmem:[%s7890_s0 + $0x78] sm:$0xff]  ;;  %v5727_v18 = vpack.i.bf16 %v6111_v5, %v6101_v3  ;;  %v319_v21 = vrot.slane %v6111_v5, 7  ;;  %v362_v23 = vrot.slane %v6121_v7, 1 }
  0x16   :  { %v6143_v11 = vld [vmem:[%s7890_s0 + $0x10] sm:$0xff]  ;;  %v6152_v14 = vld [vmem:[%s7890_s0 + $0x18] sm:$0xff]  ;;  %v314_v19 = vrot.slane %v6126_v8, 7  ;;  %v5721_v22 = vpack.i.bf16 %v6133_v9, %v6121_v7  ;;  %v363_v25 = vrot.slane %v6126_v8, 1  ;;  %v376_v26 = vrot.slane %v6133_v9, 1  ;;  %v6179_v28 = vld [vmem:[%s7890_s0 + $0x60] sm:$0xff] }
  0x17   :  { %vm329_vm0 = vcmp.lt.s32.totalorder %v6096_v2, 1  ;;  %vm378_vm1 = vcmp.lt.s32.totalorder %v6096_v2, 7  ;;  %v93_v12 = vand.u32 63, %v6096_v2  ;;  %v6147_v13 = vadd.s32 120, %v6096_v2  ;;  %5728 = vperm.xlu1 %5726, %v5727_v18   ;;  %v6184_v29 = vld [vmem:[%s7890_s0 + $0x68] sm:$0xff]  ;;  %v6216_v50 = vld [vmem:[%s7890_s0 + $0x40] sm:$0xff] }
  0x18   :  { %v6155_v15 = vadd.s32 64, %v6096_v2  ;;  %v6158_v16 = vadd.s32 56, %v6096_v2  ;;  %v339_v24 = vsel %vm329_vm0, %v318_v20, %v319_v21  ;;  %v377_v27 = vrot.slane %v6138_v10, 1  ;;  %5722 = vperm.xlu0 %5720, %v5721_v22   ;;  %v6221_v51 = vld [vmem:[%s7890_s0 + $0x48] sm:$0xff]  ;;  %v6239_v58 = vld [vmem:[%s7890_s0 + $0x50] sm:$0xff]  ;;  %v6254_v3 = vld [vmem:[%s7890_s0 + $0x58] sm:$0xff] }
  0x19   :  { %v315_v30 = vrot.slane %v6143_v11, 7  ;;  %v316_v31 = vrot.slane %v6152_v14, 7  ;;  %v364_v32 = vrot.slane %v6143_v11, 1  ;;  %v365_v33 = vrot.slane %v6152_v14, 1  ;;  %s6061_s17 = smov [#allocation5]  }
  0x1a   :  { %7919 = vst [vmem:[#allocation8_spill] sm:$0xff] %v6158_v16  ;;  %v379_v34 = vsel %vm378_vm1, %v376_v26, %v377_v27  ;;  %v327_v35 = vrot.slane %v6133_v9, 7  ;;  %v328_v36 = vrot.slane %v6138_v10, 7  ;;  %v393_v40 = vsel %vm378_vm1, %v362_v23, %v363_v25  ;;  %v30_v9 = vld [vmem:[%s7892_s2] sm:$0x7]  ;;  %s5283_s18 = sshll.u32 %s6061_s17, 4  ;;  %s5284_s18 = int_to_ptr.vmem [resolvable:$true] %s5283_s18 }
  0x1b   :  { %v343_v37 = vsel %vm329_vm0, %v314_v19, %v315_v30  ;;  %v341_v38 = vsel %vm329_vm0, %v316_v31, %v317_v17  ;;  %v391_v39 = vsel %vm378_vm1, %v364_v32, %v365_v33  ;;  %v367_v44 = vrot.slane %v6106_v4, 1  ;;  %s6028_s19 = scalar_lea.vmem %s5284_s18, 32  ;;  %p6033_p9 = scmp.lt.s32.totalorder %s5284_s18, %s5284_s18 }
  0x1c   :  { %v5732_v41 = vpack.i.bf16 %v343_v37, %v6143_v11  ;;  %v5737_v42 = vpack.i.bf16 %v339_v24, %v341_v38  ;;  %v313_v45 = vrot.slane %v6121_v7, 7  ;;  %v5747_v46 = vpack.i.bf16 %v6126_v8, %v391_v39  ;;  %p6029_p8 = scmp.ne.s32.totalorder %s5284_s18, %s6028_s19  ;;  %p6034_p10 = scmp.lt.s32.totalorder %s6028_s19, %s6028_s19 }
  0x1d   :  { %v5742_v47 = vpack.i.bf16 %v379_v34, %v393_v40  ;;  %v368_v48 = vrot.slane %v6111_v5, 1  ;;  %v369_v49 = vrot.slane %v6116_v6, 1  ;;  %v330_v52 = vsel %vm329_vm0, %v327_v35, %v328_v36 }
  0x1e   :  { %5733 = vperm.xlu1 %5726, %v5732_v41   ;;  %5738 = vperm.xlu0 %5720, %v5737_v42   ;;  %v389_v53 = vsel %vm378_vm1, %v366_v43, %v367_v44  ;;  %v344_v54 = vsel %vm329_vm0, %v313_v45, %v314_v19  ;;  %vm6229_vm2 = vcmp.ne.s32.totalorder %v93_v12, 0  ;;  %v345_v56 = vsel %vm329_vm0, %v328_v36, %v313_v45  ;;  %p6035_p11 = por %p6034_p10, %p6033_p9 }
  0x1f   :  { %v326_v57 = vrot.slane %v6184_v29, 7  ;;  %v5757_v59 = vpack.i.bf16 %v389_v53, %v330_v52  ;;  %v5752_v60 = vpack.i.bf16 %v344_v54, %v6138_v10  ;;  %v198_v61 = vand.u32 63, %v6147_v13 }
  0x20   :  { %v346_v63 = vsel %vm6229_vm2, %v345_v56, 0.0  ;;  %v387_v0 = vsel %vm378_vm1, %v368_v48, %v369_v49  ;;  %v342_v7 = vsel %vm329_vm0, %v315_v30, %v316_v31  ;;  %v340_v10 = vsel %vm329_vm0, %v317_v17, %v318_v20  ;;  %p6036_p12 = pnand %p6035_p11, %p6029_p8 }
  0x21   :  { %v331_v62 = vsel %vm329_vm0, %v326_v57, %v327_v35  ;;  %v5762_v12 = vpack.i.bf16 %v6152_v14, %v387_v0  ;;  %v320_v13 = vrot.slane %v6116_v6, 7  ;;  %vm6262_vm3 = vcmp.ne.s32.totalorder %v198_v61, 63 }
  0x22   :  { %5748 = vperm.xlu0 %5720, %v5747_v46   ;;  %5743 = vperm.xlu1 %5726, %v5742_v47   ;;  %v5767_v11 = vpack.i.bf16 %v331_v62, %v346_v63  ;;  %v394_v19 = vsel %vm378_vm1, %v377_v27, %v362_v23  ;;  %v149_v22 = vand.u32 63, %v6155_v15  ;;  %v321_v24 = vrot.slane %v6216_v50, 7 }
  0x23   :  { %v142_v17 = vand.u32 63, %v6158_v16  ;;  %v370_v20 = vrot.slane %v6216_v50, 1  ;;  %v5772_v30 = vpack.i.bf16 %v6106_v4, %v342_v7  ;;  %v5777_v14 = vpack.i.bf16 %v340_v10, %v6116_v6 }
  0x24   :  { %v390_v31 = vsel %vm378_vm1, %v365_v33, %v366_v43  ;;  %v410_v23 = vsel %vm6262_vm3, %v394_v19, 0.0  ;;  %v338_v15 = vsel %vm329_vm0, %v319_v21, %v320_v13  ;;  %v392_v4 = vsel %vm378_vm1, %v363_v25, %v364_v32 }
  0x25   :  { %vm6286_vm4 = vcmp.ne.s32.totalorder %v149_v22, 0  ;;  %v337_v27 = vsel %vm329_vm0, %v320_v13, %v321_v24  ;;  %vm6292_vm5 = vcmp.ne.s32.totalorder %v142_v17, 63  ;;  %v386_v5 = vsel %vm378_vm1, %v369_v49, %v370_v20 }
  0x26   :  { %5758 = vperm.xlu0 %5720, %v5757_v59   ;;  %5753 = vperm.xlu1 %5726, %v5752_v60   ;;  %v5787_v21 = vpack.i.bf16 %v390_v31, %v410_v23  ;;  %v5782_v8 = vpack.i.bf16 %v392_v4, %v338_v15  ;;  %v322_v25 = vrot.slane %v6221_v51, 7  ;;  %v323_v32 = vrot.slane %v6239_v58, 7 }
  0x27   :  { %v325_v34 = vrot.slane %v6179_v28, 7  ;;  %v354_v35 = vsel %vm6286_vm4, %v337_v27, 0.0  ;;  %v388_v36 = vsel %vm378_vm1, %v367_v44, %v368_v48  ;;  %v402_v37 = vsel %vm6292_vm5, %v386_v5, 0.0 }
  0x28   :  { %v324_v38 = vrot.slane %v6254_v3, 7  ;;  %v5792_v39 = vpack.i.bf16 %v354_v35, %v6216_v50  ;;  %v5797_v40 = vpack.i.bf16 %v402_v37, %v388_v36  ;;  %v371_v41 = vrot.slane %v6221_v51, 1  ;;  %v6372_v37 = vld [vmem:[%s7892_s2 + $0x3] ss:$0 sm:$0xff] }
  0x29   :  { %v335_v42 = vsel %vm329_vm0, %v322_v25, %v323_v32  ;;  %v372_v44 = vrot.slane %v6239_v58, 1  ;;  %v373_v45 = vrot.slane %v6254_v3, 1  ;;  %v375_v46 = vrot.slane %v6184_v29, 1 }
  0x2a   :  { %5768 = vperm.xlu0 %5720, %v5767_v11   ;;  %5763 = vperm.xlu1 %5726, %v5762_v12   ;;  %v333_v43 = vsel %vm329_vm0, %v324_v38, %v325_v34  ;;  %v374_v47 = vrot.slane %v6179_v28, 1  ;;  %v5802_v48 = vpack.i.bf16 %v335_v42, %v6239_v58  ;;  %v385_v52 = vsel %vm378_vm1, %v370_v20, %v371_v41 }
  0x2b   :  { %v5807_v49 = vpack.i.bf16 %v333_v43, %v6179_v28  ;;  %v383_v50 = vsel %vm378_vm1, %v372_v44, %v373_v45  ;;  %v336_v53 = vsel %vm329_vm0, %v321_v24, %v322_v25  ;;  %v334_v28 = vsel %vm329_vm0, %v323_v32, %v324_v38 }
  0x2c   :  { %v5812_v54 = vpack.i.bf16 %v383_v50, %v385_v52  ;;  %v5817_v55 = vpack.i.bf16 %v336_v53, %v6221_v51  ;;  %v381_v56 = vsel %vm378_vm1, %v374_v47, %v375_v46  ;;  %v5827_v59 = vpack.i.bf16 %v6184_v29, %v334_v28 }
  0x2d   :  { %v5822_v58 = vpack.i.bf16 %v6254_v3, %v381_v56  ;;  %v332_v60 = vsel %vm329_vm0, %v325_v34, %v326_v57  ;;  %v384_v51 = vsel %vm378_vm1, %v371_v41, %v372_v44  ;;  %v380_v61 = vsel %vm378_vm1, %v375_v46, %v376_v26 }
  0x2e   :  { %5773 = vperm.xlu0 %5720, %v5772_v30   ;;  %5778 = vperm.xlu1 %5726, %v5777_v14   ;;  %v382_v62 = vsel %vm378_vm1, %v373_v45, %v374_v47  ;;  %v5832_v63 = vpack.i.bf16 %v384_v51, %v332_v60  ;;  %v7895_v57 = vsub.s32 0, %v6096_v2  ;;  %v7894_v7 = vsub.s32 1, %v6096_v2 }
  0x2f   :  { %v5837_v0 = vpack.i.bf16 %v380_v61, %v382_v62  ;;  %v709_v12 = vsub.s32 2, %v6096_v2  ;;  %v6058_v13 = vmov 1983009808   ;;  %vm1829_vm7 = vcmask 1041409  }
  0x30   :  { %v6352_v10 = vrot.slane %v30_v9, %v7895_v57  ;;  %v793_v18 = vunpack.c.l.s4 %v6058_v13  ;;  %v6357_v24 = vrot.slane %v30_v9, %v7894_v7  ;;  %vm1831_vm8 = vcmask 1042434  }
  0x31   :  { %v6361_v23 = vrot.slane %v30_v9, %v709_v12  ;;  %vm1833_vm9 = vcmask 1043459   ;;  %vm1835_vm10 = vcmask 1044484   ;;  %vm1837_vm11 = vcmask 1045509  }
  0x32   :  { %5783 = vperm.xlu0 %5720, %v5782_v8   ;;  %5788 = vperm.xlu1 %5726, %v5787_v21   ;;  %v794_v4 = vunpack.c.0.s8 %v793_v18  ;;  %vm1839_vm12 = vcmask 1046534   ;;  %vm1841_vm13 = vcmask 1047559   ;;  %vm2000_vm15 = vcmask 261120  }
  0x33   :  { %vm2644_vm5 = vcmask 517120  }
  0x34   :  { %v6367_v36 = vsub.s32 %v794_v4, %v6096_v2 }
  0x36   :  { %5793 = vperm.xlu0 %5720, %v5792_v39   ;;  %5798 = vperm.xlu1 %5726, %v5797_v40   ;;  %7928 = vst [vmem:[#allocation9_spill] sm:$0xff] %v6367_v36 }
  0x3a   :  { %5803 = vperm.xlu0 %5720, %v5802_v48   ;;  %5808 = vperm.xlu1 %5726, %v5807_v49  }
  0x3e   :  { %5813 = vperm.xlu0 %5720, %v5812_v54   ;;  %5818 = vperm.xlu1 %5726, %v5817_v55  }
  0x42   :  { %5823 = vperm.xlu0 %5720, %v5822_v58   ;;  %5828 = vperm.xlu1 %5726, %v5827_v59  }
  0x46   :  { %5833 = vperm.xlu0 %5720, %v5832_v63   ;;  %5838 = vperm.xlu1 %5726, %v5837_v0  }
  0x96   :  { %v5729_v29 = vpop.permute.xlu1 %5728 }
  0x97   :  { %v5723_v3 = vpop.permute.xlu0 %5722  ;;  %v5730_v20 = vunpack.i.l.bf16 %v5729_v29  ;;  %v5731_v5 = vunpack.i.h.bf16 %v5729_v29 }
  0x98   :  { %v5724_v8 = vunpack.i.l.bf16 %v5723_v3  ;;  %v5725_v40 = vunpack.i.h.bf16 %v5723_v3 }
  0x99   :  { %v499_v21 = vmul.f32 %v5730_v20, %v6357_v24  ;;  %v501_v48 = vmul.f32 %v5731_v5, %v6357_v24 }
  0x9a   :  { %v495_v49 = vmul.f32 %v5724_v8, %v6357_v24  ;;  %v509_v58 = vmul.f32 %v5725_v40, %v6357_v24 }
  0x9d   :  { %v5734_v26 = vpop.permute.xlu1 %5733  ;;  %v5739_v11 = vpop.permute.xlu0 %5738 }
  0x9e   :  { %v5736_v19 = vunpack.i.h.bf16 %v5734_v26  ;;  %v5735_v22 = vunpack.i.l.bf16 %v5734_v26  ;;  %v5740_v17 = vunpack.i.l.bf16 %v5739_v11  ;;  %v5741_v6 = vunpack.i.h.bf16 %v5739_v11 }
  0xa0   :  { %v497_v30 = vmul.f32 %v5735_v22, %v6357_v24  ;;  %v597_v14 = vmul.f32 %v5736_v19, %v6352_v10  ;;  %v599_v27 = vmul.f32 %v5740_v17, %v6352_v10  ;;  %v601_v41 = vmul.f32 %v5741_v6, %v6352_v10 }
  0xa1   :  { %v5749_v31 = vpop.permute.xlu0 %5748  ;;  %v5744_v15 = vpop.permute.xlu1 %5743 }
  0xa2   :  { %v5750_v33 = vunpack.i.l.bf16 %v5749_v31  ;;  %v613_v25 = vadd.f32 %v597_v14, %v497_v30  ;;  %v615_v42 = vadd.f32 %v599_v27, %v499_v21  ;;  %v5751_v44 = vunpack.i.h.bf16 %v5749_v31 }
  0xa3   :  { %v5746_v45 = vunpack.i.h.bf16 %v5744_v15  ;;  %v5745_v46 = vunpack.i.l.bf16 %v5744_v15  ;;  %v6381_v59 = vadd.f32 %v601_v41, %v501_v48 }
  0xa4   :  { %v713_v32 = vmul.f32 %v5750_v33, %v6361_v23  ;;  %v496_v61 = vmul.f32 %v5751_v44, %v6357_v24 }
  0xa5   :  { %v5759_v34 = vpop.permute.xlu0 %5758  ;;  %v5754_v35 = vpop.permute.xlu1 %5753  ;;  %v711_v62 = vmul.f32 %v5745_v46, %v6361_v23  ;;  %v6386_v63 = vmul.f32 %v5746_v45, %v6361_v23 }
  0xa6   :  { %v5761_v38 = vunpack.i.h.bf16 %v5759_v34  ;;  %v5756_v39 = vunpack.i.h.bf16 %v5754_v35  ;;  %v729_v43 = vadd.f32 %v713_v32, %v613_v25  ;;  %v5760_v52 = vunpack.i.l.bf16 %v5759_v34 }
  0xa7   :  { %v5755_v55 = vunpack.i.l.bf16 %v5754_v35 }
  0xa8   :  { %v715_v47 = vmul.f32 %v5761_v38, %v6361_v23  ;;  %v745_v50 = vadd.f32 %v729_v43, %v6372_v37  ;;  %v596_v56 = vmul.f32 %v5756_v39, %v6352_v10  ;;  %v6395_v12 = vmul.f32 %v5760_v52, %v6352_v10 }
  0xa9   :  { %v5769_v53 = vpop.permute.xlu0 %5768  ;;  %v6392_v11 = vpop.permute.xlu1 %5763  ;;  %v6398_v18 = vmul.f32 %v5755_v55, %v6357_v24 }
  0xaa   :  { %v731_v54 = vadd.f32 %v715_v47, %v615_v42  ;;  %v5771_v28 = vunpack.i.h.bf16 %v5769_v53  ;;  %v761_v60 = vmax.f32 %v745_v50, 0.0  ;;  %v5770_v51 = vunpack.i.l.bf16 %v5769_v53 }
  0xab   :  { %v6400_v19 = vadd.f32 %v596_v56, %v496_v61  ;;  %v5766_v4 = vunpack.i.h.bf16 %v6392_v11 }
  0xac   :  { %v747_v0 = vadd.f32 %v731_v54, %v6372_v37  ;;  %v825_v29 = vcombine.high %v761_v60, %v761_v60  ;;  %v832_v3 = vrot.slane %v761_v60, %v6367_v36  ;;  %v595_v9 = vmul.f32 %v5770_v51, %v6352_v10 }
  0xad   :  { %v609_v26 = vmul.f32 %v5771_v28, %v6352_v10 }
  0xae   :  { %v763_v13 = vmax.f32 %v747_v0, 0.0  ;;  %v839_v22 = vrot.slane %v825_v29, %v6367_v36  ;;  %v840_v17 = vcombine.high %v832_v3, %v832_v3  ;;  %v1184_v20 = vsel %vm1127_vm6, %v832_v3, -inf }
  0xaf   :  { %v611_v30 = vadd.f32 %v595_v9, %v495_v49  ;;  %v1185_v14 = vrot.slane %v1184_v20, 4  ;;  %v625_v5 = vadd.f32 %v609_v26, %v509_v58 }
  0xb0   :  { %v859_v31 = vcombine.high %v763_v13, %v763_v13  ;;  %v866_v15 = vrot.slane %v763_v13, %v6367_v36  ;;  %v841_v6 = vcombine.high %v839_v22, %v839_v22  ;;  %v1191_v27 = vsel %vm1127_vm6, %v840_v17, -inf }
  0xb1   :  { %v1198_v33 = vsel %vm1127_vm6, %v839_v22, -inf  ;;  %v1186_v21 = vmax.f32 %v1184_v20, %v1185_v14  ;;  %v1192_v8 = vrot.slane %v1191_v27, 4  ;;  %v727_v39 = vadd.f32 %v711_v62, %v611_v30 }
  0xb2   :  { %v1199_v25 = vrot.slane %v1198_v33, 4  ;;  %v873_v32 = vrot.slane %v859_v31, %v6367_v36  ;;  %v1205_v34 = vsel %vm1127_vm6, %v841_v6, -inf  ;;  %v874_v35 = vcombine.high %v866_v15, %v866_v15 }
  0xb3   :  { %v1240_v38 = vsel %vm1127_vm6, %v866_v15, -inf  ;;  %v1187_v40 = vrot.slane %v1186_v21, 2  ;;  %v1193_v41 = vmax.f32 %v1191_v27, %v1192_v8  ;;  %v1206_v43 = vrot.slane %v1205_v34, 4 }
  0xb4   :  { %v1200_v42 = vmax.f32 %v1198_v33, %v1199_v25  ;;  %v875_v44 = vcombine.high %v873_v32, %v873_v32  ;;  %v1241_v45 = vrot.slane %v1240_v38, 4  ;;  %v1247_v46 = vsel %vm1127_vm6, %v874_v35, -inf }
  0xb5   :  { %v1254_v47 = vsel %vm1127_vm6, %v873_v32, -inf  ;;  %v1188_v48 = vmax.f32 %v1186_v21, %v1187_v40  ;;  %v1194_v49 = vrot.slane %v1193_v41, 2  ;;  %v1207_v52 = vmax.f32 %v1205_v34, %v1206_v43  ;;  %v6429_v40 = vpop.permute.xlu0 %5773 }
  0xb6   :  { %v1201_v50 = vrot.slane %v1200_v42, 2  ;;  %v1242_v53 = vmax.f32 %v1240_v38, %v1241_v45  ;;  %v1248_v54 = vrot.slane %v1247_v46, 4  ;;  %v1255_v55 = vrot.slane %v1254_v47, 4 }
  0xb7   :  { %v1261_v56 = vsel %vm1127_vm6, %v875_v44, -inf  ;;  %v1189_v28 = vrot.slane %v1188_v48, 1  ;;  %v1195_v58 = vmax.f32 %v1193_v41, %v1194_v49  ;;  %v1208_v51 = vrot.slane %v1207_v52, 2 }
  0xb8   :  { %v1202_v60 = vmax.f32 %v1200_v42, %v1201_v50  ;;  %v1243_v61 = vrot.slane %v1242_v53, 2  ;;  %v1249_v62 = vmax.f32 %v1247_v46, %v1248_v54  ;;  %v1256_v0 = vmax.f32 %v1254_v47, %v1255_v55 }
  0xb9   :  { %v1262_v29 = vrot.slane %v1261_v56, 4  ;;  %v6414_v3 = vmax.f32 %v1188_v48, %v1189_v28  ;;  %v1196_v9 = vrot.slane %v1195_v58, 1  ;;  %v1209_v13 = vmax.f32 %v1207_v52, %v1208_v51 }
  0xba   :  { %v1203_v26 = vrot.slane %v1202_v60, 1  ;;  %v1244_v22 = vmax.f32 %v1242_v53, %v1243_v61  ;;  %v1250_v17 = vrot.slane %v1249_v62, 2  ;;  %v1257_v20 = vrot.slane %v1256_v0, 2 }
  0xbb   :  { %v1263_v30 = vmax.f32 %v1261_v56, %v1262_v29  ;;  %v6416_v14 = vmax.f32 %v1195_v58, %v1196_v9  ;;  %v741_v31 = vadd.f32 %v6386_v63, %v625_v5  ;;  %v743_v15 = vadd.f32 %v727_v39, %v6372_v37 }
  0xbc   :  { %v5765_v6 = vunpack.i.l.bf16 %v6392_v11  ;;  %v1245_v27 = vrot.slane %v1244_v22, 1  ;;  %v1251_v33 = vmax.f32 %v1249_v62, %v1250_v17  ;;  %v1258_v21 = vmax.f32 %v1256_v0, %v1257_v20 }
  0xbd   :  { %v1264_v8 = vrot.slane %v1263_v30, 2  ;;  %v6421_v25 = vmax.f32 %v1202_v60, %v1203_v26  ;;  %v1210_v32 = vrot.slane %v1209_v13, 1  ;;  %v1709_v34 = vpack.c.bf16 %v6414_v3, %v6414_v3 }
  0xbe   :  { %v6427_v35 = vadd.f32 %v6395_v12, %v6398_v18  ;;  %v1246_v63 = vmax.f32 %v1244_v22, %v1245_v27  ;;  %v1252_v5 = vrot.slane %v1251_v33, 1  ;;  %v1259_v38 = vrot.slane %v1258_v21, 1 }
  0xbf   :  { %7929 = vst [vmem:[#allocation10_spill] sm:$0xff] %v6421_v25  ;;  %v1265_v39 = vmax.f32 %v1263_v30, %v1264_v8  ;;  %v1710_v41 = vpack.c.bf16 %v6416_v14, %v6416_v14  ;;  %v757_v42 = vadd.f32 %v741_v31, %v6372_v37  ;;  %v759_v43 = vmax.f32 %v743_v15, 0.0 }
  0xc0   :  { %v6437_v44 = vmul.f32 %v5766_v4, %v6357_v24  ;;  %v1253_v45 = vmax.f32 %v1251_v33, %v1252_v5  ;;  %v6439_v12 = vmax.f32 %v1258_v21, %v1259_v38  ;;  %v717_v46 = vmul.f32 %v5765_v6, %v6361_v23 }
  0xc1   :  { %v1266_v18 = vrot.slane %v1265_v39, 1  ;;  %v773_v47 = vmax.f32 %v757_v42, 0.0  ;;  %v791_v48 = vcombine.high %v759_v43, %v759_v43  ;;  %v798_v49 = vrot.slane %v759_v43, %v6367_v36 }
  0xc2   :  { %v5776_v50 = vunpack.i.h.bf16 %v6429_v40  ;;  %v6444_v52 = vmax.f32 %v1209_v13, %v1210_v32  ;;  %v1711_v53 = vpack.c.bf16 %v6421_v25, %v6421_v25  ;;  %v6448_v11 = vunpack.c.l.b16 %v1709_v34 }
  0xc3   :  { %v1717_v4 = vpack.c.bf16 %v1246_v63, %v1246_v63  ;;  %v6450_v54 = vunpack.c.l.b16 %v1710_v41  ;;  %v6452_v55 = vmax.f32 %v1265_v39, %v1266_v18  ;;  %v805_v56 = vrot.slane %v791_v48, %v6367_v36 }
  0xc4   :  { %7930 = vst [vmem:[#allocation11_spill] sm:$0xff] %v6444_v52  ;;  %7931 = vst [vmem:[#allocation12_spill] sm:$0xff] %v6448_v11  ;;  %v806_v28 = vcombine.high %v798_v49, %v798_v49  ;;  %v1718_v58 = vpack.c.bf16 %v1253_v45, %v1253_v45  ;;  %v1719_v60 = vpack.c.bf16 %v6439_v12, %v6439_v12  ;;  %v1128_v29 = vsel %vm1127_vm6, %v798_v49, -inf }
  0xc5   :  { %7932 = vst [vmem:[#allocation13_spill] sm:$0xff] %v6450_v54  ;;  %7933 = vst [vmem:[#allocation14_spill] sm:$0xff] %v6452_v55  ;;  %v1029_v51 = vcombine.high %v773_v47, %v773_v47  ;;  %v6458_v61 = vadd.f32 %v717_v46, %v6381_v59  ;;  %v807_v62 = vcombine.high %v805_v56, %v805_v56  ;;  %v2158_v13 = vunpack.c.l.b16 %v1717_v4 }
  0xc6   :  { %v1036_v0 = vrot.slane %v773_v47, %v6367_v36  ;;  %v1135_v9 = vsel %vm1127_vm6, %v806_v28, -inf  ;;  %v6464_v26 = vsel %vm1829_vm7, %v1253_v45, %v1246_v63  ;;  %v1129_v17 = vrot.slane %v1128_v29, 4 }
  0xc7   :  { %v1043_v22 = vrot.slane %v1029_v51, %v6367_v36  ;;  %v1720_v20 = vpack.c.bf16 %v6452_v55, %v6452_v55  ;;  %v1136_v59 = vrot.slane %v1135_v9, 4  ;;  %v1142_v31 = vsel %vm1127_vm6, %v805_v56, -inf }
  0xc8   :  { %v1044_v30 = vcombine.high %v1036_v0, %v1036_v0  ;;  %v1130_v6 = vmax.f32 %v1128_v29, %v1129_v17  ;;  %v1143_v27 = vrot.slane %v1142_v31, 4  ;;  %v1149_v33 = vsel %vm1127_vm6, %v807_v62, -inf }
  0xc9   :  { %v1045_v15 = vcombine.high %v1043_v22, %v1043_v22  ;;  %v1137_v21 = vmax.f32 %v1135_v9, %v1136_v59  ;;  %v1150_v8 = vrot.slane %v1149_v33, 4  ;;  %v1520_v32 = vsel %vm1127_vm6, %v1036_v0, -inf  ;;  %v5842_v9 = vld [vmem:[#allocation2] ss:$8 sps:$4 sm:$0xff]  }
  0xca   :  { %v1527_v34 = vsel %vm1127_vm6, %v1044_v30, -inf  ;;  %v1131_v63 = vrot.slane %v1130_v6, 2  ;;  %v1144_v5 = vmax.f32 %v1142_v31, %v1143_v27  ;;  %v1521_v38 = vrot.slane %v1520_v32, 4  ;;  %5588 = vmatprep.subr.bf16.mxu0 %v5842_v9 }
  0xcb   :  { %v1528_v39 = vrot.slane %v1527_v34, 4  ;;  %v1138_v41 = vrot.slane %v1137_v21, 2  ;;  %v1151_v42 = vmax.f32 %v1149_v33, %v1150_v8  ;;  %v1534_v43 = vsel %vm1127_vm6, %v1043_v22, -inf  ;;  %5589 = vmatpush3.bf16.msra.mxu0 %v5842_v9 }
  0xcc   :  { %v1541_v45 = vsel %vm1127_vm6, %v1045_v15, -inf  ;;  %v1132_v18 = vmax.f32 %v1130_v6, %v1131_v63  ;;  %v1145_v46 = vrot.slane %v1144_v5, 2  ;;  %v1522_v47 = vmax.f32 %v1520_v32, %v1521_v38  ;;  %v5843_v38 = vld [vmem:[#allocation2 + $0x10] ss:$8 sps:$4 sm:$0xff]  }
  0xcd   :  { %v1529_v48 = vmax.f32 %v1527_v34, %v1528_v39  ;;  %v2159_v49 = vunpack.c.l.b16 %v1718_v58  ;;  %v1139_v4 = vmax.f32 %v1137_v21, %v1138_v41  ;;  %v1535_v56 = vrot.slane %v1534_v43, 4  ;;  %5590 = vmatprep.subr.bf16.mxu0 %v5843_v38 }
  0xce   :  { %v1542_v28 = vrot.slane %v1541_v45, 4  ;;  %v1133_v51 = vrot.slane %v1132_v18, 1  ;;  %v1146_v62 = vmax.f32 %v1144_v5, %v1145_v46  ;;  %v1523_v0 = vrot.slane %v1522_v47, 2 }
  0xcf   :  { %v1530_v29 = vrot.slane %v1529_v48, 2  ;;  %v1140_v17 = vrot.slane %v1139_v4, 1  ;;  %v1152_v30 = vrot.slane %v1151_v42, 2  ;;  %v1536_v59 = vmax.f32 %v1534_v43, %v1535_v56  ;;  %5591 = vmatpush3.bf16.msra.mxu0 %v5843_v38 }
  0xd0   :  { %v1543_v22 = vmax.f32 %v1541_v45, %v1542_v28  ;;  %v6475_v31 = vmax.f32 %v1132_v18, %v1133_v51  ;;  %v1147_v15 = vrot.slane %v1146_v62, 1  ;;  %v1524_v6 = vmax.f32 %v1522_v47, %v1523_v0  ;;  %v6518_v28 = vpop.permute.xlu1 %5778 }
  0xd1   :  { %v1531_v27 = vmax.f32 %v1529_v48, %v1530_v29  ;;  %v2160_v33 = vunpack.c.l.b16 %v1719_v60  ;;  %v6477_v58 = vmax.f32 %v1139_v4, %v1140_v17  ;;  %v1537_v21 = vrot.slane %v1536_v59, 2 }
  0xd2   :  { %v1544_v8 = vrot.slane %v1543_v22, 2  ;;  %v2220_v32 = vsel %vm1829_vm7, %v2159_v49, %v2158_v13  ;;  %v6480_v34 = vmax.f32 %v1146_v62, %v1147_v15  ;;  %v1525_v63 = vrot.slane %v1524_v6, 1 }
  0xd3   :  { %v1532_v5 = vrot.slane %v1531_v27, 1  ;;  %v6482_v39 = vmax.f32 %v1151_v42, %v1152_v30  ;;  %v1538_v41 = vmax.f32 %v1536_v59, %v1537_v21  ;;  %v1701_v43 = vpack.c.bf16 %v6475_v31, %v6475_v31  ;;  %v5784_v21 = vpop.permute.xlu0 %5783 }
  0xd4   :  { %v749_v60 = vadd.f32 %v6458_v61, %v6372_v37  ;;  %v6488_v45 = vmax.f32 %v1524_v6, %v1525_v63  ;;  %v6492_v46 = vmax.f32 %v1543_v22, %v1544_v8  ;;  %v1702_v13 = vpack.c.bf16 %v6477_v58, %v6477_v58 }
  0xd5   :  { %v6490_v18 = vmax.f32 %v1531_v27, %v1532_v5  ;;  %v6499_v42 = vunpack.c.l.b16 %v1711_v53  ;;  %v6504_v47 = vsel %vm1831_vm8, %v6439_v12, %v6464_v26  ;;  %v1539_v61 = vrot.slane %v1538_v41, 1 }
  0xd6   :  { %7934 = vst [vmem:[#allocation15_spill] sm:$0xff] %v6488_v45  ;;  %7937 = vst [vmem:[#allocation18_spill] sm:$0xff] %v6504_v47  ;;  %v765_v48 = vmax.f32 %v749_v60, 0.0  ;;  %v6509_v49 = vunpack.c.l.b16 %v1720_v20  ;;  %v6512_v4 = vsel %vm1831_vm8, %v2160_v33, %v2220_v32  ;;  %v1703_v53 = vpack.c.bf16 %v6480_v34, %v6480_v34 }
  0xd7   :  { %7935 = vst [vmem:[#allocation16_spill] sm:$0xff] %v6490_v18  ;;  %7936 = vst [vmem:[#allocation17_spill] sm:$0xff] %v6499_v42  ;;  %v1757_v56 = vpack.c.bf16 %v6488_v45, %v6488_v45  ;;  %v5775_v62 = vunpack.i.l.bf16 %v6429_v40  ;;  %v1758_v0 = vpack.c.bf16 %v6490_v18, %v6490_v18  ;;  %v6526_v29 = vunpack.c.l.b16 %v1701_v43 }
  0xd8   :  { %v893_v26 = vcombine.high %v765_v48, %v765_v48  ;;  %v900_v51 = vrot.slane %v765_v48, %v6367_v36  ;;  %v6528_v9 = vunpack.c.l.b16 %v1702_v13  ;;  %v6530_v17 = vmax.f32 %v1538_v41, %v1539_v61  ;;  %v5789_v13 = vpop.permute.xlu1 %5788 }
  0xd9   :  { %7938 = vst [vmem:[#allocation19_spill] sm:$0xff] %v6526_v29  ;;  %v6534_v15 = vunpack.c.l.b16 %v1703_v53  ;;  %v6536_v6 = vunpack.c.l.b16 %v1757_v56  ;;  %v6541_v33 = vmul.f32 %v5776_v50, %v6357_v24  ;;  %v598_v5 = vmul.f32 %v5775_v62, %v6352_v10 }
  0xda   :  { %7939 = vst [vmem:[#allocation20_spill] sm:$0xff] %v6528_v9  ;;  %7940 = vst [vmem:[#allocation21_spill] sm:$0xff] %v6530_v17  ;;  %v907_v30 = vrot.slane %v893_v26, %v6367_v36  ;;  %v908_v59 = vcombine.high %v900_v51, %v900_v51  ;;  %v1296_v22 = vsel %vm1127_vm6, %v900_v51, -inf  ;;  %v6546_v38 = vunpack.c.l.b16 %v1758_v0 }
  0xdb   :  { %7941 = vst [vmem:[#allocation22_spill] sm:$0xff] %v6534_v15  ;;  %7942 = vst [vmem:[#allocation23_spill] sm:$0xff] %v6536_v6  ;;  %v1297_v27 = vrot.slane %v1296_v22, 4  ;;  %v1759_v61 = vpack.c.bf16 %v6530_v17, %v6530_v17  ;;  %v5781_v50 = vunpack.i.h.bf16 %v6518_v28  ;;  %v5786_v48 = vunpack.i.h.bf16 %v5784_v21 }
  0xdc   :  { %v909_v8 = vcombine.high %v907_v30, %v907_v30  ;;  %v1303_v32 = vsel %vm1127_vm6, %v908_v59, -inf  ;;  %v1310_v63 = vsel %vm1127_vm6, %v907_v30, -inf  ;;  %7943 = vst [vmem:[#allocation24_spill] sm:$0xff] %v6546_v38  ;;  %v614_v62 = vadd.f32 %v598_v5, %v6437_v44 }
  0xdd   :  { %v1298_v41 = vmax.f32 %v1296_v22, %v1297_v27  ;;  %v1304_v43 = vrot.slane %v1303_v32, 4  ;;  %v1311_v60 = vrot.slane %v1310_v63, 4  ;;  %v712_v0 = vmul.f32 %v5786_v48, %v6361_v23 }
  0xde   :  { %v1317_v40 = vsel %vm1127_vm6, %v909_v8, -inf  ;;  %v5791_v30 = vunpack.i.h.bf16 %v5789_v13  ;;  %v5790_v59 = vunpack.i.l.bf16 %v5789_v13  ;;  %v5785_v1 = vunpack.i.l.bf16 %v5784_v21 }
  0xdf   :  { %v1299_v53 = vrot.slane %v1298_v41, 2  ;;  %v1305_v56 = vmax.f32 %v1303_v32, %v1304_v43  ;;  %v1312_v26 = vmax.f32 %v1310_v63, %v1311_v60  ;;  %v1318_v51 = vrot.slane %v1317_v40, 4 }
  0xe0   :  { %v728_v8 = vadd.f32 %v712_v0, %v6400_v19  ;;  %v714_v20 = vmul.f32 %v5791_v30, %v6361_v23  ;;  %v726_v12 = vmul.f32 %v5790_v59, %v6361_v23  ;;  %v5780_v44 = vunpack.i.l.bf16 %v6518_v28 }
  0xe1   :  { %v1300_v22 = vmax.f32 %v1298_v41, %v1299_v53  ;;  %v1306_v27 = vrot.slane %v1305_v56, 2  ;;  %v1313_v7 = vrot.slane %v1312_v26, 2  ;;  %v1319_v57 = vmax.f32 %v1317_v40, %v1318_v51 }
  0xe2   :  { %v744_v5 = vadd.f32 %v728_v8, %v6372_v37  ;;  %v730_v13 = vadd.f32 %v714_v20, %v614_v62  ;;  %v742_v41 = vadd.f32 %v726_v12, %v6427_v35  ;;  %v6560_v19 = vunpack.c.l.b16 %v1759_v61 }
  0xe3   :  { %v1301_v32 = vrot.slane %v1300_v22, 1  ;;  %v1307_v63 = vmax.f32 %v1305_v56, %v1306_v27  ;;  %v1314_v43 = vmax.f32 %v1312_v26, %v1313_v7  ;;  %v1320_v60 = vrot.slane %v1319_v57, 2 }
  0xe4   :  { %7944 = vst [vmem:[#allocation25_spill] sm:$0xff] %v6560_v19  ;;  %v600_v51 = vmul.f32 %v5781_v50, %v6352_v10  ;;  %v760_v0 = vmax.f32 %v744_v5, 0.0  ;;  %v746_v56 = vadd.f32 %v730_v13, %v6372_v37  ;;  %v602_v28 = vmul.f32 %v5785_v1, %v6352_v10 }
  0xe5   :  { %v1302_v48 = vmax.f32 %v1300_v22, %v1301_v32  ;;  %v1308_v40 = vrot.slane %v1307_v63, 1  ;;  %v1315_v21 = vrot.slane %v1314_v43, 1  ;;  %v1321_v53 = vmax.f32 %v1319_v57, %v1320_v60  ;;  %v6570_v22 = vpop.permute.xlu0 %5793 }
  0xe6   :  { %v502_v20 = vmul.f32 %v5780_v44, %v6357_v24  ;;  %v808_v62 = vcombine.high %v760_v0, %v760_v0  ;;  %v815_v35 = vrot.slane %v760_v0, %v6367_v36  ;;  %v758_v12 = vadd.f32 %v742_v41, %v6372_v37 }
  0xe7   :  { %v1309_v7 = vmax.f32 %v1307_v63, %v1308_v40  ;;  %v1316_v26 = vmax.f32 %v1314_v43, %v1315_v21  ;;  %v1322_v30 = vrot.slane %v1321_v53, 1  ;;  %v1725_v61 = vpack.c.bf16 %v1302_v48, %v1302_v48 }
  0xe8   :  { %v762_v50 = vmax.f32 %v746_v56, 0.0  ;;  %v822_v32 = vrot.slane %v808_v62, %v6367_v36  ;;  %v823_v1 = vcombine.high %v815_v35, %v815_v35  ;;  %v6575_v43 = vadd.f32 %v600_v51, %v6541_v33 }
  0xe9   :  { %v6568_v57 = vmax.f32 %v1321_v53, %v1322_v30  ;;  %v1726_v59 = vpack.c.bf16 %v1309_v7, %v1309_v7  ;;  %v1727_v27 = vpack.c.bf16 %v1316_v26, %v1316_v26  ;;  %v1857_v8 = vsel %vm1829_vm7, %v1309_v7, %v1302_v48 }
  0xea   :  { %v6577_v60 = vadd.f32 %v602_v28, %v502_v20  ;;  %v1156_v44 = vsel %vm1127_vm6, %v815_v35, -inf  ;;  %v1163_v13 = vsel %vm1127_vm6, %v823_v1, -inf  ;;  %v774_v41 = vmax.f32 %v758_v12, 0.0 }
  0xeb   :  { %7945 = vst [vmem:[#allocation26_spill] sm:$0xff] %v6568_v57  ;;  %v2167_v63 = vunpack.c.l.b16 %v1726_v59  ;;  %v1157_v5 = vrot.slane %v1156_v44, 4  ;;  %v1728_v48 = vpack.c.bf16 %v6568_v57, %v6568_v57  ;;  %v6585_v21 = vsel %vm1831_vm8, %v1316_v26, %v1857_v8 }
  0xec   :  { %7946 = vst [vmem:[#allocation27_spill] sm:$0xff] %v6585_v21  ;;  %v2166_v53 = vunpack.c.l.b16 %v1725_v61  ;;  %v2168_v51 = vunpack.c.l.b16 %v1727_v27  ;;  %v1170_v56 = vsel %vm1127_vm6, %v822_v32, -inf  ;;  %v842_v7 = vcombine.high %v762_v50, %v762_v50 }
  0xed   :  { %v1158_v0 = vmax.f32 %v1156_v44, %v1157_v5  ;;  %v824_v28 = vcombine.high %v822_v32, %v822_v32  ;;  %v1164_v20 = vrot.slane %v1163_v13, 4  ;;  %v849_v62 = vrot.slane %v762_v50, %v6367_v36 }
  0xee   :  { %v2227_v30 = vsel %vm1829_vm7, %v2167_v63, %v2166_v53  ;;  %v856_v12 = vrot.slane %v842_v7, %v6367_v36  ;;  %v1046_v59 = vcombine.high %v774_v41, %v774_v41  ;;  %v1053_v26 = vrot.slane %v774_v41, %v6367_v36 }
  0xef   :  { %v1159_v35 = vrot.slane %v1158_v0, 2  ;;  %v6593_v61 = vunpack.c.l.b16 %v1728_v48  ;;  %v1171_v8 = vrot.slane %v1170_v56, 4  ;;  %v857_v27 = vcombine.high %v849_v62, %v849_v62 }
  0xf0   :  { %v1212_v1 = vsel %vm1127_vm6, %v849_v62, -inf  ;;  %v6597_v44 = vsel %vm1831_vm8, %v2168_v51, %v2227_v30  ;;  %v1060_v32 = vrot.slane %v1046_v59, %v6367_v36  ;;  %v1061_v5 = vcombine.high %v1053_v26, %v1053_v26 }
  0xf1   :  { %v1160_v63 = vmax.f32 %v1158_v0, %v1159_v35  ;;  %v6601_v50 = vsel %vm1127_vm6, %v824_v28, -inf  ;;  %v1213_v53 = vrot.slane %v1212_v1, 4  ;;  %v1219_v7 = vsel %vm1127_vm6, %v857_v27, -inf }
  0xf2   :  { %v1226_v41 = vsel %vm1127_vm6, %v856_v12, -inf  ;;  %v1165_v40 = vmax.f32 %v1163_v13, %v1164_v20  ;;  %v858_v33 = vcombine.high %v856_v12, %v856_v12  ;;  %v1220_v16 = vrot.slane %v1219_v7, 4  ;;  %v5844_v13 = vld [vmem:[#allocation2 + $0x20] ss:$8 sps:$4 sm:$0xff]  }
  0xf3   :  { %v1161_v48 = vrot.slane %v1160_v63, 1  ;;  %v1062_v62 = vcombine.high %v1060_v32, %v1060_v32  ;;  %v1214_v19 = vmax.f32 %v1212_v1, %v1213_v53  ;;  %v1548_v51 = vsel %vm1127_vm6, %v1053_v26, -inf  ;;  %5600 = vmatprep.subr.bf16.mxu0 %v5844_v13 }
  0xf4   :  { %v1555_v0 = vsel %vm1127_vm6, %v1061_v5, -inf  ;;  %v6607_v30 = vmax.f32 %v1170_v56, %v1171_v8  ;;  %v1221_v35 = vmax.f32 %v1219_v7, %v1220_v16  ;;  %v1227_v59 = vrot.slane %v1226_v41, 4  ;;  %v5799_v5 = vpop.permute.xlu1 %5798  ;;  %v5804_v56 = vpop.permute.xlu0 %5803 }
  0xf5   :  { %v1215_v38 = vrot.slane %v1214_v19, 2  ;;  %v1549_v27 = vrot.slane %v1548_v51, 4  ;;  %v1556_v6 = vrot.slane %v1555_v0, 4  ;;  %v1562_v42 = vsel %vm1127_vm6, %v1060_v32, -inf }
  0xf6   :  { %v6611_v20 = vmax.f32 %v1160_v63, %v1161_v48  ;;  %v1166_v12 = vrot.slane %v1165_v40, 2  ;;  %v6614_v1 = vsel %vm1127_vm6, %v858_v33, -inf  ;;  %v1563_v26 = vrot.slane %v1562_v42, 4 }
  0xf7   :  { %v1216_v8 = vmax.f32 %v1214_v19, %v1215_v38  ;;  %v1550_v53 = vmax.f32 %v1548_v51, %v1549_v27  ;;  %v1557_v28 = vmax.f32 %v1555_v0, %v1556_v6  ;;  %v1569_v16 = vsel %vm1127_vm6, %v1062_v62, -inf }
  0xf8   :  { %v1222_v32 = vrot.slane %v1221_v35, 2  ;;  %v6618_v15 = vmax.f32 %v1226_v41, %v1227_v59  ;;  %v1564_v63 = vmax.f32 %v1562_v42, %v1563_v26  ;;  %v1570_v11 = vrot.slane %v1569_v16, 4  ;;  %v5809_v26 = vpop.permute.xlu1 %5808 }
  0xf9   :  { %v1217_v48 = vrot.slane %v1216_v8, 1  ;;  %v1551_v54 = vrot.slane %v1550_v53, 2  ;;  %v1558_v33 = vrot.slane %v1557_v28, 2  ;;  %v6620_v9 = vmax.f32 %v1165_v40, %v1166_v12 }
  0xfa   :  { %v5801_v19 = vunpack.i.h.bf16 %v5799_v5  ;;  %v5800_v6 = vunpack.i.l.bf16 %v5799_v5  ;;  %v7947_v0 = vunpack.i.l.bf16 %v6570_v22  ;;  %v7948_v42 = vunpack.i.h.bf16 %v6570_v22  ;;  %v5814_v5 = vpop.permute.xlu0 %5813 }
  0xfb   :  { %v1552_v51 = vmax.f32 %v1550_v53, %v1551_v54  ;;  %v1565_v40 = vrot.slane %v1564_v63, 2  ;;  %v6634_v38 = vmax.f32 %v1216_v8, %v1217_v48  ;;  %v6636_v54 = vmax.f32 %v1221_v35, %v1222_v32 }
  0xfc   :  { %v503_v41 = vmul.f32 %v7947_v0, %v6357_v24  ;;  %v603_v59 = vmul.f32 %v7948_v42, %v6352_v10  ;;  %v716_v13 = vmul.f32 %v5800_v6, %v6361_v23  ;;  %v718_v12 = vmul.f32 %v5801_v19, %v6361_v23 }
  0xfd   :  { %7949 = vst [vmem:[#allocation28_spill] sm:$0xff] %v6634_v38  ;;  %v6638_v53 = vmax.f32 %v1557_v28, %v1558_v33  ;;  %v6640_v0 = vmax.f32 %v1569_v16, %v1570_v11  ;;  %v5806_v62 = vunpack.i.h.bf16 %v5804_v56  ;;  %v5805_v27 = vunpack.i.l.bf16 %v5804_v56  ;;  %v6658_v33 = vpop.permute.xlu1 %5818 }
  0xfe   :  { %v732_v22 = vadd.f32 %v716_v13, %v6575_v43  ;;  %v734_v42 = vadd.f32 %v718_v12, %v6577_v60  ;;  %v1553_v7 = vrot.slane %v1552_v51, 1  ;;  %v619_v6 = vadd.f32 %v603_v59, %v503_v41 }
  0xff   :  { %v5810_v29 = vunpack.i.l.bf16 %v5809_v26  ;;  %v5816_v19 = vunpack.i.h.bf16 %v5814_v5  ;;  %v6644_v57 = vmax.f32 %v1564_v63, %v1565_v40  ;;  %v6651_v11 = vsel %vm1833_vm9, %v6509_v49, %v6512_v4 }
 0x100   :  { %v748_v8 = vadd.f32 %v732_v22, %v6372_v37  ;;  %v750_v35 = vadd.f32 %v734_v42, %v6372_v37  ;;  %v505_v43 = vmul.f32 %v5805_v27, %v6357_v24  ;;  %v605_v60 = vmul.f32 %v5806_v62, %v6352_v10 }
 0x101   :  { %v5811_v28 = vunpack.i.h.bf16 %v5809_v26  ;;  %v5815_v56 = vunpack.i.l.bf16 %v5814_v5  ;;  %v6660_v41 = vmax.f32 %v1552_v51, %v1553_v7  ;;  %v6663_v49 = vmul.f32 %v5810_v29, %v6357_v24 }
 0x102   :  { %v764_v63 = vmax.f32 %v748_v8, 0.0  ;;  %v766_v48 = vmax.f32 %v750_v35, 0.0  ;;  %v721_v62 = vmul.f32 %v5816_v19, %v6361_v23  ;;  %v621_v12 = vadd.f32 %v605_v60, %v505_v43 }
 0x103   :  { %v719_v4 = vmul.f32 %v5815_v56, %v6361_v23  ;;  %v6670_v26 = vmul.f32 %v5811_v28, %v6352_v10 }
 0x104   :  { %v876_v59 = vcombine.high %v764_v63, %v764_v63  ;;  %v883_v27 = vrot.slane %v764_v63, %v6367_v36  ;;  %v910_v40 = vcombine.high %v766_v48, %v766_v48  ;;  %v917_v13 = vrot.slane %v766_v48, %v6367_v36 }
 0x105   :  { %v735_v35 = vadd.f32 %v719_v4, %v619_v6  ;;  %v737_v56 = vadd.f32 %v721_v62, %v621_v12 }
 0x106   :  { %v890_v29 = vrot.slane %v876_v59, %v6367_v36  ;;  %v891_v5 = vcombine.high %v883_v27, %v883_v27  ;;  %v924_v22 = vrot.slane %v910_v40, %v6367_v36  ;;  %v925_v42 = vcombine.high %v917_v13, %v917_v13 }
 0x107   :  { %v1268_v19 = vsel %vm1127_vm6, %v883_v27, -inf  ;;  %v1324_v8 = vsel %vm1127_vm6, %v917_v13, -inf  ;;  %v753_v18 = vadd.f32 %v737_v56, %v6372_v37 }
 0x108   :  { %v892_v43 = vcombine.high %v890_v29, %v890_v29  ;;  %v926_v60 = vcombine.high %v924_v22, %v924_v22  ;;  %v1269_v28 = vrot.slane %v1268_v19, 4  ;;  %v1275_v63 = vsel %vm1127_vm6, %v891_v5, -inf }
 0x109   :  { %v1276_v48 = vrot.slane %v1275_v63, 4  ;;  %v1282_v32 = vsel %vm1127_vm6, %v890_v29, -inf  ;;  %v1325_v16 = vrot.slane %v1324_v8, 4  ;;  %v1331_v59 = vsel %vm1127_vm6, %v925_v42, -inf }
 0x10a   :  { %v1270_v7 = vmax.f32 %v1268_v19, %v1269_v28  ;;  %v1283_v40 = vrot.slane %v1282_v32, 4  ;;  %v1289_v51 = vsel %vm1127_vm6, %v892_v43, -inf  ;;  %v1332_v27 = vrot.slane %v1331_v59, 4 }
 0x10b   :  { %v1277_v21 = vmax.f32 %v1275_v63, %v1276_v48  ;;  %v1290_v13 = vrot.slane %v1289_v51, 4  ;;  %v1326_v6 = vmax.f32 %v1324_v8, %v1325_v16  ;;  %v1338_v4 = vsel %vm1127_vm6, %v924_v22, -inf }
 0x10c   :  { %v1271_v62 = vrot.slane %v1270_v7, 2  ;;  %v1284_v12 = vmax.f32 %v1282_v32, %v1283_v40  ;;  %v1333_v55 = vmax.f32 %v1331_v59, %v1332_v27  ;;  %v1339_v5 = vrot.slane %v1338_v4, 4 }
 0x10d   :  { %v1278_v47 = vrot.slane %v1277_v21, 2  ;;  %v1327_v38 = vrot.slane %v1326_v6, 2  ;;  %v1345_v29 = vsel %vm1127_vm6, %v926_v60, -inf  ;;  %v751_v42 = vadd.f32 %v735_v35, %v6372_v37 }
 0x10e   :  { %v1272_v19 = vmax.f32 %v1270_v7, %v1271_v62  ;;  %v1285_v28 = vrot.slane %v1284_v12, 2  ;;  %v1334_v52 = vrot.slane %v1333_v55, 2  ;;  %v1340_v43 = vmax.f32 %v1338_v4, %v1339_v5 }
 0x10f   :  { %v1279_v17 = vmax.f32 %v1277_v21, %v1278_v47  ;;  %v1291_v63 = vmax.f32 %v1289_v51, %v1290_v13  ;;  %v1328_v48 = vmax.f32 %v1326_v6, %v1327_v38  ;;  %v1346_v16 = vrot.slane %v1345_v29, 4 }
 0x110   :  { %v1273_v8 = vrot.slane %v1272_v19, 1  ;;  %v1286_v22 = vmax.f32 %v1284_v12, %v1285_v28  ;;  %v1335_v25 = vmax.f32 %v1333_v55, %v1334_v52  ;;  %v1341_v32 = vrot.slane %v1340_v43, 2 }
 0x111   :  { %v1280_v59 = vrot.slane %v1279_v17, 1  ;;  %v1329_v40 = vrot.slane %v1328_v48, 1  ;;  %v1347_v27 = vmax.f32 %v1345_v29, %v1346_v16  ;;  %v1292_v47 = vrot.slane %v1291_v63, 2 }
 0x112   :  { %v6686_v60 = vmax.f32 %v1272_v19, %v1273_v8  ;;  %v1287_v35 = vrot.slane %v1286_v22, 1  ;;  %v1336_v7 = vrot.slane %v1335_v25, 1  ;;  %v1342_v62 = vmax.f32 %v1340_v43, %v1341_v32 }
 0x113   :  { %v6688_v45 = vmax.f32 %v1279_v17, %v1280_v59  ;;  %v6690_v21 = vmax.f32 %v1328_v48, %v1329_v40  ;;  %v767_v38 = vmax.f32 %v751_v42, 0.0  ;;  %v1348_v13 = vrot.slane %v1347_v27, 2 }
 0x114   :  { %7950 = vst [vmem:[#allocation29_spill] sm:$0xff] %v6686_v60  ;;  %v6692_v51 = vmax.f32 %v1286_v22, %v1287_v35  ;;  %v6694_v52 = vmax.f32 %v1335_v25, %v1336_v7  ;;  %v1343_v55 = vrot.slane %v1342_v62, 1  ;;  %v1721_v56 = vpack.c.bf16 %v6686_v60, %v6686_v60 }
 0x115   :  { %7951 = vst [vmem:[#allocation30_spill] sm:$0xff] %v6688_v45  ;;  %7952 = vst [vmem:[#allocation31_spill] sm:$0xff] %v6690_v21  ;;  %v6703_v17 = vsel %vm1833_vm9, %v6593_v61, %v6597_v44  ;;  %v769_v6 = vmax.f32 %v753_v18, 0.0  ;;  %v1722_v4 = vpack.c.bf16 %v6688_v45, %v6688_v45  ;;  %v1729_v25 = vpack.c.bf16 %v6690_v21, %v6690_v21 }
 0x116   :  { %v6711_v12 = vadd.f32 %v6670_v26, %v6663_v49  ;;  %v7953_v5 = vunpack.i.l.bf16 %v6658_v33  ;;  %v6718_v42 = vmax.f32 %v1291_v63, %v1292_v47  ;;  %v927_v61 = vcombine.high %v767_v38, %v767_v38 }
 0x117   :  { %v934_v18 = vrot.slane %v767_v38, %v6367_v36  ;;  %v7955_v44 = vunpack.i.h.bf16 %v6658_v33  ;;  %v6726_v28 = vmax.f32 %v1342_v62, %v1343_v55  ;;  %v6728_v43 = vmax.f32 %v1347_v27, %v1348_v13 }
 0x118   :  { %v6716_v29 = vmul.f32 %v7953_v5, %v6357_v24  ;;  %7954 = vst [vmem:[#allocation32_spill] sm:$0xff] %v6718_v42  ;;  %v6734_v63 = vunpack.c.l.b16 %v1721_v56  ;;  %v941_v48 = vrot.slane %v927_v61, %v6367_v36  ;;  %v961_v8 = vcombine.high %v769_v6, %v769_v6 }
 0x119   :  { %v6724_v19 = vmul.f32 %v7955_v44, %v6352_v10  ;;  %7956 = vst [vmem:[#allocation33_spill] sm:$0xff] %v6728_v43  ;;  %v942_v16 = vcombine.high %v934_v18, %v934_v18  ;;  %v6737_v22 = vunpack.c.l.b16 %v1722_v4  ;;  %v6739_v33 = vunpack.c.l.b16 %v1729_v25 }
 0x11a   :  { %v968_v32 = vrot.slane %v769_v6, %v6367_v36  ;;  %v1352_v59 = vsel %vm1127_vm6, %v934_v18, -inf  ;;  %v943_v40 = vcombine.high %v941_v48, %v941_v48  ;;  %v975_v27 = vrot.slane %v961_v8, %v6367_v36 }
 0x11b   :  { %7957 = vst [vmem:[#allocation34_spill] sm:$0xff] %v6737_v22  ;;  %v1353_v35 = vrot.slane %v1352_v59, 4  ;;  %v1359_v7 = vsel %vm1127_vm6, %v942_v16, -inf  ;;  %v1366_v38 = vsel %vm1127_vm6, %v941_v48, -inf }
 0x11c   :  { %v976_v62 = vcombine.high %v968_v32, %v968_v32  ;;  %v1360_v47 = vrot.slane %v1359_v7, 4  ;;  %v1408_v55 = vsel %vm1127_vm6, %v968_v32, -inf  ;;  %v977_v13 = vcombine.high %v975_v27, %v975_v27 }
 0x11d   :  { %v1354_v56 = vmax.f32 %v1352_v59, %v1353_v35  ;;  %v1367_v4 = vrot.slane %v1366_v38, 4  ;;  %v1373_v25 = vsel %vm1127_vm6, %v943_v40, -inf  ;;  %v1409_v61 = vrot.slane %v1408_v55, 4 }
 0x11e   :  { %v1361_v6 = vmax.f32 %v1359_v7, %v1360_v47  ;;  %v1374_v5 = vrot.slane %v1373_v25, 4  ;;  %v1415_v18 = vsel %vm1127_vm6, %v976_v62, -inf  ;;  %v1422_v16 = vsel %vm1127_vm6, %v975_v27, -inf }
 0x11f   :  { %v1355_v44 = vrot.slane %v1354_v56, 2  ;;  %v1368_v8 = vmax.f32 %v1366_v38, %v1367_v4  ;;  %v1416_v37 = vrot.slane %v1415_v18, 4  ;;  %v1410_v48 = vmax.f32 %v1408_v55, %v1409_v61 }
 0x120   :  { %v1362_v26 = vrot.slane %v1361_v6, 2  ;;  %v1375_v49 = vmax.f32 %v1373_v25, %v1374_v5  ;;  %v1423_v22 = vrot.slane %v1422_v16, 4  ;;  %v1429_v40 = vsel %vm1127_vm6, %v977_v13, -inf }
 0x121   :  { %v1356_v32 = vmax.f32 %v1354_v56, %v1355_v44  ;;  %v1369_v59 = vrot.slane %v1368_v8, 2  ;;  %v1417_v35 = vmax.f32 %v1415_v18, %v1416_v37  ;;  %v1411_v45 = vrot.slane %v1410_v48, 2  ;;  %v5824_v44 = vpop.permute.xlu0 %5823 }
 0x122   :  { %v1363_v7 = vmax.f32 %v1361_v6, %v1362_v26  ;;  %v1376_v47 = vrot.slane %v1375_v49, 2  ;;  %v1424_v21 = vmax.f32 %v1422_v16, %v1423_v22  ;;  %v1430_v4 = vrot.slane %v1429_v40, 4 }
 0x123   :  { %v1357_v62 = vrot.slane %v1356_v32, 1  ;;  %v1370_v60 = vmax.f32 %v1368_v8, %v1369_v59  ;;  %v1418_v38 = vrot.slane %v1417_v35, 2  ;;  %v1412_v42 = vmax.f32 %v1410_v48, %v1411_v45 }
 0x124   :  { %v1364_v43 = vrot.slane %v1363_v7, 1  ;;  %v1377_v27 = vmax.f32 %v1375_v49, %v1376_v47  ;;  %v1425_v25 = vrot.slane %v1424_v21, 2  ;;  %v1431_v56 = vmax.f32 %v1429_v40, %v1430_v4 }
 0x125   :  { %v1358_v55 = vmax.f32 %v1356_v32, %v1357_v62  ;;  %v1371_v5 = vrot.slane %v1370_v60, 1  ;;  %v1419_v61 = vmax.f32 %v1417_v35, %v1418_v38  ;;  %v1731_v37 = vpack.c.bf16 %v6726_v28, %v6726_v28  ;;  %v5829_v35 = vpop.permute.xlu1 %5828 }
 0x126   :  { %v1365_v26 = vmax.f32 %v1363_v7, %v1364_v43  ;;  %v1413_v13 = vrot.slane %v1412_v42, 1  ;;  %v1426_v6 = vmax.f32 %v1424_v21, %v1425_v25  ;;  %v1378_v18 = vrot.slane %v1377_v27, 1 }
 0x127   :  { %v1372_v22 = vmax.f32 %v1370_v60, %v1371_v5  ;;  %v1420_v8 = vrot.slane %v1419_v61, 1  ;;  %v1432_v16 = vrot.slane %v1431_v56, 2  ;;  %v7958_v49 = vpack.c.bf16 %v6692_v51, %v6692_v51 }
 0x128   :  { %v1414_v48 = vmax.f32 %v1412_v42, %v1413_v13  ;;  %v1427_v32 = vrot.slane %v1426_v6, 1  ;;  %v1733_v59 = vpack.c.bf16 %v1358_v55, %v1358_v55  ;;  %v7960_v40 = vpack.c.bf16 %v6694_v52, %v6694_v52 }
 0x129   :  { %v6756_v45 = vunpack.c.l.b16 %v7958_v49  ;;  %v1421_v43 = vmax.f32 %v1419_v61, %v1420_v8  ;;  %v1433_v21 = vmax.f32 %v1431_v56, %v1432_v16  ;;  %v1864_v60 = vsel %vm1829_vm7, %v1365_v26, %v1358_v55  ;;  %v5834_v61 = vpop.permute.xlu0 %5833  ;;  %v5839_v16 = vpop.permute.xlu1 %5838 }
 0x12a   :  { %v6761_v47 = vunpack.c.l.b16 %v7960_v40  ;;  %v6764_v7 = vunpack.c.l.b16 %v1731_v37  ;;  %v6769_v62 = vsel %vm1835_vm10, %v6734_v63, %v6651_v11  ;;  %v6774_v42 = vsel %vm1835_vm10, %v6739_v33, %v6703_v17 }
 0x12b   :  { %7959 = vst [vmem:[#allocation35_spill] sm:$0xff] %v6756_v45  ;;  %7963 = vst [vmem:[#allocation38_spill] sm:$0xff] %v6769_v62  ;;  %v1734_v38 = vpack.c.bf16 %v1365_v26, %v1365_v26  ;;  %v6776_v4 = vmax.f32 %v1377_v27, %v1378_v18  ;;  %v1428_v25 = vmax.f32 %v1426_v6, %v1427_v32  ;;  %v1434_v56 = vrot.slane %v1433_v21, 1 }
 0x12c   :  { %7961 = vst [vmem:[#allocation36_spill] sm:$0xff] %v6761_v47  ;;  %7962 = vst [vmem:[#allocation37_spill] sm:$0xff] %v6764_v7  ;;  %v1735_v5 = vpack.c.bf16 %v1372_v22, %v1372_v22  ;;  %v620_v55 = vadd.f32 %v6724_v19, %v6716_v29  ;;  %v1741_v37 = vpack.c.bf16 %v1414_v48, %v1414_v48  ;;  %v6781_v11 = vunpack.c.l.b16 %v1733_v59 }
 0x12d   :  { %7964 = vst [vmem:[#allocation39_spill] sm:$0xff] %v6774_v42  ;;  %7965 = vst [vmem:[#allocation40_spill] sm:$0xff] %v6776_v4  ;;  %v1865_v13 = vsel %vm1831_vm8, %v1372_v22, %v1864_v60  ;;  %v1742_v63 = vpack.c.bf16 %v1421_v43, %v1421_v43  ;;  %v1871_v8 = vsel %vm1829_vm7, %v1421_v43, %v1414_v48  ;;  %v5826_v17 = vunpack.i.h.bf16 %v5824_v44 }
 0x12e   :  { %7966 = vst [vmem:[#allocation41_spill] sm:$0xff] %v6781_v11  ;;  %v5825_v33 = vunpack.i.l.bf16 %v5824_v44  ;;  %v6784_v26 = vunpack.c.l.b16 %v1734_v38  ;;  %v5831_v27 = vunpack.i.h.bf16 %v5829_v35  ;;  %v5830_v6 = vunpack.i.l.bf16 %v5829_v35 }
 0x12f   :  { %v5836_v18 = vunpack.i.h.bf16 %v5834_v61  ;;  %v1743_v49 = vpack.c.bf16 %v1428_v25, %v1428_v25  ;;  %v506_v29 = vmul.f32 %v5826_v17, %v6357_v24  ;;  %v5835_v32 = vunpack.i.l.bf16 %v5834_v61 }
 0x130   :  { %7967 = vst [vmem:[#allocation42_spill] sm:$0xff] %v6784_v26  ;;  %v723_v19 = vmul.f32 %v5825_v33, %v6361_v23  ;;  %v1872_v22 = vsel %vm1831_vm8, %v1428_v25, %v1871_v8  ;;  %v508_v59 = vmul.f32 %v5831_v27, %v6357_v24  ;;  %v606_v48 = vmul.f32 %v5830_v6, %v6352_v10  ;;  %v6803_v24 = vld [vmem:[%s7892_s2 + $0x3] ss:$0 sm:$0xff] }
 0x131   :  { %v720_v44 = vmul.f32 %v5836_v18, %v6361_v23  ;;  %v608_v35 = vmul.f32 %v5835_v32, %v6352_v10  ;;  %v5841_v43 = vunpack.i.h.bf16 %v5839_v16  ;;  %v5840_v60 = vunpack.i.l.bf16 %v5839_v16 }
 0x132   :  { %v739_v40 = vadd.f32 %v723_v19, %v6711_v12  ;;  %v6794_v38 = vmax.f32 %v1433_v21, %v1434_v56  ;;  %v6796_v17 = vunpack.c.l.b16 %v1735_v5  ;;  %v6798_v33 = vunpack.c.l.b16 %v1741_v37 }
 0x133   :  { %v736_v61 = vadd.f32 %v720_v44, %v620_v55  ;;  %v622_v8 = vadd.f32 %v606_v48, %v506_v29  ;;  %v624_v12 = vadd.f32 %v608_v35, %v508_v59  ;;  %v722_v10 = vmul.f32 %v5840_v60, %v6361_v23 }
 0x134   :  { %7968 = vst [vmem:[#allocation43_spill] sm:$0xff] %v6794_v38  ;;  %7969 = vst [vmem:[#allocation44_spill] sm:$0xff] %v6796_v17  ;;  %v755_v25 = vadd.f32 %v6803_v24, %v739_v40  ;;  %v6807_v27 = vunpack.c.l.b16 %v1742_v63  ;;  %v7972_v5 = vrot.slane %v6607_v30, 2  ;;  %v7973_v55 = vrot.slane %v6601_v50, 4 }
 0x135   :  { %7970 = vst [vmem:[#allocation45_spill] sm:$0xff] %v6798_v33  ;;  %v752_v21 = vadd.f32 %v6803_v24, %v736_v61  ;;  %v6820_v6 = vunpack.c.l.b16 %v1743_v49  ;;  %v724_v16 = vmul.f32 %v5841_v43, %v6361_v23  ;;  %v738_v29 = vadd.f32 %v722_v10, %v622_v8 }
 0x136   :  { %7971 = vst [vmem:[#allocation46_spill] sm:$0xff] %v6807_v27  ;;  %v6813_v56 = vmax.f32 %v6607_v30, %v7972_v5  ;;  %v6818_v37 = vmax.f32 %v6601_v50, %v7973_v55  ;;  %v771_v18 = vmax.f32 %v755_v25, 0.0  ;;  %v6825_v19 = vsel %vm1833_vm9, %v6776_v4, %v1865_v13 }
 0x137   :  { %7974 = vst [vmem:[#allocation47_spill] sm:$0xff] %v6820_v6  ;;  %v768_v63 = vmax.f32 %v752_v21, 0.0  ;;  %v6829_v30 = vsel %vm1833_vm9, %v6794_v38, %v1872_v22  ;;  %v6833_v49 = vadd.f32 %v724_v16, %v624_v12  ;;  %v754_v60 = vadd.f32 %v6803_v24, %v738_v29 }
 0x138   :  { %v995_v59 = vcombine.high %v771_v18, %v771_v18  ;;  %v1002_v50 = vrot.slane %v771_v18, %v6367_v36 }
 0x139   :  { %v944_v23 = vcombine.high %v768_v63, %v768_v63  ;;  %v951_v44 = vrot.slane %v768_v63, %v6367_v36 }
 0x13a   :  { %v1009_v35 = vrot.slane %v995_v59, %v6367_v36  ;;  %v1010_v22 = vcombine.high %v1002_v50, %v1002_v50  ;;  %v1464_v43 = vsel %vm1127_vm6, %v1002_v50, -inf }
 0x13b   :  { %v1465_v61 = vrot.slane %v1464_v43, 4  ;;  %v958_v25 = vrot.slane %v944_v23, %v6367_v36  ;;  %v959_v8 = vcombine.high %v951_v44, %v951_v44  ;;  %v1380_v12 = vsel %vm1127_vm6, %v951_v44, -inf }
 0x13c   :  { %v1011_v10 = vcombine.high %v1009_v35, %v1009_v35  ;;  %v1471_v21 = vsel %vm1127_vm6, %v1010_v22, -inf  ;;  %v1478_v5 = vsel %vm1127_vm6, %v1009_v35, -inf  ;;  %v1381_v55 = vrot.slane %v1380_v12, 4 }
 0x13d   :  { %v1466_v18 = vmax.f32 %v1464_v43, %v1465_v61  ;;  %v1472_v16 = vrot.slane %v1471_v21, 4  ;;  %v1479_v63 = vrot.slane %v1478_v5, 4  ;;  %v960_v59 = vcombine.high %v958_v25, %v958_v25 }
 0x13e   :  { %v1485_v50 = vsel %vm1127_vm6, %v1011_v10, -inf  ;;  %v1382_v13 = vmax.f32 %v1380_v12, %v1381_v55  ;;  %v1387_v29 = vsel %vm1127_vm6, %v959_v8, -inf  ;;  %v1394_v23 = vsel %vm1127_vm6, %v958_v25, -inf }
 0x13f   :  { %v1467_v40 = vrot.slane %v1466_v18, 2  ;;  %v1473_v48 = vmax.f32 %v1471_v21, %v1472_v16  ;;  %v1480_v44 = vmax.f32 %v1478_v5, %v1479_v63  ;;  %v1486_v32 = vrot.slane %v1485_v50, 4 }
 0x140   :  { %v1383_v6 = vrot.slane %v1382_v13, 2  ;;  %v1388_v22 = vrot.slane %v1387_v29, 4  ;;  %v1395_v17 = vrot.slane %v1394_v23, 4  ;;  %v1401_v35 = vsel %vm1127_vm6, %v960_v59, -inf }
 0x141   :  { %v1468_v43 = vmax.f32 %v1466_v18, %v1467_v40  ;;  %v1474_v61 = vrot.slane %v1473_v48, 2  ;;  %v1481_v27 = vrot.slane %v1480_v44, 2  ;;  %v1487_v33 = vmax.f32 %v1485_v50, %v1486_v32 }
 0x142   :  { %v1384_v26 = vmax.f32 %v1382_v13, %v1383_v6  ;;  %v1389_v10 = vmax.f32 %v1387_v29, %v1388_v22  ;;  %v1396_v12 = vmax.f32 %v1394_v23, %v1395_v17  ;;  %v1402_v55 = vrot.slane %v1401_v35, 4 }
 0x143   :  { %v1469_v8 = vrot.slane %v1468_v43, 1  ;;  %v1475_v11 = vmax.f32 %v1473_v48, %v1474_v61  ;;  %v1482_v25 = vmax.f32 %v1480_v44, %v1481_v27  ;;  %v1488_v38 = vrot.slane %v1487_v33, 2 }
 0x144   :  { %v1385_v21 = vrot.slane %v1384_v26, 1  ;;  %v1390_v5 = vrot.slane %v1389_v10, 2  ;;  %v1397_v16 = vrot.slane %v1396_v12, 2  ;;  %v1403_v63 = vmax.f32 %v1401_v35, %v1402_v55 }
 0x145   :  { %v1470_v4 = vmax.f32 %v1468_v43, %v1469_v8  ;;  %v1476_v7 = vrot.slane %v1475_v11, 1  ;;  %v1483_v45 = vrot.slane %v1482_v25, 1  ;;  %v1489_v59 = vmax.f32 %v1487_v33, %v1488_v38 }
 0x146   :  { %v6850_v40 = vmax.f32 %v1384_v26, %v1385_v21  ;;  %v1391_v18 = vmax.f32 %v1389_v10, %v1390_v5  ;;  %v1398_v32 = vmax.f32 %v1396_v12, %v1397_v16  ;;  %v1404_v6 = vrot.slane %v1403_v63, 2 }
 0x147   :  { %v1477_v13 = vmax.f32 %v1475_v11, %v1476_v7  ;;  %v6852_v17 = vmax.f32 %v1482_v25, %v1483_v45  ;;  %v1490_v50 = vrot.slane %v1489_v59, 1  ;;  %v7975_v27 = vrot.slane %v6482_v39, 1 }
 0x148   :  { %v1749_v29 = vpack.c.bf16 %v1470_v4, %v1470_v4  ;;  %v756_v23 = vadd.f32 %v6803_v24, %v6833_v49  ;;  %v770_v44 = vmax.f32 %v754_v60, 0.0  ;;  %v7976_v26 = vrot.slane %v6620_v9, 1 }
 0x149   :  { %v6857_v48 = vmax.f32 %v6482_v39, %v7975_v27  ;;  %v1878_v7 = vsel %vm1829_vm7, %v1477_v13, %v1470_v4  ;;  %v1392_v45 = vrot.slane %v1391_v18, 1  ;;  %v1399_v11 = vrot.slane %v1398_v32, 1 }
 0x14a   :  { %v6864_v38 = vmax.f32 %v6620_v9, %v7976_v26  ;;  %v7977_v33 = vrot.slane %v6636_v54, 1  ;;  %v6872_v39 = vmax.f32 %v1403_v63, %v1404_v6  ;;  %v7978_v49 = vrot.slane %v6813_v56, 1 }
 0x14b   :  { %v7979_v9 = vrot.slane %v6818_v37, 2  ;;  %v6886_v35 = vmax.f32 %v1489_v59, %v1490_v50  ;;  %v1750_v43 = vpack.c.bf16 %v1477_v13, %v1477_v13  ;;  %v6892_v61 = vsel %vm1831_vm8, %v6852_v17, %v1878_v7 }
 0x14c   :  { %v6870_v22 = vmax.f32 %v6636_v54, %v7977_v33  ;;  %v6879_v60 = vmax.f32 %v6813_v56, %v7978_v49  ;;  %v6894_v10 = vunpack.c.l.b16 %v1749_v29  ;;  %v772_v12 = vmax.f32 %v756_v23, 0.0 }
 0x14d   :  { %v6884_v4 = vmax.f32 %v6818_v37, %v7979_v9  ;;  %v978_v56 = vcombine.high %v770_v44, %v770_v44  ;;  %v985_v55 = vrot.slane %v770_v44, %v6367_v36  ;;  %v6897_v8 = vmax.f32 %v1391_v18, %v1392_v45 }
 0x14e   :  { %7980 = vst [vmem:[#allocation48_spill] sm:$0xff] %v6894_v10  ;;  %v6899_v37 = vmax.f32 %v1398_v32, %v1399_v11  ;;  %v7983_v25 = vrot.slane %v6618_v15, 2  ;;  %v7984_v5 = vrot.slane %v6614_v1, 4  ;;  %v1012_v6 = vcombine.high %v772_v12, %v772_v12 }
 0x14f   :  { %7981 = vst [vmem:[#allocation49_spill] sm:$0xff] %v6897_v8  ;;  %v992_v63 = vrot.slane %v978_v56, %v6367_v36  ;;  %v993_v59 = vcombine.high %v985_v55, %v985_v55  ;;  %v1019_v13 = vrot.slane %v772_v12, %v6367_v36  ;;  %v6913_v18 = vunpack.c.l.b16 %v1750_v43 }
 0x150   :  { %7982 = vst [vmem:[#allocation50_spill] sm:$0xff] %v6899_v37  ;;  %v6904_v21 = vmax.f32 %v6618_v15, %v7983_v25  ;;  %v6909_v16 = vmax.f32 %v6614_v1, %v7984_v5  ;;  %v1436_v32 = vsel %vm1127_vm6, %v985_v55, -inf  ;;  %v1182_v50 = vrot.slane %v6884_v4, 1 }
 0x151   :  { %7985 = vst [vmem:[#allocation51_spill] sm:$0xff] %v6913_v18  ;;  %v994_v27 = vcombine.high %v992_v63, %v992_v63  ;;  %v1026_v29 = vrot.slane %v1012_v6, %v6367_v36  ;;  %v1027_v23 = vcombine.high %v1019_v13, %v1019_v13  ;;  %v1437_v1 = vrot.slane %v1436_v32, 4 }
 0x152   :  { %v1231_v15 = vrot.slane %v6904_v21, 1  ;;  %v1443_v44 = vsel %vm1127_vm6, %v993_v59, -inf  ;;  %v1450_v26 = vsel %vm1127_vm6, %v992_v63, -inf  ;;  %v1492_v7 = vsel %vm1127_vm6, %v1019_v13, -inf }
 0x153   :  { %v1236_v45 = vrot.slane %v6909_v16, 2  ;;  %v1028_v11 = vcombine.high %v1026_v29, %v1026_v29  ;;  %v1438_v33 = vmax.f32 %v1436_v32, %v1437_v1  ;;  %v1444_v49 = vrot.slane %v1443_v44, 4 }
 0x154   :  { %v1451_v9 = vrot.slane %v1450_v26, 4  ;;  %v1457_v43 = vsel %vm1127_vm6, %v994_v27, -inf  ;;  %v1493_v12 = vrot.slane %v1492_v7, 4  ;;  %v1499_v56 = vsel %vm1127_vm6, %v1027_v23, -inf }
 0x155   :  { %v1506_v55 = vsel %vm1127_vm6, %v1026_v29, -inf  ;;  %v1439_v25 = vrot.slane %v1438_v33, 2  ;;  %v1445_v5 = vmax.f32 %v1443_v44, %v1444_v49  ;;  %v1458_v6 = vrot.slane %v1457_v43, 4 }
 0x156   :  { %v1452_v59 = vmax.f32 %v1450_v26, %v1451_v9  ;;  %v1494_v63 = vmax.f32 %v1492_v7, %v1493_v12  ;;  %v1500_v24 = vrot.slane %v1499_v56, 4  ;;  %v1507_v13 = vrot.slane %v1506_v55, 4 }
 0x157   :  { %v1513_v54 = vsel %vm1127_vm6, %v1028_v11, -inf  ;;  %v1440_v36 = vmax.f32 %v1438_v33, %v1439_v25  ;;  %v1446_v32 = vrot.slane %v1445_v5, 2  ;;  %v1459_v18 = vmax.f32 %v1457_v43, %v1458_v6 }
 0x158   :  { %v1453_v1 = vrot.slane %v1452_v59, 2  ;;  %v1495_v10 = vrot.slane %v1494_v63, 2  ;;  %v1501_v27 = vmax.f32 %v1499_v56, %v1500_v24  ;;  %v1508_v47 = vmax.f32 %v1506_v55, %v1507_v13 }
 0x159   :  { %v1514_v42 = vrot.slane %v1513_v54, 4  ;;  %v1441_v23 = vrot.slane %v1440_v36, 1  ;;  %v1447_v62 = vmax.f32 %v1445_v5, %v1446_v32  ;;  %v1460_v37 = vrot.slane %v1459_v18, 2 }
 0x15a   :  { %v1454_v29 = vmax.f32 %v1452_v59, %v1453_v1  ;;  %v1496_v44 = vmax.f32 %v1494_v63, %v1495_v10  ;;  %v1502_v26 = vrot.slane %v1501_v27, 2  ;;  %v1509_v49 = vrot.slane %v1508_v47, 2 }
 0x15b   :  { %v1515_v7 = vmax.f32 %v1513_v54, %v1514_v42  ;;  %v1442_v9 = vmax.f32 %v1440_v36, %v1441_v23  ;;  %v1448_v12 = vrot.slane %v1447_v62, 1  ;;  %v6927_v11 = vmax.f32 %v1459_v18, %v1460_v37 }
 0x15c   :  { %v1455_v8 = vrot.slane %v1454_v29, 1  ;;  %v1497_v33 = vrot.slane %v1496_v44, 1  ;;  %v1503_v25 = vmax.f32 %v1501_v27, %v1502_v26  ;;  %v1510_v43 = vmax.f32 %v1508_v47, %v1509_v49  ;;  %v7992_v49 = vld [vmem:[#allocation10_spill] sm:$0xff] }
 0x15d   :  { %v1516_v6 = vrot.slane %v1515_v7, 2  ;;  %v7986_v24 = vpack.c.bf16 %v6852_v17, %v6852_v17  ;;  %v1406_v55 = vrot.slane %v6872_v39, 1  ;;  %v6938_v42 = vsel %vm1835_vm10, %v6850_v40, %v6825_v19 }
 0x15e   :  { %v1745_v36 = vpack.c.bf16 %v1442_v9, %v1442_v9  ;;  %v7987_v54 = vpack.c.bf16 %v6850_v40, %v6850_v40  ;;  %v1504_v47 = vrot.slane %v1503_v25, 1  ;;  %v6948_v17 = vsel %vm1833_vm9, %v6886_v35, %v6892_v61 }
 0x15f   :  { %v6932_v56 = vunpack.c.l.b16 %v7986_v24  ;;  %v6951_v37 = vmax.f32 %v6884_v4, %v1182_v50  ;;  %v6953_v18 = vmax.f32 %v1447_v62, %v1448_v12  ;;  %v6955_v5 = vmax.f32 %v1454_v29, %v1455_v8 }
 0x160   :  { %v6943_v10 = vunpack.c.l.b16 %v7987_v54  ;;  %v6958_v19 = vmax.f32 %v6904_v21, %v1231_v15  ;;  %v1237_v40 = vmax.f32 %v6909_v16, %v1236_v45  ;;  %v1462_v59 = vrot.slane %v6927_v11, 1  ;;  %v7995_v54 = vld [vmem:[#allocation28_spill] sm:$0xff] }
 0x161   :  { %v6962_v63 = vmax.f32 %v1496_v44, %v1497_v33  ;;  %v1511_v13 = vrot.slane %v1510_v43, 1  ;;  %v6964_v32 = vmax.f32 %v1515_v7, %v1516_v6  ;;  %v6968_v4 = vsel %vm1835_vm10, %v1442_v9, %v6829_v30  ;;  %v7993_v9 = vld [vmem:[#allocation21_spill] sm:$0xff] }
 0x162   :  { %v6970_v62 = vunpack.c.l.b16 %v1745_v36  ;;  %v7988_v61 = vrot.slane %v6492_v46, 1  ;;  %v1567_v21 = vrot.slane %v6644_v57, 1  ;;  %v6978_v16 = vmax.f32 %v1503_v25, %v1504_v47 }
 0x163   :  { %v1238_v50 = vrot.slane %v1237_v40, 1  ;;  %v1572_v15 = vrot.slane %v6640_v0, 2  ;;  %v1830_v45 = vsel %vm1829_vm7, %v6477_v58, %v6475_v31  ;;  %v7989_v30 = vrot.slane %v6638_v53, 1 }
 0x164   :  { %v6975_v8 = vmax.f32 %v6492_v46, %v7988_v61  ;;  %v1593_v27 = vand.u32 31, %v6096_v2  ;;  %v1832_v46 = vsel %vm1831_vm8, %v6480_v34, %v1830_v45  ;;  %v6993_v23 = vmax.f32 %v6644_v57, %v1567_v21  ;;  %v7991_v34 = vld [vmem:[#allocation16_spill] sm:$0xff] }
 0x165   :  { %v6987_v1 = vmax.f32 %v6638_v53, %v7989_v30  ;;  %v1573_v29 = vmax.f32 %v6640_v0, %v1572_v15  ;;  %v1834_v44 = vsel %vm1833_vm9, %v6857_v48, %v1832_v46  ;;  %v1843_v58 = vsel %vm1829_vm7, %v6416_v14, %v6414_v3  ;;  %v7990_v53 = vld [vmem:[#allocation15_spill] sm:$0xff]  ;;  %v7996_v46 = vld [vmem:[#allocation32_spill] sm:$0xff] }
 0x166   :  { %v1836_v31 = vsel %vm1835_vm10, %v6611_v20, %v1834_v44  ;;  %v1885_v26 = vsel %vm1829_vm7, %v7991_v34, %v7990_v53  ;;  %v1844_v7 = vsel %vm1831_vm8, %v7992_v49, %v1843_v58  ;;  %v7012_v33 = vmax.f32 %v1237_v40, %v1238_v50  ;;  %v7994_v3 = vld [vmem:[#allocation11_spill] sm:$0xff]  ;;  %v7997_v44 = vld [vmem:[#allocation33_spill] sm:$0xff] }
 0x167   :  { %v1574_v57 = vrot.slane %v1573_v29, 1  ;;  %v1838_v0 = vsel %vm1837_vm11, %v6864_v38, %v1836_v31  ;;  %v1886_v12 = vsel %vm1831_vm8, %v7993_v9, %v1885_v26  ;;  %v1845_v14 = vsel %vm1833_vm9, %v7994_v3, %v1844_v7  ;;  %v8003_v7 = vld [vmem:[#allocation26_spill] sm:$0xff] }
 0x168   :  { %v1840_v25 = vsel %vm1839_vm12, %v6879_v60, %v1838_v0  ;;  %v1887_v6 = vsel %vm1833_vm9, %v6975_v8, %v1886_v12  ;;  %v1846_v47 = vsel %vm1835_vm10, %v7995_v54, %v1845_v14  ;;  %v7030_v61 = vmax.f32 %v1510_v43, %v1511_v13  ;;  %v8001_v0 = vld [vmem:[#allocation14_spill] sm:$0xff]  ;;  %v8004_v14 = vld [vmem:[#allocation29_spill] sm:$0xff] }
 0x169   :  { %v7020_v24 = vmax.f32 %v1573_v29, %v1574_v57  ;;  %v7024_v36 = vsel %vm1841_vm13, %v6951_v37, %v1840_v25  ;;  %v1888_v40 = vsel %vm1835_vm10, %v6660_v41, %v1887_v6  ;;  %v1847_v21 = vsel %vm1837_vm11, %v6870_v22, %v1846_v47  ;;  %v8000_v57 = vld [vmem:[#allocation18_spill] sm:$0xff]  ;;  %v8005_v47 = vld [vmem:[#allocation31_spill] sm:$0xff] }
 0x16a   :  { %v1889_v50 = vsel %vm1837_vm11, %v6987_v1, %v1888_v40  ;;  %v1900_v15 = vrot.slane %v7024_v36, 7  ;;  %v1848_v45 = vsel %vm1839_vm12, %v6958_v19, %v1847_v21  ;;  %v1294_v29 = vrot.slane %v7996_v46, 1 }
 0x16b   :  { %v1890_v30 = vsel %vm1839_vm12, %v6993_v23, %v1889_v50  ;;  %v1350_v31 = vrot.slane %v7997_v44, 1  ;;  %v1518_v43 = vrot.slane %v6964_v32, 1  ;;  %vm7044_vm14 = vcmp.ne.s32.totalorder %v1593_v27, 0  ;;  %v8002_v27 = vld [vmem:[#allocation27_spill] sm:$0xff] }
 0x16c   :  { %v7050_v58 = vsel %vm1841_vm13, %v7012_v33, %v1848_v45  ;;  %v7054_v53 = vsel %vm1841_vm13, %v7020_v24, %v1890_v30  ;;  %v1852_v49 = vsel %vm1833_vm9, %v8001_v0, %v8000_v57  ;;  %v1859_v9 = vsel %vm1833_vm9, %v8003_v7, %v8002_v27  ;;  %v8006_v45 = vld [vmem:[#allocation30_spill] sm:$0xff] }
 0x16d   :  { %v1901_v34 = vrot.slane %v7050_v58, 7  ;;  %v1907_v26 = vrot.slane %v7054_v53, 7  ;;  %v1295_v12 = vmax.f32 %v7996_v46, %v1294_v29  ;;  %v1351_v25 = vmax.f32 %v7997_v44, %v1350_v31 }
 0x16e   :  { %v1853_v6 = vsel %vm1835_vm10, %v8004_v14, %v1852_v49  ;;  %v1860_v40 = vsel %vm1835_vm10, %v8005_v47, %v1859_v9  ;;  %v1753_v29 = vpack.c.bf16 %v6962_v63, %v6962_v63  ;;  %v77_v49 = vadd.s32 32, %v6096_v2 }
 0x16f   :  { %v1914_v21 = vsel %vm329_vm0, %v1900_v15, %v1901_v34  ;;  %v1915_v50 = vsel %vm329_vm0, %v1907_v26, %v1900_v15  ;;  %v1854_v30 = vsel %vm1837_vm11, %v8006_v45, %v1853_v6  ;;  %v1861_v46 = vsel %vm1837_vm11, %v6694_v52, %v1860_v40  ;;  %v8007_v6 = vld [vmem:[#allocation49_spill] sm:$0xff] }
 0x170   :  { %v1932_v44 = vsel %vm7044_vm14, %v1915_v50, 0.0  ;;  %v1855_v31 = vsel %vm1839_vm12, %v6692_v51, %v1854_v30  ;;  %v1862_v15 = vsel %vm1839_vm12, %v6726_v28, %v1861_v46  ;;  %v1881_v52 = vsel %vm1835_vm10, %v6962_v63, %v6948_v17  ;;  %v5845_v50 = vld [vmem:[#allocation2 + $0x30] ss:$8 sps:$4 sm:$0xff]  }
 0x171   :  { %v1940_v57 = vpack.c.bf16 %v1914_v21, %v1932_v44  ;;  %v7087_v0 = vsel %vm1841_vm13, %v1295_v12, %v1855_v31  ;;  %v1724_v27 = vpack.c.bf16 %v1295_v12, %v1295_v12  ;;  %v7096_v13 = vsel %vm1841_vm13, %v1351_v25, %v1862_v15  ;;  %v6005_v15 = vld [vmem:[#allocation2 + $0x20] ss:$8 sps:$4 sm:$0xff]  }
 0x172   :  { %v1902_v7 = vrot.slane %v7087_v0, 7  ;;  %v1732_v51 = vpack.c.bf16 %v1351_v25, %v1351_v25  ;;  %v1903_v9 = vrot.slane %v7096_v13, 7  ;;  %v7104_v28 = vmax.f32 %v6872_v39, %v1406_v55  ;;  %v8008_v55 = vld [vmem:[#allocation50_spill] sm:$0xff]  ;;  %v8029_v63 = vld [vmem:[#allocation45_spill] sm:$0xff] }
 0x173   :  { %5592 = vmatprep.mubr.msk.bf16.mxu0 %vm2000_vm15, %v1940_v57  ;;  %v7109_v17 = vmax.f32 %v6927_v11, %v1462_v59  ;;  %v1621_v14 = vand.u32 31, %v77_v49  ;;  %v1868_v25 = vsel %vm1837_vm11, %v8007_v6, %v6938_v42  ;;  %v1875_v47 = vsel %vm1837_vm11, %v6953_v18, %v6968_v4 }
 0x174   :  { %v1913_v12 = vsel %vm329_vm0, %v1901_v34, %v1902_v7  ;;  %v1912_v39 = vsel %vm329_vm0, %v1902_v7, %v1903_v9  ;;  %v1869_v40 = vsel %vm1839_vm12, %v8008_v55, %v1868_v25  ;;  %v1876_v11 = vsel %vm1839_vm12, %v6955_v5, %v1875_v47 }
 0x175   :  { %v7126_v59 = vmax.f32 %v6964_v32, %v1518_v43  ;;  %v1941_v34 = vpack.c.bf16 %v1912_v39, %v1913_v12  ;;  %v2165_v21 = vunpack.c.l.b16 %v1724_v27  ;;  %v7130_v42 = vsel %vm1841_vm13, %v7104_v28, %v1869_v40 }
 0x176   :  { %v7134_v4 = vsel %vm1841_vm13, %v7109_v17, %v1876_v11  ;;  %vm7136_vm2 = vcmp.ne.s32.totalorder %v1621_v14, 0  ;;  %v1904_v30 = vrot.slane %v7130_v42, 7  ;;  %v1882_v43 = vsel %vm1837_vm11, %v6978_v16, %v1881_v52 }
 0x177   :  { %v1905_v32 = vrot.slane %v7134_v4, 7  ;;  %5593 = vmatmul.mubr.msk.bf16.vlgmr.msra.gmra.mrb[0].mxu0 %vm2000_vm15, %v1941_v34  ;;  %v1883_v46 = vsel %vm1839_vm12, %v7030_v61, %v1882_v43  ;;  %v1704_v44 = vpack.c.bf16 %v6857_v48, %v6857_v48  ;;  %v1706_v31 = vpack.c.bf16 %v6864_v38, %v6864_v38 }
 0x178   :  { %v1707_v57 = vpack.c.bf16 %v6879_v60, %v6879_v60  ;;  %5601 = vmatpush3.bf16.msra.mxu0 %v6005_v15  ;;  %v1911_v52 = vsel %vm329_vm0, %v1903_v9, %v1904_v30  ;;  %v7159_v27 = vsel %vm1841_vm13, %v7126_v59, %v1883_v46  ;;  %v1708_v48 = vpack.c.bf16 %v6951_v37, %v6951_v37  ;;  %v7170_v9 = vld [vmem:[#allocation2 + $0x40] ss:$8 sps:$4 sm:$0xff]  }
 0x179   :  { %v1910_v49 = vsel %vm329_vm0, %v1904_v30, %v1905_v32  ;;  %v1936_v38 = vsel %vm7136_vm2, %v1911_v52, 0.0  ;;  %5602 = vmatprep.subr.bf16.mxu0 %v5845_v50  ;;  %v1906_v60 = vrot.slane %v7159_v27, 7  ;;  %v1712_v7 = vpack.c.bf16 %v7994_v3, %v7994_v3  ;;  %v8015_v15 = vld [vmem:[#allocation12_spill] sm:$0xff] }
 0x17a   :  { %v1714_v12 = vpack.c.bf16 %v6870_v22, %v6870_v22  ;;  %v2173_v14 = vunpack.c.l.b16 %v1732_v51  ;;  %v1942_v25 = vpack.c.bf16 %v1910_v49, %v1936_v38  ;;  %v1715_v47 = vpack.c.bf16 %v6958_v19, %v6958_v19  ;;  %v8016_v49 = vld [vmem:[#allocation13_spill] sm:$0xff]  ;;  %v8020_v38 = vld [vmem:[#allocation36_spill] sm:$0xff] }
 0x17b   :  { %v1716_v37 = vpack.c.bf16 %v7012_v33, %v7012_v33  ;;  %v1908_v39 = vsel %vm329_vm0, %v1906_v60, %v1907_v26  ;;  %v1909_v3 = vsel %vm329_vm0, %v1905_v32, %v1906_v60  ;;  %v2145_v40 = vunpack.c.l.b16 %v1704_v44  ;;  %v8013_v32 = vld [vmem:[#allocation19_spill] sm:$0xff]  ;;  %v8014_v44 = vld [vmem:[#allocation20_spill] sm:$0xff]  ;;  %v8021_v60 = vld [vmem:[#allocation22_spill] sm:$0xff] }
 0x17c   :  { %v8011_v22 = vpack.c.bf16 %v6611_v20, %v6611_v20  ;;  %5596 = vmatprep.mubr.msk.bf16.mxu0 %vm2000_vm15, %v1942_v25  ;;  %v1943_v11 = vpack.c.bf16 %v1908_v39, %v1909_v3  ;;  %5603 = vmatpush3.bf16.msra.mxu0 %v5845_v50  ;;  %v2147_v19 = vunpack.c.l.b16 %v1706_v31  ;;  %v2148_v34 = vunpack.c.l.b16 %v1707_v57  ;;  %v8017_v31 = vld [vmem:[#allocation38_spill] sm:$0xff]  ;;  %v8024_v3 = vld [vmem:[#allocation37_spill] sm:$0xff] }
 0x17d   :  { %v2153_v33 = vunpack.c.l.b16 %v1712_v7  ;;  %v2149_v45 = vunpack.c.l.b16 %v1708_v48  ;;  %v8012_v30 = vpack.c.bf16 %v7995_v54, %v7995_v54  ;;  %v2155_v43 = vunpack.c.l.b16 %v1714_v12  ;;  %5612 = vmatprep.subr.bf16.mxu0 %v7170_v9  ;;  %v8018_v57 = vld [vmem:[#allocation34_spill] sm:$0xff]  ;;  %v8019_v48 = vld [vmem:[#allocation39_spill] sm:$0xff]  ;;  %v8022_v12 = vld [vmem:[#allocation17_spill] sm:$0xff] }
 0x17e   :  { %v2146_v51 = vunpack.c.l.b16 %v8011_v22  ;;  %v2156_v46 = vunpack.c.l.b16 %v1715_v47  ;;  %v2206_v20 = vsel %vm1829_vm7, %v8014_v44, %v8013_v32  ;;  %v2213_v50 = vsel %vm1829_vm7, %v8016_v49, %v8015_v15  ;;  %v8023_v47 = vld [vmem:[#allocation35_spill] sm:$0xff] }
 0x17f   :  { %v2154_v26 = vunpack.c.l.b16 %v8012_v30  ;;  %v2224_v52 = vsel %vm1837_vm11, %v8018_v57, %v8017_v31  ;;  %v2231_v54 = vsel %vm1837_vm11, %v8020_v38, %v8019_v48  ;;  %5597 = vmatmul.mubr.msk.bf16.gmra.mrb[4].mxu0 %vm2000_vm15, %v1943_v11  ;;  %v2207_v7 = vsel %vm1831_vm8, %v8021_v60, %v2206_v20 }
 0x180   :  { %v2214_v25 = vsel %vm1831_vm8, %v8022_v12, %v2213_v50  ;;  %v2225_v39 = vsel %vm1839_vm12, %v8023_v47, %v2224_v52  ;;  %v2232_v22 = vsel %vm1839_vm12, %v8024_v3, %v2231_v54  ;;  %v2157_v30 = vunpack.c.l.b16 %v1716_v37  ;;  %v8025_v50 = vld [vmem:[#allocation40_spill] sm:$0xff] }
 0x181   :  { %v2208_v32 = vsel %vm1833_vm9, %v2145_v40, %v2207_v7  ;;  %v2215_v44 = vsel %vm1833_vm9, %v2153_v33, %v2214_v25  ;;  %v2226_v15 = vsel %vm1841_vm13, %v2165_v21, %v2225_v39  ;;  %v2233_v49 = vsel %vm1841_vm13, %v2173_v14, %v2232_v22  ;;  %v8026_v33 = vld [vmem:[#allocation43_spill] sm:$0xff]  ;;  %v8027_v25 = vld [vmem:[#allocation41_spill] sm:$0xff]  ;;  %v8031_v22 = vld [vmem:[#allocation44_spill] sm:$0xff] }
 0x182   :  { %v2209_v11 = vsel %vm1835_vm10, %v2146_v51, %v2208_v32  ;;  %v2216_v20 = vsel %vm1835_vm10, %v2154_v26, %v2215_v44  ;;  %v1736_v31 = vpack.c.bf16 %v8025_v50, %v8025_v50  ;;  %v1738_v37 = vpack.c.bf16 %v8007_v6, %v8007_v6  ;;  %v5847_v7 = vld [vmem:[#allocation2 + $0x50] ss:$8 sps:$4 sm:$0xff]  }
 0x183   :  { %v2210_v57 = vsel %vm1837_vm11, %v2147_v19, %v2209_v11  ;;  %v2217_v52 = vsel %vm1837_vm11, %v2155_v43, %v2216_v20  ;;  %v1739_v40 = vpack.c.bf16 %v8008_v55, %v8008_v55  ;;  %v1740_v14 = vpack.c.bf16 %v7104_v28, %v7104_v28  ;;  %v8032_v32 = vld [vmem:[#allocation47_spill] sm:$0xff] }
 0x184   :  { %v2211_v21 = vsel %vm1839_vm12, %v2148_v34, %v2210_v57  ;;  %v2218_v51 = vsel %vm1839_vm12, %v2156_v46, %v2217_v52  ;;  %v1744_v26 = vpack.c.bf16 %v8026_v33, %v8026_v33  ;;  %v1746_v6 = vpack.c.bf16 %v6953_v18, %v6953_v18 }
 0x185   :  { %v2212_v19 = vsel %vm1841_vm13, %v2149_v45, %v2211_v21  ;;  %v2219_v43 = vsel %vm1841_vm13, %v2157_v30, %v2218_v51  ;;  %v1747_v55 = vpack.c.bf16 %v6955_v5, %v6955_v5  ;;  %v2194_v34 = vunpack.c.l.b16 %v1753_v29  ;;  %v8028_v5 = vld [vmem:[#allocation42_spill] sm:$0xff] }
 0x186   :  { %v2262_v46 = vpack.c.b16 %v2219_v43, %v2212_v19  ;;  %v1748_v28 = vpack.c.bf16 %v7109_v17, %v7109_v17  ;;  %v2177_v48 = vunpack.c.l.b16 %v1736_v31  ;;  %v2263_v38 = vpack.c.b16 %v2233_v49, %v2226_v15  ;;  %v8030_v29 = vld [vmem:[#allocation46_spill] sm:$0xff] }
 0x187   :  { %v2179_v54 = vunpack.c.l.b16 %v1738_v37  ;;  %v2180_v45 = vunpack.c.l.b16 %v1739_v40  ;;  %v2185_v60 = vunpack.c.l.b16 %v1744_v26  ;;  %v2181_v18 = vunpack.c.l.b16 %v1740_v14 }
 0x188   :  { %5604 = vmatprep.mubr.msk.bf16.mxu0 %vm2000_vm15, %v2262_v46  ;;  %v2187_v12 = vunpack.c.l.b16 %v1746_v6  ;;  %v2234_v47 = vsel %vm1829_vm7, %v8028_v5, %v8027_v25  ;;  %v2241_v39 = vsel %vm1829_vm7, %v8030_v29, %v8029_v63  ;;  %v2188_v17 = vunpack.c.l.b16 %v1747_v55  ;;  %v8035_v55 = vld [vmem:[#allocation51_spill] sm:$0xff] }
 0x189   :  { %5605 = vmatmul.mubr.msk.bf16.vlgmr.msra.gmra.mrb[0].mxu0 %vm2000_vm15, %v2263_v38  ;;  %v2189_v3 = vunpack.c.l.b16 %v1748_v28  ;;  %v2235_v30 = vsel %vm1831_vm8, %v8031_v22, %v2234_v47  ;;  %v2242_v44 = vsel %vm1831_vm8, %v8032_v32, %v2241_v39  ;;  %v1752_v20 = vpack.c.bf16 %v6886_v35, %v6886_v35  ;;  %v8036_v46 = vld [vmem:[#allocation23_spill] sm:$0xff]  ;;  %v8037_v28 = vld [vmem:[#allocation24_spill] sm:$0xff] }
 0x18a   :  { %5613 = vmatpush3.bf16.msra.mxu0 %v7170_v9  ;;  %v2236_v15 = vsel %vm1833_vm9, %v2177_v48, %v2235_v30  ;;  %v2243_v11 = vsel %vm1833_vm9, %v2185_v60, %v2242_v44  ;;  %v1754_v49 = vpack.c.bf16 %v6978_v16, %v6978_v16  ;;  %v1755_v9 = vpack.c.bf16 %v7030_v61, %v7030_v61 }
 0x18b   :  { %v2237_v50 = vsel %vm1835_vm10, %v6943_v10, %v2236_v15  ;;  %v2244_v31 = vsel %vm1835_vm10, %v6970_v62, %v2243_v11  ;;  %5614 = vmatprep.subr.bf16.mxu0 %v5847_v7  ;;  %v1760_v57 = vpack.c.bf16 %v6975_v8, %v6975_v8  ;;  %v1756_v16 = vpack.c.bf16 %v7126_v59, %v7126_v59 }
 0x18c   :  { %v2238_v52 = vsel %vm1837_vm11, %v2179_v54, %v2237_v50  ;;  %v2245_v35 = vsel %vm1837_vm11, %v2187_v12, %v2244_v31  ;;  %v1762_v10 = vpack.c.bf16 %v6987_v1, %v6987_v1  ;;  %v1763_v61 = vpack.c.bf16 %v6993_v23, %v6993_v23  ;;  %v8034_v23 = vld [vmem:[#allocation48_spill] sm:$0xff] }
 0x18d   :  { %v2239_v37 = vsel %vm1839_vm12, %v2180_v45, %v2238_v52  ;;  %v2246_v62 = vsel %vm1839_vm12, %v2188_v17, %v2245_v35  ;;  %v1764_v8 = vpack.c.bf16 %v7020_v24, %v7020_v24  ;;  %v2193_v51 = vunpack.c.l.b16 %v1752_v20  ;;  %v8038_v45 = vld [vmem:[#allocation25_spill] sm:$0xff]  ;;  %v8039_v52 = vld [vmem:[#allocation8_spill] sm:$0xff] }
 0x18e   :  { %v2240_v40 = vsel %vm1841_vm13, %v2181_v18, %v2239_v37  ;;  %v2247_v21 = vsel %vm1841_vm13, %v2189_v3, %v2246_v62  ;;  %v2195_v14 = vunpack.c.l.b16 %v1754_v49  ;;  %5615 = vmatpush3.bf16.msra.mxu0 %v5847_v7  ;;  %v2196_v33 = vunpack.c.l.b16 %v1755_v9  ;;  %v5848_v62 = vld [vmem:[#allocation2 + $0x60] ss:$8 sps:$4 sm:$0xff]  }
 0x18f   :  { %v2264_v59 = vpack.c.b16 %v2247_v21, %v2240_v40  ;;  %v2201_v1 = vunpack.c.l.b16 %v1760_v57  ;;  %v8033_v26 = vpack.c.bf16 %v6660_v41, %v6660_v41  ;;  %v2197_v43 = vunpack.c.l.b16 %v1756_v16  ;;  %5624 = vmatprep.subr.bf16.mxu1 %v5848_v62  ;;  %v5851_v40 = vld [vmem:[#allocation2 + $0x90] ss:$8 sps:$4 sm:$0xff]   ;;  %v7342_v21 = vld [vmem:[#allocation2 + $0xa0] ss:$8 sps:$4 sm:$0xff]  }
 0x190   :  { %v2203_v6 = vunpack.c.l.b16 %v1762_v10  ;;  %v2248_v24 = vsel %vm1829_vm7, %v8035_v55, %v8034_v23  ;;  %v2255_v48 = vsel %vm1829_vm7, %v8037_v28, %v8036_v46  ;;  %v2204_v38 = vunpack.c.l.b16 %v1763_v61  ;;  %5625 = vmatpush3.bf16.msra.mxu1 %v5848_v62  ;;  %v5849_v61 = vld [vmem:[#allocation2 + $0x70] ss:$8 sps:$4 sm:$0xff]  }
 0x191   :  { %v2202_v19 = vunpack.c.l.b16 %v8033_v26  ;;  %5608 = vmatprep.mubr.msk.bf16.mxu0 %vm2000_vm15, %v2264_v59  ;;  %v2249_v54 = vsel %vm1831_vm8, %v6932_v56, %v2248_v24  ;;  %v2256_v41 = vsel %vm1831_vm8, %v8038_v45, %v2255_v48  ;;  %v1946_v60 = vrot.slane %v7087_v0, 1  ;;  %5626 = vmatprep.subr.bf16.mxu1 %v5849_v61 }
 0x192   :  { %v2205_v7 = vunpack.c.l.b16 %v1764_v8  ;;  %v2250_v18 = vsel %vm1833_vm9, %v2193_v51, %v2249_v54  ;;  %v2257_v12 = vsel %vm1833_vm9, %v2201_v1, %v2256_v41  ;;  %v7301_v25 = vadd.s32 24, %v6096_v2  ;;  %v5850_v8 = vld [vmem:[#allocation2 + $0x80] ss:$8 sps:$4 sm:$0xff]   ;;  %v7348_v51 = vld [vmem:[%s7892_s2 + $0x4] ss:$0 sm:$0xff] }
 0x193   :  { %v1944_v5 = vrot.slane %v7024_v36, 1  ;;  %v1945_v47 = vrot.slane %v7050_v58, 1  ;;  %v2251_v63 = vsel %vm1835_vm10, %v2194_v34, %v2250_v18  ;;  %v2258_v56 = vsel %vm1835_vm10, %v2202_v19, %v2257_v12  ;;  %v8041_v54 = vld [vmem:[#allocation9_spill] sm:$0xff] }
 0x194   :  { %v1948_v29 = vrot.slane %v7130_v42, 1  ;;  %v2252_v0 = vsel %vm1837_vm11, %v2195_v14, %v2251_v63  ;;  %v2259_v39 = vsel %vm1837_vm11, %v2203_v6, %v2258_v56  ;;  %v1614_v36 = vand.u32 31, %v7301_v25  ;;  %5627 = vmatpush3.bf16.msra.mxu1 %v5849_v61 }
 0x195   :  { %v2253_v17 = vsel %vm1839_vm12, %v2196_v33, %v2252_v0  ;;  %v2260_v3 = vsel %vm1839_vm12, %v2204_v38, %v2259_v39  ;;  %v1957_v22 = vsel %vm378_vm1, %v1945_v47, %v1946_v60  ;;  %v1947_v30 = vrot.slane %v7096_v13, 1  ;;  %5628 = vmatprep.subr.bf16.mxu1 %v5850_v8 }
 0x196   :  { %v2254_v58 = vsel %vm1841_vm13, %v2197_v43, %v2253_v17  ;;  %v2261_v34 = vsel %vm1841_vm13, %v2205_v7, %v2260_v3  ;;  %v1958_v32 = vsel %vm378_vm1, %v1944_v5, %v1945_v47  ;;  %vm1696_vm3 = vcmp.ne.s32.totalorder %v1614_v36, 31 }
 0x197   :  { %v2265_v42 = vpack.c.b16 %v2261_v34, %v2254_v58  ;;  %v1984_v44 = vpack.c.bf16 %v1957_v22, %v1958_v32  ;;  %v1955_v15 = vsel %vm378_vm1, %v1947_v30, %v1948_v29  ;;  %v1950_v11 = vrot.slane %v7159_v27, 1 }
 0x198   :  { %v1949_v20 = vrot.slane %v7134_v4, 1  ;;  %v1979_v49 = vsel %vm1696_vm3, %v1955_v15, 0.0  ;;  %v1956_v50 = vsel %vm378_vm1, %v1946_v60, %v1947_v30  ;;  %v1951_v31 = vrot.slane %v7054_v53, 1  ;;  %5629 = vmatpush3.bf16.msra.mxu1 %v5850_v8 }
 0x199   :  { %5609 = vmatmul.mubr.msk.bf16.gmra.mrb[4].mxu0 %vm2000_vm15, %v2265_v42  ;;  %v1985_v9 = vpack.c.bf16 %v1979_v49, %v1956_v50  ;;  %v1642_v35 = vand.u32 31, %v8039_v52  ;;  %v8040_v37 = vmov 0   ;;  %5630 = vmatprep.subr.bf16.mxu1 %v5851_v40  ;;  %v7351_v59 = vadd.s32 16, %v6096_v2 }
 0x19a   :  { %5616 = vmatprep.mubr.msk.bf16.mxu0 %vm2000_vm15, %v1984_v44  ;;  %v1953_v13 = vsel %vm378_vm1, %v1949_v20, %v1950_v11  ;;  %v1954_v57 = vsel %vm378_vm1, %v1948_v29, %v1949_v20  ;;  %v1959_v4 = vsel %vm378_vm1, %v1951_v31, %v1944_v5  ;;  %v1952_v16 = vsel %vm378_vm1, %v1950_v11, %v1951_v31 }
 0x19b   :  { %v1986_v27 = vpack.c.bf16 %v1953_v13, %v1954_v57  ;;  %vm1700_vm4 = vcmp.ne.s32.totalorder %v1642_v35, 31  ;;  %v7356_v43 = vadd.s32 8, %v6096_v2  ;;  %vm3114_vm14 = vcmask 523264  }
 0x19c   :  { %v1983_v10 = vsel %vm1700_vm4, %v1959_v4, 0.0  ;;  %5631 = vmatpush3.bf16.msra.mxu1 %v5851_v40 }
 0x19d   :  { %v1987_v53 = vpack.c.bf16 %v1983_v10, %v1952_v16  ;;  %5636 = vmatprep.subr.bf16.mxu1 %v7342_v21 }
 0x1a1   :  { %5617 = vmatmul.mubr.msk.bf16.vlgmr.msra.gmra.mrb[0].mxu0 %vm2000_vm15, %v1985_v9 }
 0x1a2   :  { %5620 = vmatprep.mubr.msk.bf16.mxu0 %vm2000_vm15, %v1986_v27 }
 0x1a9   :  { %5621 = vmatmul.mubr.msk.bf16.gmra.mrb[4].mxu0 %vm2000_vm15, %v1987_v53 }
 0x1aa   :  { %3895 = vmatprep.mubr.bf16.mxu0 %v8040_v37 }
 0x274   :  { %v5618_v14 = vpop.f32.mrb[0].mxu0 }
 0x275   :  { %v2454_v33 = vadd.f32 %v5618_v14, %v7348_v51  ;;  %v2413_v1 = vpop.f32.mrb[1].mxu0 }
 0x276   :  { %v2452_v26 = vadd.f32 %v2413_v1, %v7348_v51  ;;  %v5619_v19 = vpop.f32.mrb[2].mxu0 }
 0x277   :  { %v2462_v6 = vmax.f32 %v2454_v33, 0.0  ;;  %v2455_v23 = vadd.f32 %v5619_v19, %v7348_v51  ;;  %v2416_v55 = vpop.f32.mrb[3].mxu0 }
 0x278   :  { %v2460_v24 = vmax.f32 %v2452_v26, 0.0  ;;  %v2453_v46 = vadd.f32 %v2416_v55, %v7348_v51 }
 0x279   :  { %v2510_v38 = vcombine.high %v2462_v6, %v2462_v6  ;;  %v2517_v45 = vrot.slane %v2462_v6, %v8041_v54  ;;  %v7363_v41 = vmax.f32 %v2455_v23, 0.0 }
 0x27a   :  { %v2476_v7 = vcombine.high %v2460_v24, %v2460_v24  ;;  %v2483_v18 = vrot.slane %v2460_v24, %v8041_v54  ;;  %v7367_v12 = vmax.f32 %v2453_v46, 0.0 }
 0x27b   :  { %v2524_v47 = vrot.slane %v2510_v38, %v8041_v54  ;;  %v2525_v63 = vcombine.high %v2517_v45, %v2517_v45  ;;  %v2701_v56 = vsel %vm2644_vm5, %v2517_v45, -inf  ;;  %v2527_v29 = vcombine.high %v7363_v41, %v7363_v41 }
 0x27c   :  { %v2702_v0 = vrot.slane %v2701_v56, 4  ;;  %v2490_v39 = vrot.slane %v2476_v7, %v8041_v54  ;;  %v2491_v17 = vcombine.high %v2483_v18, %v2483_v18  ;;  %v2645_v3 = vsel %vm2644_vm5, %v2483_v18, -inf  ;;  %v7376_v22 = vpop.f32.mrb[4].mxu0 }
 0x27d   :  { %v2526_v36 = vcombine.high %v2524_v47, %v2524_v47  ;;  %v2708_v58 = vsel %vm2644_vm5, %v2525_v63, -inf  ;;  %v2715_v34 = vsel %vm2644_vm5, %v2524_v47, -inf  ;;  %v2646_v30 = vrot.slane %v2645_v3, 4  ;;  %v7380_v42 = vpop.f32.mrb[5].mxu0 }
 0x27e   :  { %v2703_v32 = vmax.f32 %v2701_v56, %v2702_v0  ;;  %v2709_v44 = vrot.slane %v2708_v58, 4  ;;  %v2716_v15 = vrot.slane %v2715_v34, 4  ;;  %v2492_v11 = vcombine.high %v2490_v39, %v2490_v39  ;;  %v7382_v20 = vpop.f32.mrb[6].mxu0 }
 0x27f   :  { %v2722_v49 = vsel %vm2644_vm5, %v2526_v36, -inf  ;;  %v2647_v13 = vmax.f32 %v2645_v3, %v2646_v30  ;;  %v2652_v50 = vsel %vm2644_vm5, %v2491_v17, -inf  ;;  %v2659_v31 = vsel %vm2644_vm5, %v2490_v39, -inf  ;;  %v7387_v9 = vpop.f32.mrb[7].mxu0 }
 0x280   :  { %v2704_v57 = vrot.slane %v2703_v32, 2  ;;  %v2710_v52 = vmax.f32 %v2708_v58, %v2709_v44  ;;  %v2717_v35 = vmax.f32 %v2715_v34, %v2716_v15  ;;  %v2723_v27 = vrot.slane %v2722_v49, 4 }
 0x281   :  { %v2648_v4 = vrot.slane %v2647_v13, 2  ;;  %v2653_v16 = vrot.slane %v2652_v50, 4  ;;  %v2660_v10 = vrot.slane %v2659_v31, 4  ;;  %v2666_v53 = vsel %vm2644_vm5, %v2492_v11, -inf }
 0x282   :  { %v2705_v62 = vmax.f32 %v2703_v32, %v2704_v57  ;;  %v2711_v61 = vrot.slane %v2710_v52, 2  ;;  %v2718_v8 = vrot.slane %v2717_v35, 2  ;;  %v2724_v40 = vmax.f32 %v2722_v49, %v2723_v27 }
 0x283   :  { %v2649_v14 = vmax.f32 %v2647_v13, %v2648_v4  ;;  %v2654_v33 = vmax.f32 %v2652_v50, %v2653_v16  ;;  %v2661_v1 = vmax.f32 %v2659_v31, %v2660_v10  ;;  %v2667_v26 = vrot.slane %v2666_v53, 4 }
 0x284   :  { %v2706_v19 = vrot.slane %v2705_v62, 1  ;;  %v2712_v6 = vmax.f32 %v2710_v52, %v2711_v61  ;;  %v2719_v23 = vmax.f32 %v2717_v35, %v2718_v8  ;;  %v2725_v55 = vrot.slane %v2724_v40, 2 }
 0x285   :  { %v2650_v24 = vrot.slane %v2649_v14, 1  ;;  %v2655_v46 = vrot.slane %v2654_v33, 2  ;;  %v2662_v38 = vrot.slane %v2661_v1, 2  ;;  %v2668_v45 = vmax.f32 %v2666_v53, %v2667_v26 }
 0x286   :  { %v2707_v7 = vmax.f32 %v2705_v62, %v2706_v19  ;;  %v2713_v18 = vrot.slane %v2712_v6, 1  ;;  %v2720_v47 = vrot.slane %v2719_v23, 1  ;;  %v2726_v63 = vmax.f32 %v2724_v40, %v2725_v55 }
 0x287   :  { %v2651_v56 = vmax.f32 %v2649_v14, %v2650_v24  ;;  %v2656_v0 = vmax.f32 %v2654_v33, %v2655_v46  ;;  %v2663_v39 = vmax.f32 %v2661_v1, %v2662_v38  ;;  %v2669_v17 = vrot.slane %v2668_v45, 2 }
 0x288   :  { %v2714_v3 = vmax.f32 %v2712_v6, %v2713_v18  ;;  %v2721_v36 = vmax.f32 %v2719_v23, %v2720_v47  ;;  %v2727_v58 = vrot.slane %v2726_v63, 1  ;;  %v2958_v34 = vpack.c.bf16 %v2707_v7, %v2707_v7 }
 0x289   :  { %v2657_v30 = vrot.slane %v2656_v0, 1  ;;  %v2664_v32 = vrot.slane %v2663_v39, 1  ;;  %v2670_v44 = vmax.f32 %v2668_v45, %v2669_v17  ;;  %v2950_v15 = vpack.c.bf16 %v2651_v56, %v2651_v56 }
 0x28a   :  { %v2728_v11 = vmax.f32 %v2726_v63, %v2727_v58  ;;  %v2959_v49 = vpack.c.bf16 %v2714_v3, %v2714_v3  ;;  %v2960_v13 = vpack.c.bf16 %v2721_v36, %v2721_v36  ;;  %v3021_v50 = vsel %vm1829_vm7, %v2714_v3, %v2707_v7 }
 0x28b   :  { %v3022_v31 = vsel %vm1831_vm8, %v2721_v36, %v3021_v50  ;;  %v3210_v57 = vunpack.c.l.b16 %v2958_v34  ;;  %v2658_v52 = vmax.f32 %v2656_v0, %v2657_v30  ;;  %v2665_v35 = vmax.f32 %v2663_v39, %v2664_v32 }
 0x28c   :  { %v2961_v27 = vpack.c.bf16 %v2728_v11, %v2728_v11  ;;  %v3211_v4 = vunpack.c.l.b16 %v2959_v49  ;;  %v3212_v16 = vunpack.c.l.b16 %v2960_v13  ;;  %v2671_v10 = vrot.slane %v2670_v44, 1 }
 0x28d   :  { %v2951_v53 = vpack.c.bf16 %v2658_v52, %v2658_v52  ;;  %v2952_v62 = vpack.c.bf16 %v2665_v35, %v2665_v35  ;;  %v3014_v61 = vsel %vm1829_vm7, %v2658_v52, %v2651_v56  ;;  %v3202_v8 = vunpack.c.l.b16 %v2950_v15 }
 0x28e   :  { %v7393_v40 = vunpack.c.l.b16 %v2961_v27  ;;  %v3241_v14 = vsel %vm1829_vm7, %v3211_v4, %v3210_v57  ;;  %v7396_v33 = vmax.f32 %v2670_v44, %v2671_v10  ;;  %v7399_v1 = vsel %vm1831_vm8, %v2665_v35, %v3014_v61 }
 0x28f   :  { %v7402_v26 = vsel %vm1831_vm8, %v3212_v16, %v3241_v14  ;;  %v3203_v19 = vunpack.c.l.b16 %v2951_v53  ;;  %v3204_v6 = vunpack.c.l.b16 %v2952_v62  ;;  %v2534_v23 = vrot.slane %v7363_v41, %v8041_v54 }
 0x290   :  { %v2953_v55 = vpack.c.bf16 %v7396_v33, %v7396_v33  ;;  %v2541_v24 = vrot.slane %v2527_v29, %v8041_v54  ;;  %v3023_v46 = vsel %vm1833_vm9, %v2728_v11, %v3022_v31  ;;  %v2493_v38 = vcombine.high %v7367_v12, %v7367_v12 }
 0x291   :  { %v3234_v45 = vsel %vm1829_vm7, %v3203_v19, %v3202_v8  ;;  %v2542_v7 = vcombine.high %v2534_v23, %v2534_v23  ;;  %v2729_v18 = vsel %vm2644_vm5, %v2534_v23, -inf  ;;  %v2500_v47 = vrot.slane %v7367_v12, %v8041_v54 }
 0x292   :  { %v7419_v63 = vunpack.c.l.b16 %v2953_v55  ;;  %v7422_v56 = vsel %vm1831_vm8, %v3204_v6, %v3234_v45  ;;  %v2543_v41 = vcombine.high %v2541_v24, %v2541_v24  ;;  %v2730_v29 = vrot.slane %v2729_v18, 4 }
 0x293   :  { %v2736_v0 = vsel %vm2644_vm5, %v2542_v7, -inf  ;;  %v2743_v39 = vsel %vm2644_vm5, %v2541_v24, -inf  ;;  %v2507_v17 = vrot.slane %v2493_v38, %v8041_v54  ;;  %v2508_v3 = vcombine.high %v2500_v47, %v2500_v47 }
 0x294   :  { %v2731_v36 = vmax.f32 %v2729_v18, %v2730_v29  ;;  %v2737_v58 = vrot.slane %v2736_v0, 4  ;;  %v2744_v34 = vrot.slane %v2743_v39, 4  ;;  %v2750_v30 = vsel %vm2644_vm5, %v2543_v41, -inf }
 0x295   :  { %v2751_v12 = vrot.slane %v2750_v30, 4  ;;  %v2509_v32 = vcombine.high %v2507_v17, %v2507_v17  ;;  %v2673_v44 = vsel %vm2644_vm5, %v2500_v47, -inf  ;;  %v2680_v15 = vsel %vm2644_vm5, %v2508_v3, -inf }
 0x296   :  { %v2732_v11 = vrot.slane %v2731_v36, 2  ;;  %v2738_v49 = vmax.f32 %v2736_v0, %v2737_v58  ;;  %v2745_v13 = vmax.f32 %v2743_v39, %v2744_v34  ;;  %v2674_v50 = vrot.slane %v2673_v44, 4 }
 0x297   :  { %v2752_v31 = vmax.f32 %v2750_v30, %v2751_v12  ;;  %v2681_v57 = vrot.slane %v2680_v15, 4  ;;  %v2687_v52 = vsel %vm2644_vm5, %v2507_v17, -inf  ;;  %v2694_v35 = vsel %vm2644_vm5, %v2509_v32, -inf }
 0x298   :  { %v2733_v27 = vmax.f32 %v2731_v36, %v2732_v11  ;;  %v2739_v4 = vrot.slane %v2738_v49, 2  ;;  %v2746_v16 = vrot.slane %v2745_v13, 2  ;;  %v2675_v10 = vmax.f32 %v2673_v44, %v2674_v50 }
 0x299   :  { %v2753_v53 = vrot.slane %v2752_v31, 2  ;;  %v2682_v62 = vmax.f32 %v2680_v15, %v2681_v57  ;;  %v2688_v61 = vrot.slane %v2687_v52, 4  ;;  %v2695_v8 = vrot.slane %v2694_v35, 4 }
 0x29a   :  { %v2734_v14 = vrot.slane %v2733_v27, 1  ;;  %v2740_v19 = vmax.f32 %v2738_v49, %v2739_v4  ;;  %v2747_v6 = vmax.f32 %v2745_v13, %v2746_v16  ;;  %v2676_v23 = vrot.slane %v2675_v10, 2 }
 0x29b   :  { %v2754_v55 = vmax.f32 %v2752_v31, %v2753_v53  ;;  %v2683_v24 = vrot.slane %v2682_v62, 2  ;;  %v2689_v38 = vmax.f32 %v2687_v52, %v2688_v61  ;;  %v2696_v45 = vmax.f32 %v2694_v35, %v2695_v8 }
 0x29c   :  { %v2735_v7 = vmax.f32 %v2733_v27, %v2734_v14  ;;  %v2741_v18 = vrot.slane %v2740_v19, 1  ;;  %v2748_v47 = vrot.slane %v2747_v6, 1  ;;  %v2677_v41 = vmax.f32 %v2675_v10, %v2676_v23 }
 0x29d   :  { %v2755_v29 = vrot.slane %v2754_v55, 1  ;;  %v2684_v0 = vmax.f32 %v2682_v62, %v2683_v24  ;;  %v2690_v39 = vrot.slane %v2689_v38, 2  ;;  %v2697_v17 = vrot.slane %v2696_v45, 2 }
 0x29e   :  { %v7432_v3 = vmax.f32 %v2740_v19, %v2741_v18  ;;  %v7434_v36 = vmax.f32 %v2747_v6, %v2748_v47  ;;  %v2962_v58 = vpack.c.bf16 %v2735_v7, %v2735_v7  ;;  %v7437_v34 = vsel %vm1835_vm10, %v2735_v7, %v3023_v46 }
 0x29f   :  { %v2678_v30 = vrot.slane %v2677_v41, 1  ;;  %v2685_v12 = vrot.slane %v2684_v0, 1  ;;  %v2691_v32 = vmax.f32 %v2689_v38, %v2690_v39  ;;  %v2698_v44 = vmax.f32 %v2696_v45, %v2697_v17 }
 0x2a0   :  { %v2963_v15 = vpack.c.bf16 %v7432_v3, %v7432_v3  ;;  %v2964_v11 = vpack.c.bf16 %v7434_v36, %v7434_v36  ;;  %v7443_v49 = vunpack.c.l.b16 %v2962_v58  ;;  %v3016_v13 = vsel %vm1833_vm9, %v7396_v33, %v7399_v1 }
 0x2a1   :  { %v2679_v50 = vmax.f32 %v2677_v41, %v2678_v30  ;;  %v7448_v31 = vmax.f32 %v2684_v0, %v2685_v12  ;;  %v2692_v46 = vrot.slane %v2691_v32, 1  ;;  %v2699_v57 = vrot.slane %v2698_v44, 1 }
 0x2a2   :  { %v7450_v52 = vunpack.c.l.b16 %v2963_v15  ;;  %v7452_v35 = vunpack.c.l.b16 %v2964_v11  ;;  %v2458_v27 = vadd.f32 %v7376_v22, %v7348_v51  ;;  %v2456_v4 = vadd.f32 %v7380_v42, %v7348_v51 }
 0x2a3   :  { %v7458_v16 = vmax.f32 %v2691_v32, %v2692_v46  ;;  %v2954_v10 = vpack.c.bf16 %v2679_v50, %v2679_v50  ;;  %v2955_v33 = vpack.c.bf16 %v7448_v31, %v7448_v31  ;;  %v7463_v1 = vsel %vm1835_vm10, %v2679_v50, %v3016_v13 }
 0x2a4   :  { %v2466_v53 = vmax.f32 %v2458_v27, 0.0  ;;  %v2464_v62 = vmax.f32 %v2456_v4, 0.0  ;;  %v2459_v61 = vadd.f32 %v7382_v20, %v7348_v51  ;;  %v2457_v22 = vadd.f32 %v7387_v9, %v7348_v51 }
 0x2a5   :  { %v2956_v42 = vpack.c.bf16 %v7458_v16, %v7458_v16  ;;  %v7471_v8 = vunpack.c.l.b16 %v2954_v10  ;;  %v7473_v14 = vunpack.c.l.b16 %v2955_v33  ;;  %v7475_v19 = vmax.f32 %v2698_v44, %v2699_v57 }
 0x2a6   :  { %v2578_v6 = vcombine.high %v2466_v53, %v2466_v53  ;;  %v2585_v23 = vrot.slane %v2466_v53, %v8041_v54  ;;  %v2544_v24 = vcombine.high %v2464_v62, %v2464_v62  ;;  %v2551_v38 = vrot.slane %v2464_v62, %v8041_v54 }
 0x2a7   :  { %v7479_v45 = vunpack.c.l.b16 %v2956_v42  ;;  %v7481_v20 = vmax.f32 %v2459_v61, 0.0  ;;  %v7483_v51 = vmax.f32 %v2457_v22, 0.0  ;;  %v7485_v9 = vmax.f32 %v2754_v55, %v2755_v29 }
 0x2a8   :  { %v2592_v7 = vrot.slane %v2578_v6, %v8041_v54  ;;  %v2593_v18 = vcombine.high %v2585_v23, %v2585_v23  ;;  %v2813_v47 = vsel %vm2644_vm5, %v2585_v23, -inf  ;;  %v2558_v41 = vrot.slane %v2544_v24, %v8041_v54 }
 0x2a9   :  { %v2814_v0 = vrot.slane %v2813_v47, 4  ;;  %v2559_v39 = vcombine.high %v2551_v38, %v2551_v38  ;;  %v2757_v17 = vsel %vm2644_vm5, %v2551_v38, -inf  ;;  %v2595_v58 = vcombine.high %v7481_v20, %v7481_v20 }
 0x2aa   :  { %v2594_v30 = vcombine.high %v2592_v7, %v2592_v7  ;;  %v2820_v12 = vsel %vm2644_vm5, %v2593_v18, -inf  ;;  %v2827_v55 = vsel %vm2644_vm5, %v2592_v7, -inf  ;;  %v2560_v29 = vcombine.high %v2558_v41, %v2558_v41 }
 0x2ab   :  { %v2815_v32 = vmax.f32 %v2813_v47, %v2814_v0  ;;  %v2821_v44 = vrot.slane %v2820_v12, 4  ;;  %v2828_v15 = vrot.slane %v2827_v55, 4  ;;  %v2758_v11 = vrot.slane %v2757_v17, 4 }
 0x2ac   :  { %v2834_v13 = vsel %vm2644_vm5, %v2594_v30, -inf  ;;  %v2764_v50 = vsel %vm2644_vm5, %v2559_v39, -inf  ;;  %v2771_v46 = vsel %vm2644_vm5, %v2558_v41, -inf  ;;  %v2778_v57 = vsel %vm2644_vm5, %v2560_v29, -inf }
 0x2ad   :  { %v2816_v27 = vrot.slane %v2815_v32, 2  ;;  %v2822_v4 = vmax.f32 %v2820_v12, %v2821_v44  ;;  %v2829_v10 = vmax.f32 %v2827_v55, %v2828_v15  ;;  %v2835_v33 = vrot.slane %v2834_v13, 4 }
 0x2ae   :  { %v2759_v53 = vmax.f32 %v2757_v17, %v2758_v11  ;;  %v2765_v62 = vrot.slane %v2764_v50, 4  ;;  %v2772_v61 = vrot.slane %v2771_v46, 4  ;;  %v2779_v22 = vrot.slane %v2778_v57, 4 }
 0x2af   :  { %v2817_v42 = vmax.f32 %v2815_v32, %v2816_v27  ;;  %v2823_v6 = vrot.slane %v2822_v4, 2  ;;  %v2830_v23 = vrot.slane %v2829_v10, 2  ;;  %v2836_v24 = vmax.f32 %v2834_v13, %v2835_v33 }
 0x2b0   :  { %v2760_v38 = vrot.slane %v2759_v53, 2  ;;  %v2766_v7 = vmax.f32 %v2764_v50, %v2765_v62  ;;  %v2773_v18 = vmax.f32 %v2771_v46, %v2772_v61  ;;  %v2780_v47 = vmax.f32 %v2778_v57, %v2779_v22 }
 0x2b1   :  { %v2818_v0 = vrot.slane %v2817_v42, 1  ;;  %v2824_v41 = vmax.f32 %v2822_v4, %v2823_v6  ;;  %v2831_v39 = vmax.f32 %v2829_v10, %v2830_v23  ;;  %v2837_v30 = vrot.slane %v2836_v24, 2 }
 0x2b2   :  { %v2761_v29 = vmax.f32 %v2759_v53, %v2760_v38  ;;  %v2767_v12 = vrot.slane %v2766_v7, 2  ;;  %v2774_v55 = vrot.slane %v2773_v18, 2  ;;  %v2781_v44 = vrot.slane %v2780_v47, 2 }
 0x2b3   :  { %v2819_v17 = vmax.f32 %v2817_v42, %v2818_v0  ;;  %v2825_v15 = vrot.slane %v2824_v41, 1  ;;  %v2832_v11 = vrot.slane %v2831_v39, 1  ;;  %v2838_v5 = vmax.f32 %v2836_v24, %v2837_v30 }
 0x2b4   :  { %v2762_v32 = vrot.slane %v2761_v29, 1  ;;  %v2768_v27 = vmax.f32 %v2766_v7, %v2767_v12  ;;  %v2775_v60 = vmax.f32 %v2773_v18, %v2774_v55  ;;  %v2782_v13 = vmax.f32 %v2780_v47, %v2781_v44 }
 0x2b5   :  { %v2826_v33 = vmax.f32 %v2824_v41, %v2825_v15  ;;  %v2833_v50 = vmax.f32 %v2831_v39, %v2832_v11  ;;  %v2839_v46 = vrot.slane %v2838_v5, 1  ;;  %v2974_v57 = vpack.c.bf16 %v2819_v17, %v2819_v17 }
 0x2b6   :  { %v2763_v62 = vmax.f32 %v2761_v29, %v2762_v32  ;;  %v2769_v4 = vrot.slane %v2768_v27, 1  ;;  %v2776_v10 = vrot.slane %v2775_v60, 1  ;;  %v2783_v61 = vrot.slane %v2782_v13, 1 }
 0x2b7   :  { %v2840_v53 = vmax.f32 %v2838_v5, %v2839_v46  ;;  %v2975_v22 = vpack.c.bf16 %v2826_v33, %v2826_v33  ;;  %v2976_v6 = vpack.c.bf16 %v2833_v50, %v2833_v50  ;;  %v3035_v42 = vsel %vm1829_vm7, %v2826_v33, %v2819_v17 }
 0x2b8   :  { %v3036_v23 = vsel %vm1831_vm8, %v2833_v50, %v3035_v42  ;;  %v3226_v24 = vunpack.c.l.b16 %v2974_v57  ;;  %v2770_v38 = vmax.f32 %v2768_v27, %v2769_v4  ;;  %v2777_v7 = vmax.f32 %v2775_v60, %v2776_v10 }
 0x2b9   :  { %v2977_v18 = vpack.c.bf16 %v2840_v53, %v2840_v53  ;;  %v3227_v47 = vunpack.c.l.b16 %v2975_v22  ;;  %v3228_v0 = vunpack.c.l.b16 %v2976_v6  ;;  %v7501_v41 = vmax.f32 %v2782_v13, %v2783_v61 }
 0x2ba   :  { %v2966_v39 = vpack.c.bf16 %v2763_v62, %v2763_v62  ;;  %v2967_v30 = vpack.c.bf16 %v2770_v38, %v2770_v38  ;;  %v2968_v29 = vpack.c.bf16 %v2777_v7, %v2777_v7  ;;  %v3028_v12 = vsel %vm1829_vm7, %v2770_v38, %v2763_v62 }
 0x2bb   :  { %v3229_v5 = vunpack.c.l.b16 %v2977_v18  ;;  %v3255_v55 = vsel %vm1829_vm7, %v3227_v47, %v3226_v24  ;;  %v2969_v44 = vpack.c.bf16 %v7501_v41, %v7501_v41  ;;  %v7508_v17 = vsel %vm1831_vm8, %v2777_v7, %v3028_v12 }
 0x2bc   :  { %v3256_v60 = vsel %vm1831_vm8, %v3228_v0, %v3255_v55  ;;  %v3218_v15 = vunpack.c.l.b16 %v2966_v39  ;;  %v3219_v11 = vunpack.c.l.b16 %v2967_v30  ;;  %v3220_v32 = vunpack.c.l.b16 %v2968_v29 }
 0x2bd   :  { %v7511_v27 = vunpack.c.l.b16 %v2969_v44  ;;  %v2602_v13 = vrot.slane %v7481_v20, %v8041_v54  ;;  %v2609_v33 = vrot.slane %v2595_v58, %v8041_v54  ;;  %v3037_v50 = vsel %vm1833_vm9, %v2840_v53, %v3036_v23 }
 0x2be   :  { %v3248_v46 = vsel %vm1829_vm7, %v3219_v11, %v3218_v15  ;;  %v7522_v57 = vsel %vm1833_vm9, %v3229_v5, %v3256_v60  ;;  %v2561_v62 = vcombine.high %v7483_v51, %v7483_v51  ;;  %v2568_v4 = vrot.slane %v7483_v51, %v8041_v54 }
 0x2bf   :  { %v7529_v10 = vsel %vm1831_vm8, %v3220_v32, %v3248_v46  ;;  %v2610_v61 = vcombine.high %v2602_v13, %v2602_v13  ;;  %v2611_v22 = vcombine.high %v2609_v33, %v2609_v33  ;;  %v2841_v20 = vsel %vm2644_vm5, %v2602_v13, -inf }
 0x2c0   :  { %v2842_v58 = vrot.slane %v2841_v20, 4  ;;  %v2855_v53 = vsel %vm2644_vm5, %v2609_v33, -inf  ;;  %v2575_v6 = vrot.slane %v2561_v62, %v8041_v54  ;;  %v2576_v42 = vcombine.high %v2568_v4, %v2568_v4 }
 0x2c1   :  { %v2848_v23 = vsel %vm2644_vm5, %v2610_v61, -inf  ;;  %v2856_v24 = vrot.slane %v2855_v53, 4  ;;  %v2862_v38 = vsel %vm2644_vm5, %v2611_v22, -inf  ;;  %v2785_v51 = vsel %vm2644_vm5, %v2568_v4, -inf }
 0x2c2   :  { %v2843_v7 = vmax.f32 %v2841_v20, %v2842_v58  ;;  %v2849_v18 = vrot.slane %v2848_v23, 4  ;;  %v2863_v47 = vrot.slane %v2862_v38, 4  ;;  %v2577_v0 = vcombine.high %v2575_v6, %v2575_v6 }
 0x2c3   :  { %v2857_v39 = vmax.f32 %v2855_v53, %v2856_v24  ;;  %v2786_v30 = vrot.slane %v2785_v51, 4  ;;  %v2792_v29 = vsel %vm2644_vm5, %v2576_v42, -inf  ;;  %v2799_v12 = vsel %vm2644_vm5, %v2575_v6, -inf }
 0x2c4   :  { %v2844_v5 = vrot.slane %v2843_v7, 2  ;;  %v2850_v55 = vmax.f32 %v2848_v23, %v2849_v18  ;;  %v2864_v44 = vmax.f32 %v2862_v38, %v2863_v47  ;;  %v2793_v60 = vrot.slane %v2792_v29, 4 }
 0x2c5   :  { %v2858_v15 = vrot.slane %v2857_v39, 2  ;;  %v2787_v11 = vmax.f32 %v2785_v51, %v2786_v30  ;;  %v2800_v32 = vrot.slane %v2799_v12, 4  ;;  %v2806_v13 = vsel %vm2644_vm5, %v2577_v0, -inf }
 0x2c6   :  { %v2845_v33 = vmax.f32 %v2843_v7, %v2844_v5  ;;  %v2851_v46 = vrot.slane %v2850_v55, 2  ;;  %v2865_v62 = vrot.slane %v2864_v44, 2  ;;  %v2794_v4 = vmax.f32 %v2792_v29, %v2793_v60 }
 0x2c7   :  { %v2859_v61 = vmax.f32 %v2857_v39, %v2858_v15  ;;  %v2788_v22 = vrot.slane %v2787_v11, 2  ;;  %v2801_v20 = vmax.f32 %v2799_v12, %v2800_v32  ;;  %v2807_v58 = vrot.slane %v2806_v13, 4 }
 0x2c8   :  { %v2846_v53 = vrot.slane %v2845_v33, 1  ;;  %v2852_v42 = vmax.f32 %v2850_v55, %v2851_v46  ;;  %v2866_v6 = vmax.f32 %v2864_v44, %v2865_v62  ;;  %v2795_v24 = vrot.slane %v2794_v4, 2 }
 0x2c9   :  { %v2860_v23 = vrot.slane %v2859_v61, 1  ;;  %v2789_v38 = vmax.f32 %v2787_v11, %v2788_v22  ;;  %v2802_v18 = vrot.slane %v2801_v20, 2  ;;  %v2808_v47 = vmax.f32 %v2806_v13, %v2807_v58 }
 0x2ca   :  { %v2847_v51 = vmax.f32 %v2845_v33, %v2846_v53  ;;  %v2853_v30 = vrot.slane %v2852_v42, 1  ;;  %v2867_v48 = vrot.slane %v2866_v6, 1  ;;  %v2796_v0 = vmax.f32 %v2794_v4, %v2795_v24 }
 0x2cb   :  { %v2861_v7 = vmax.f32 %v2859_v61, %v2860_v23  ;;  %v2790_v5 = vrot.slane %v2789_v38, 1  ;;  %v2803_v28 = vmax.f32 %v2801_v20, %v2802_v18  ;;  %v2809_v29 = vrot.slane %v2808_v47, 2 }
 0x2cc   :  { %v2854_v39 = vmax.f32 %v2852_v42, %v2853_v30  ;;  %v2978_v60 = vpack.c.bf16 %v2847_v51, %v2847_v51  ;;  %v3038_v12 = vsel %vm1835_vm10, %v2847_v51, %v3037_v50  ;;  %v2797_v15 = vrot.slane %v2796_v0, 1 }
 0x2cd   :  { %v2980_v55 = vpack.c.bf16 %v2861_v7, %v2861_v7  ;;  %v2791_v44 = vmax.f32 %v2789_v38, %v2790_v5  ;;  %v2804_v32 = vrot.slane %v2803_v28, 1  ;;  %v2810_v46 = vmax.f32 %v2808_v47, %v2809_v29 }
 0x2ce   :  { %v2979_v11 = vpack.c.bf16 %v2854_v39, %v2854_v39  ;;  %v3230_v62 = vunpack.c.l.b16 %v2978_v60  ;;  %v2798_v13 = vmax.f32 %v2796_v0, %v2797_v15  ;;  %v3030_v33 = vsel %vm1833_vm9, %v7501_v41, %v7508_v17 }
 0x2cf   :  { %v7544_v4 = vunpack.c.l.b16 %v2980_v55  ;;  %v2805_v61 = vmax.f32 %v2803_v28, %v2804_v32  ;;  %v2811_v22 = vrot.slane %v2810_v46, 1  ;;  %v2970_v20 = vpack.c.bf16 %v2791_v44, %v2791_v44 }
 0x2d0   :  { %v8042_v58 = vand.u32 15, %v6096_v2  ;;  %v7552_v53 = vunpack.c.l.b16 %v2979_v11  ;;  %v7556_v42 = vsel %vm1835_vm10, %v3230_v62, %v7522_v57  ;;  %v2971_v24 = vpack.c.bf16 %v2798_v13, %v2798_v13  ;;  %v5877_v62 = vld [vmem:[#allocation2 + $0x174] ss:$8 sps:$4 sm:$0xff]  }
 0x2d1   :  { %v3031_v41 = vsel %vm1835_vm10, %v2791_v44, %v3030_v33  ;;  %v2812_v17 = vmax.f32 %v2810_v46, %v2811_v22  ;;  %v2972_v23 = vpack.c.bf16 %v2805_v61, %v2805_v61  ;;  %v3222_v38 = vunpack.c.l.b16 %v2970_v20 }
 0x2d2   :  { %vm7548_vm6 = vcmp.ne.s32.totalorder %v8042_v58, 0  ;;  %v3032_v28 = vsel %vm1837_vm11, %v2798_v13, %v3031_v41  ;;  %v3223_v18 = vunpack.c.l.b16 %v2971_v24  ;;  %v3250_v47 = vsel %vm1833_vm9, %v7511_v27, %v7529_v10 }
 0x2d3   :  { %v2868_v51 = vmax.f32 %v2866_v6, %v2867_v48  ;;  %v3018_v30 = vsel %vm1837_vm11, %v7448_v31, %v7463_v1  ;;  %v8045_v57 = vand.u32 15, %v7351_v59  ;;  %v2973_v5 = vpack.c.bf16 %v2812_v17, %v2812_v17 }
 0x2d4   :  { %v3224_v29 = vunpack.c.l.b16 %v2972_v23  ;;  %v3251_v60 = vsel %vm1835_vm10, %v3222_v38, %v3250_v47  ;;  %v3019_v15 = vsel %vm1839_vm12, %v7458_v16, %v3018_v30  ;;  %v3025_v31 = vsel %vm1837_vm11, %v7432_v3, %v7437_v34  ;;  %v5862_v16 = vld [vmem:[#allocation2 + $0x124] ss:$8 sps:$4 sm:$0xff]  }
 0x2d5   :  { %vm7568_vm15 = vcmp.ne.s32.totalorder %v8045_v57, 0  ;;  %v2981_v27 = vpack.c.bf16 %v2868_v51, %v2868_v51  ;;  %v3020_v48 = vsel %vm1841_vm13, %v7475_v19, %v3019_v15  ;;  %v3039_v59 = vsel %vm1837_vm11, %v2854_v39, %v3038_v12  ;;  %3863 = vmatprep.subr.bf16.mxu0 %v5862_v16 }
 0x2d6   :  { %v3225_v1 = vunpack.c.l.b16 %v2973_v5  ;;  %v3026_v10 = vsel %vm1839_vm12, %v7434_v36, %v3025_v31  ;;  %v3040_v6 = vsel %vm1839_vm12, %v2861_v7, %v3039_v59  ;;  %v3046_v55 = vrot.slane %v3020_v48, 7 }
 0x2d7   :  { %v8048_v44 = vand.u32 15, %v7301_v25  ;;  %v3027_v32 = vsel %vm1841_vm13, %v7485_v9, %v3026_v10  ;;  %v3041_v3 = vsel %vm1841_vm13, %v2868_v51, %v3040_v6  ;;  %v3068_v34 = vrot.slane %v3020_v48, 1  ;;  %v5854_v48 = vld [vmem:[#allocation2 + $0xc0] ss:$8 sps:$4 sm:$0xff]   ;;  %v5857_v6 = vld [vmem:[#allocation2 + $0xf0] ss:$8 sps:$4 sm:$0xff]  }
 0x2d8   :  { %v3233_v39 = vunpack.c.l.b16 %v2981_v27  ;;  %v3047_v12 = vrot.slane %v3027_v32, 7  ;;  %v3049_v46 = vrot.slane %v3041_v3, 7  ;;  %v3069_v11 = vrot.slane %v3027_v32, 1  ;;  %v5856_v10 = vld [vmem:[#allocation2 + $0xe0] ss:$8 sps:$4 sm:$0xff]  }
 0x2d9   :  { %vm7586_vm2 = vcmp.ne.s32.totalorder %v8048_v44, 15  ;;  %v3071_v36 = vrot.slane %v3041_v3, 1  ;;  %v8051_v7 = vand.u32 15, %v7356_v43  ;;  %v3033_v25 = vsel %vm1839_vm12, %v2805_v61, %v3032_v28  ;;  %v5859_v44 = vld [vmem:[#allocation2 + $0x110] ss:$8 sps:$4 sm:$0xff]  }
 0x2da   :  { %v2957_v13 = vpack.c.bf16 %v7475_v19, %v7475_v19  ;;  %v2965_v33 = vpack.c.bf16 %v7485_v9, %v7485_v9  ;;  %v3236_v22 = vsel %vm1833_vm9, %v7419_v63, %v7422_v56  ;;  %v3052_v20 = vsel %vm329_vm0, %v3046_v55, %v3047_v12  ;;  %v5860_v32 = vld [vmem:[#allocation2 + $0x120] ss:$8 sps:$4 sm:$0xff]   ;;  %v5865_v3 = vld [vmem:[#allocation2 + $0x134] ss:$8 sps:$4 sm:$0xff]  }
 0x2db   :  { %vm7595_vm3 = vcmp.ne.s32.totalorder %v8051_v7, 15  ;;  %v3053_v58 = vsel %vm329_vm0, %v3049_v46, %v3046_v55  ;;  %v3075_v24 = vsel %vm378_vm1, %v3071_v36, %v3068_v34  ;;  %v3034_v61 = vsel %vm1841_vm13, %v2812_v17, %v3033_v25  ;;  %v5858_v55 = vld [vmem:[#allocation2 + $0x100] ss:$8 sps:$4 sm:$0xff]   ;;  %3864 = vmatpush1.bf16.msra.mxu0 %v5860_v32  ;;  %v5875_v25 = vld [vmem:[#allocation2 + $0x170] ss:$8 sps:$4 sm:$0xff]  }
 0x2dc   :  { %v3062_v19 = vsel %vm7548_vm6, %v3053_v58, 0.0  ;;  %v3048_v41 = vrot.slane %v3034_v61, 7  ;;  %v3209_v9 = vunpack.c.l.b16 %v2957_v13  ;;  %v3217_v23 = vunpack.c.l.b16 %v2965_v33  ;;  %3865 = vmatprep.subr.bf16.mxu0 %v5865_v3  ;;  %v5872_v7 = vld [vmem:[#allocation2 + $0x160] ss:$8 sps:$4 sm:$0xff]   ;;  %v5880_v13 = vld [vmem:[#allocation2 + $0x184] ss:$8 sps:$4 sm:$0xff]  }
 0x2dd   :  { %v3066_v28 = vpack.c.bf16 %v3052_v20, %v3062_v19  ;;  %v3237_v63 = vsel %vm1835_vm10, %v7471_v8, %v3236_v22  ;;  %v3243_v56 = vsel %vm1833_vm9, %v7393_v40, %v7402_v26  ;;  %v3252_v38 = vsel %vm1837_vm11, %v3223_v18, %v3251_v60  ;;  %v5878_v33 = vld [vmem:[#allocation2 + $0x180] ss:$8 sps:$4 sm:$0xff]   ;;  %v5881_v22 = vld [vmem:[#allocation2 + $0x190] ss:$8 sps:$4 sm:$0xff]   ;;  %v5883_v20 = vld [vmem:[#allocation2 + $0x194] ss:$8 sps:$4 sm:$0xff]  }
 0x2de   :  { %v3050_v47 = vsel %vm329_vm0, %v3048_v41, %v3049_v46  ;;  %v3051_v50 = vsel %vm329_vm0, %v3047_v12, %v3048_v41  ;;  %v3238_v17 = vsel %vm1837_vm11, %v7473_v14, %v3237_v63  ;;  %v3244_v51 = vsel %vm1835_vm10, %v7443_v49, %v3243_v56  ;;  %v5853_v49 = vld [vmem:[#allocation2 + $0xb0] ss:$8 sps:$4 sm:$0xff]   ;;  %v5866_v12 = vld [vmem:[#allocation2 + $0x140] ss:$8 sps:$4 sm:$0xff]   ;;  %v5871_v46 = vld [vmem:[#allocation2 + $0x154] ss:$8 sps:$4 sm:$0xff]  }
 0x2df   :  { %5632 = vmatprep.mubr.msk.bf16.mxu1 %vm3114_vm14, %v3066_v28  ;;  %v3064_v8 = vsel %vm7568_vm15, %v3051_v50, 0.0  ;;  %v3239_v40 = vsel %vm1839_vm12, %v7479_v45, %v3238_v17  ;;  %v3245_v26 = vsel %vm1837_vm11, %v7450_v52, %v3244_v51  ;;  %v3253_v18 = vsel %vm1839_vm12, %v3224_v29, %v3252_v38  ;;  %v5886_v58 = vld [vmem:[#allocation2 + $0x1a4] ss:$8 sps:$4 sm:$0xff]   ;;  %v5941_v41 = vld [vmem:[#allocation2 + $0x2c0] ss:$8 sps:$4 sm:$0xff]  }
 0x2e0   :  { %v3067_v30 = vpack.c.bf16 %v3050_v47, %v3064_v8  ;;  %v3240_v57 = vsel %vm1841_vm13, %v3209_v9, %v3239_v40  ;;  %v3246_v14 = vsel %vm1839_vm12, %v7452_v35, %v3245_v26  ;;  %v3254_v5 = vsel %vm1841_vm13, %v3225_v1, %v3253_v18  ;;  %v2893_v9 = vld [vmem:[%s7892_s2 + $0x5] ss:$0 sm:$0xff]  ;;  %v5942_v19 = vld [vmem:[#allocation2 + $0x640] ss:$8 sps:$4 sm:$0xff]  }
 0x2e1   :  { %v3247_v0 = vsel %vm1841_vm13, %v3217_v23, %v3246_v14  ;;  %v3259_v45 = vsel %vm1837_vm11, %v7552_v53, %v7556_v42  ;;  %v3070_v60 = vrot.slane %v3034_v61, 1  ;;  %v3074_v52 = vsel %vm378_vm1, %v3068_v34, %v3069_v11  ;;  %v5863_v34 = vld [vmem:[#allocation2 + $0x130] ss:$8 sps:$4 sm:$0xff]  }
 0x2e2   :  { %5633 = vmatmul.mubr.msk.bf16.vlgmr.msra.gmra.mrb[0].mxu1 %vm3114_vm14, %v3067_v30  ;;  %v3262_v29 = vpack.c.b16 %v3247_v0, %v3240_v57  ;;  %v3260_v15 = vsel %vm1839_vm12, %v7544_v4, %v3259_v45  ;;  %v3087_v35 = vsel %vm7586_vm2, %v3075_v24, 0.0  ;;  %3866 = vmatpush1.bf16.msra.mxu0 %v5863_v34  ;;  %v3689_v24 = vand.u32 7, %v6096_v2 }
 0x2e3   :  { %5637 = vmatpush3.bf16.msra.mxu1 %v7342_v21  ;;  %v3261_v27 = vsel %vm1841_vm13, %v3233_v39, %v3260_v15  ;;  %v3073_v53 = vsel %vm378_vm1, %v3069_v11, %v3070_v60  ;;  %v3072_v42 = vsel %vm378_vm1, %v3070_v60, %v3071_v36  ;;  %v5855_v21 = vld [vmem:[#allocation2 + $0xd0] ss:$8 sps:$4 sm:$0xff]   ;;  %v5868_v39 = vld [vmem:[#allocation2 + $0x144] ss:$8 sps:$4 sm:$0xff]   ;;  %v3696_v61 = vand.u32 7, %v7356_v43 }
 0x2e4   :  { %5644 = vmatprep.mubr.msk.bf16.mxu1 %vm3114_vm14, %v3262_v29  ;;  %5638 = vmatprep.subr.bf16.mxu1 %v5853_v49  ;;  %v3263_v31 = vpack.c.b16 %v3261_v27, %v3254_v5  ;;  %v3085_v4 = vsel %vm7595_vm3, %v3073_v53, 0.0  ;;  %v3089_v59 = vpack.c.bf16 %v3087_v35, %v3072_v42  ;;  %v5869_v11 = vld [vmem:[#allocation2 + $0x150] ss:$8 sps:$4 sm:$0xff]   ;;  %v5874_v36 = vld [vmem:[#allocation2 + $0x164] ss:$8 sps:$4 sm:$0xff]   ;;  %vm7669_vm4 = vcmp.ne.s32.totalorder %v3689_v24, 7 }
 0x2e5   :  { %v3088_v1 = vpack.c.bf16 %v3085_v4, %v3074_v52  ;;  %3867 = vmatprep.subr.bf16.mxu0 %v5868_v39  ;;  %vm7675_vm5 = vcmp.ne.s32.totalorder %v3696_v61, 7  ;;  %vm7756_vm15 = vcmp.ne.s32.totalorder %v3696_v61, 0 }
 0x2e6   :  { %3868 = vmatpush1.bf16.msra.mxu0 %v5866_v12  ;;  %vm5380_vm6 = vmpackc.low %vm7675_vm5, %vm7669_vm4 }
 0x2e7   :  { %5639 = vmatpush3.bf16.msra.mxu1 %v5853_v49  ;;  %3869 = vmatprep.subr.bf16.mxu0 %v5871_v46 }
 0x2e8   :  { %5640 = vmatprep.subr.bf16.mxu1 %v5854_v48 }
 0x2ea   :  { %3870 = vmatpush1.bf16.msra.mxu0 %v5869_v11 }
 0x2eb   :  { %5641 = vmatpush3.bf16.msra.mxu1 %v5854_v48  ;;  %3871 = vmatprep.subr.bf16.mxu0 %v5874_v36 }
 0x2ec   :  { %5642 = vmatprep.subr.bf16.mxu1 %v5855_v21 }
 0x2ee   :  { %3872 = vmatpush1.bf16.msra.mxu0 %v5872_v7 }
 0x2ef   :  { %5643 = vmatpush3.bf16.msra.mxu1 %v5855_v21  ;;  %3873 = vmatprep.subr.bf16.mxu0 %v5877_v62 }
 0x2f0   :  { %5648 = vmatprep.subr.bf16.mxu1 %v5856_v10 }
 0x2f2   :  { %5645 = vmatmul.mubr.msk.bf16.vlgmr.msra.gmra.mrb[0].mxu1 %vm3114_vm14, %v3263_v31  ;;  %3874 = vmatpush1.bf16.msra.mxu0 %v5875_v25 }
 0x2f3   :  { %5649 = vmatpush3.bf16.msra.mxu1 %v5856_v10  ;;  %5656 = vmatprep.mubr.msk.bf16.mxu1 %vm3114_vm14, %v3088_v1 }
 0x2f4   :  { %5650 = vmatprep.subr.bf16.mxu1 %v5857_v6  ;;  %3875 = vmatprep.subr.bf16.mxu0 %v5880_v13 }
 0x2f6   :  { %3876 = vmatpush1.bf16.msra.mxu0 %v5878_v33 }
 0x2f7   :  { %5651 = vmatpush3.bf16.msra.mxu1 %v5857_v6  ;;  %3877 = vmatprep.subr.bf16.mxu0 %v5883_v20 }
 0x2f8   :  { %5652 = vmatprep.subr.bf16.mxu1 %v5858_v55 }
 0x2fa   :  { %3878 = vmatpush1.bf16.msra.mxu0 %v5881_v22 }
 0x2fb   :  { %5653 = vmatpush3.bf16.msra.mxu1 %v5858_v55  ;;  %4034 = vmatprep.subr.bf16.mxu0 %v5886_v58 }
 0x2fc   :  { %5654 = vmatprep.subr.bf16.mxu1 %v5859_v44 }
 0x2ff   :  { %5655 = vmatpush3.bf16.msra.mxu1 %v5859_v44 }
 0x302   :  { %5657 = vmatmul.mubr.msk.bf16.vlgmr.msra.gmra.mrb[0].mxu1 %vm3114_vm14, %v3089_v59  ;;  %vm3522_vm14 = vcmask 1041408  }
 0x3d5   :  { %v5658_v23 = vpop.f32.mrb[0].mxu1 }
 0x3d6   :  { %v3428_v28 = vadd.f32 %v5658_v23, %v2893_v9  ;;  %v3407_v63 = vpop.f32.mrb[1].mxu1 }
 0x3d7   :  { %v3426_v56 = vadd.f32 %v3407_v63, %v2893_v9  ;;  %v5659_v38 = vpop.f32.mrb[2].mxu1 }
 0x3d8   :  { %v3432_v47 = vmax.f32 %v3428_v28, 0.0  ;;  %v3429_v50 = vadd.f32 %v5659_v38, %v2893_v9  ;;  %v3410_v17 = vpop.f32.mrb[3].mxu1 }
 0x3d9   :  { %v3430_v51 = vmax.f32 %v3426_v56, 0.0  ;;  %v3427_v8 = vadd.f32 %v3410_v17, %v2893_v9 }
 0x3da   :  { %v3472_v40 = vcombine.high %v3432_v47, %v3432_v47  ;;  %v3479_v26 = vrot.slane %v3432_v47, %v8041_v54  ;;  %v7687_v18 = vmax.f32 %v3429_v50, 0.0 }
 0x3db   :  { %v3438_v30 = vcombine.high %v3430_v51, %v3430_v51  ;;  %v3445_v57 = vrot.slane %v3430_v51, %v8041_v54  ;;  %v7690_v14 = vmax.f32 %v3427_v8, 0.0 }
 0x3dc   :  { %v3486_v49 = vrot.slane %v3472_v40, %v8041_v54  ;;  %v3487_v5 = vcombine.high %v3479_v26, %v3479_v26  ;;  %v3579_v0 = vsel %vm3522_vm14, %v3479_v26, -inf  ;;  %v3489_v45 = vcombine.high %v7687_v18, %v7687_v18 }
 0x3dd   :  { %v3580_v60 = vrot.slane %v3579_v0, 4  ;;  %v3452_v52 = vrot.slane %v3438_v30, %v8041_v54  ;;  %v3453_v29 = vcombine.high %v3445_v57, %v3445_v57  ;;  %v3523_v15 = vsel %vm3522_vm14, %v3445_v57, -inf }
 0x3de   :  { %v3488_v35 = vcombine.high %v3486_v49, %v3486_v49  ;;  %v3586_v27 = vsel %vm3522_vm14, %v3487_v5, -inf  ;;  %v3593_v53 = vsel %vm3522_vm14, %v3486_v49, -inf  ;;  %v3524_v42 = vrot.slane %v3523_v15, 4 }
 0x3df   :  { %v3581_v48 = vmax.f32 %v3579_v0, %v3580_v60  ;;  %v3587_v31 = vrot.slane %v3586_v27, 4  ;;  %v3594_v4 = vrot.slane %v3593_v53, 4  ;;  %v3454_v59 = vcombine.high %v3452_v52, %v3452_v52 }
 0x3e0   :  { %v3600_v1 = vsel %vm3522_vm14, %v3488_v35, -inf  ;;  %v3525_v21 = vmax.f32 %v3523_v15, %v3524_v42  ;;  %v3530_v10 = vsel %vm3522_vm14, %v3453_v29, -inf  ;;  %v3537_v6 = vsel %vm3522_vm14, %v3452_v52, -inf }
 0x3e1   :  { %v3582_v55 = vrot.slane %v3581_v48, 2  ;;  %v3588_v44 = vmax.f32 %v3586_v27, %v3587_v31  ;;  %v3595_v16 = vmax.f32 %v3593_v53, %v3594_v4  ;;  %v3601_v32 = vrot.slane %v3600_v1, 4 }
 0x3e2   :  { %v3526_v3 = vrot.slane %v3525_v21, 2  ;;  %v3531_v34 = vrot.slane %v3530_v10, 4  ;;  %v3538_v39 = vrot.slane %v3537_v6, 4  ;;  %v3544_v12 = vsel %vm3522_vm14, %v3454_v59, -inf }
 0x3e3   :  { %v3583_v46 = vmax.f32 %v3581_v48, %v3582_v55  ;;  %v3589_v11 = vrot.slane %v3588_v44, 2  ;;  %v3596_v36 = vrot.slane %v3595_v16, 2  ;;  %v3602_v7 = vmax.f32 %v3600_v1, %v3601_v32 }
 0x3e4   :  { %v3527_v62 = vmax.f32 %v3525_v21, %v3526_v3  ;;  %v3532_v25 = vmax.f32 %v3530_v10, %v3531_v34  ;;  %v3539_v13 = vmax.f32 %v3537_v6, %v3538_v39  ;;  %v3545_v33 = vrot.slane %v3544_v12, 4 }
 0x3e5   :  { %v3584_v22 = vrot.slane %v3583_v46, 1  ;;  %v3590_v20 = vmax.f32 %v3588_v44, %v3589_v11  ;;  %v3597_v58 = vmax.f32 %v3595_v16, %v3596_v36  ;;  %v3603_v9 = vrot.slane %v3602_v7, 2 }
 0x3e6   :  { %v3528_v23 = vrot.slane %v3527_v62, 1  ;;  %v3533_v28 = vrot.slane %v3532_v25, 2  ;;  %v3540_v63 = vrot.slane %v3539_v13, 2  ;;  %v3546_v56 = vmax.f32 %v3544_v12, %v3545_v33 }
 0x3e7   :  { %v3585_v38 = vmax.f32 %v3583_v46, %v3584_v22  ;;  %v3591_v47 = vrot.slane %v3590_v20, 1  ;;  %v3598_v50 = vrot.slane %v3597_v58, 1  ;;  %v3604_v17 = vmax.f32 %v3602_v7, %v3603_v9 }
 0x3e8   :  { %v3529_v51 = vmax.f32 %v3527_v62, %v3528_v23  ;;  %v3534_v8 = vmax.f32 %v3532_v25, %v3533_v28  ;;  %v3541_v40 = vmax.f32 %v3539_v13, %v3540_v63  ;;  %v3547_v26 = vrot.slane %v3546_v56, 2 }
 0x3e9   :  { %v3592_v30 = vmax.f32 %v3590_v20, %v3591_v47  ;;  %v3599_v57 = vmax.f32 %v3597_v58, %v3598_v50  ;;  %v3605_v49 = vrot.slane %v3604_v17, 1  ;;  %v3721_v5 = vpack.c.bf16 %v3585_v38, %v3585_v38 }
 0x3ea   :  { %v3535_v0 = vrot.slane %v3534_v8, 1  ;;  %v3542_v60 = vrot.slane %v3541_v40, 1  ;;  %v3548_v52 = vmax.f32 %v3546_v56, %v3547_v26  ;;  %v3713_v29 = vpack.c.bf16 %v3529_v51, %v3529_v51 }
 0x3eb   :  { %v3606_v15 = vmax.f32 %v3604_v17, %v3605_v49  ;;  %v3722_v35 = vpack.c.bf16 %v3592_v30, %v3592_v30  ;;  %v3723_v27 = vpack.c.bf16 %v3599_v57, %v3599_v57  ;;  %v3752_v53 = vsel %vm1829_vm7, %v3592_v30, %v3585_v38 }
 0x3ec   :  { %v3753_v42 = vsel %vm1831_vm8, %v3599_v57, %v3752_v53  ;;  %v3930_v48 = vunpack.c.l.b16 %v3721_v5  ;;  %v3536_v31 = vmax.f32 %v3534_v8, %v3535_v0  ;;  %v3543_v4 = vmax.f32 %v3541_v40, %v3542_v60 }
 0x3ed   :  { %v3724_v59 = vpack.c.bf16 %v3606_v15, %v3606_v15  ;;  %v3931_v1 = vunpack.c.l.b16 %v3722_v35  ;;  %v3932_v21 = vunpack.c.l.b16 %v3723_v27  ;;  %v3549_v10 = vrot.slane %v3548_v52, 1 }
 0x3ee   :  { %v3714_v6 = vpack.c.bf16 %v3536_v31, %v3536_v31  ;;  %v3715_v55 = vpack.c.bf16 %v3543_v4, %v3543_v4  ;;  %v3745_v44 = vsel %vm1829_vm7, %v3536_v31, %v3529_v51  ;;  %v3922_v16 = vunpack.c.l.b16 %v3713_v29 }
 0x3ef   :  { %v7707_v32 = vunpack.c.l.b16 %v3724_v59  ;;  %v3945_v3 = vsel %vm1829_vm7, %v3931_v1, %v3930_v48  ;;  %v7710_v34 = vmax.f32 %v3548_v52, %v3549_v10  ;;  %v7713_v39 = vsel %vm1831_vm8, %v3543_v4, %v3745_v44 }
 0x3f0   :  { %v7716_v12 = vsel %vm1831_vm8, %v3932_v21, %v3945_v3  ;;  %v3923_v46 = vunpack.c.l.b16 %v3714_v6  ;;  %v3924_v11 = vunpack.c.l.b16 %v3715_v55  ;;  %v3496_v36 = vrot.slane %v7687_v18, %v8041_v54 }
 0x3f1   :  { %v3716_v7 = vpack.c.bf16 %v7710_v34, %v7710_v34  ;;  %v3503_v62 = vrot.slane %v3489_v45, %v8041_v54  ;;  %v3754_v25 = vsel %vm1833_vm9, %v3606_v15, %v3753_v42  ;;  %v3455_v13 = vcombine.high %v7690_v14, %v7690_v14 }
 0x3f2   :  { %v3938_v33 = vsel %vm1829_vm7, %v3923_v46, %v3922_v16  ;;  %v3504_v22 = vcombine.high %v3496_v36, %v3496_v36  ;;  %v3607_v20 = vsel %vm3522_vm14, %v3496_v36, -inf  ;;  %v3462_v58 = vrot.slane %v7690_v14, %v8041_v54 }
 0x3f3   :  { %v7733_v9 = vunpack.c.l.b16 %v3716_v7  ;;  %v7736_v23 = vsel %vm1831_vm8, %v3924_v11, %v3938_v33  ;;  %v3505_v18 = vcombine.high %v3503_v62, %v3503_v62  ;;  %v3608_v45 = vrot.slane %v3607_v20, 4 }
 0x3f4   :  { %v3614_v28 = vsel %vm3522_vm14, %v3504_v22, -inf  ;;  %v3621_v63 = vsel %vm3522_vm14, %v3503_v62, -inf  ;;  %v3469_v56 = vrot.slane %v3455_v13, %v8041_v54  ;;  %v3470_v38 = vcombine.high %v3462_v58, %v3462_v58 }
 0x3f5   :  { %v3609_v47 = vmax.f32 %v3607_v20, %v3608_v45  ;;  %v3615_v50 = vrot.slane %v3614_v28, 4  ;;  %v3622_v17 = vrot.slane %v3621_v63, 4  ;;  %v3628_v51 = vsel %vm3522_vm14, %v3505_v18, -inf }
 0x3f6   :  { %v3629_v14 = vrot.slane %v3628_v51, 4  ;;  %v3471_v8 = vcombine.high %v3469_v56, %v3469_v56  ;;  %v3551_v40 = vsel %vm3522_vm14, %v3462_v58, -inf  ;;  %v3558_v26 = vsel %vm3522_vm14, %v3470_v38, -inf }
 0x3f7   :  { %v3610_v30 = vrot.slane %v3609_v47, 2  ;;  %v3616_v57 = vmax.f32 %v3614_v28, %v3615_v50  ;;  %v3623_v49 = vmax.f32 %v3621_v63, %v3622_v17  ;;  %v3552_v5 = vrot.slane %v3551_v40, 4 }
 0x3f8   :  { %v3630_v0 = vmax.f32 %v3628_v51, %v3629_v14  ;;  %v3559_v60 = vrot.slane %v3558_v26, 4  ;;  %v3565_v52 = vsel %vm3522_vm14, %v3469_v56, -inf  ;;  %v3572_v29 = vsel %vm3522_vm14, %v3471_v8, -inf  ;;  %v5899_v51 = vld [vmem:[#allocation2 + $0x1f0] ss:$8 sps:$4 sm:$0xff]  }
 0x3f9   :  { %v3611_v15 = vmax.f32 %v3609_v47, %v3610_v30  ;;  %v3617_v35 = vrot.slane %v3616_v57, 2  ;;  %v3624_v27 = vrot.slane %v3623_v49, 2  ;;  %v3553_v53 = vmax.f32 %v3551_v40, %v3552_v5  ;;  %v5904_v14 = vld [vmem:[#allocation2 + $0x204] ss:$8 sps:$4 sm:$0xff]  }
 0x3fa   :  { %v3631_v42 = vrot.slane %v3630_v0, 2  ;;  %v3560_v48 = vmax.f32 %v3558_v26, %v3559_v60  ;;  %v3566_v31 = vrot.slane %v3565_v52, 4  ;;  %v3573_v4 = vrot.slane %v3572_v29, 4 }
 0x3fb   :  { %v3612_v59 = vrot.slane %v3611_v15, 1  ;;  %v3618_v1 = vmax.f32 %v3616_v57, %v3617_v35  ;;  %v3625_v21 = vmax.f32 %v3623_v49, %v3624_v27  ;;  %v3554_v10 = vrot.slane %v3553_v53, 2 }
 0x3fc   :  { %v3632_v6 = vmax.f32 %v3630_v0, %v3631_v42  ;;  %v3561_v55 = vrot.slane %v3560_v48, 2  ;;  %v3567_v44 = vmax.f32 %v3565_v52, %v3566_v31  ;;  %v3574_v16 = vmax.f32 %v3572_v29, %v3573_v4 }
 0x3fd   :  { %v3613_v3 = vmax.f32 %v3611_v15, %v3612_v59  ;;  %v3619_v46 = vrot.slane %v3618_v1, 1  ;;  %v3626_v11 = vrot.slane %v3625_v21, 1  ;;  %v3555_v36 = vmax.f32 %v3553_v53, %v3554_v10 }
 0x3fe   :  { %v3633_v7 = vrot.slane %v3632_v6, 1  ;;  %v3562_v62 = vmax.f32 %v3560_v48, %v3561_v55  ;;  %v3568_v13 = vrot.slane %v3567_v44, 2  ;;  %v3575_v33 = vrot.slane %v3574_v16, 2 }
 0x3ff   :  { %v3620_v22 = vmax.f32 %v3618_v1, %v3619_v46  ;;  %v3627_v20 = vmax.f32 %v3625_v21, %v3626_v11  ;;  %v3725_v58 = vpack.c.bf16 %v3613_v3, %v3613_v3  ;;  %v3755_v18 = vsel %vm1835_vm10, %v3613_v3, %v3754_v25  ;;  %v5884_v11 = vld [vmem:[#allocation2 + $0x1a0] ss:$8 sps:$4 sm:$0xff]  }
 0x400   :  { %v3634_v45 = vmax.f32 %v3632_v6, %v3633_v7  ;;  %v3556_v28 = vrot.slane %v3555_v36, 1  ;;  %v3563_v63 = vrot.slane %v3562_v62, 1  ;;  %v3569_v56 = vmax.f32 %v3567_v44, %v3568_v13  ;;  %v5889_v13 = vld [vmem:[#allocation2 + $0x1b4] ss:$8 sps:$4 sm:$0xff]  }
 0x401   :  { %v3726_v38 = vpack.c.bf16 %v3620_v22, %v3620_v22  ;;  %v3727_v47 = vpack.c.bf16 %v3627_v20, %v3627_v20  ;;  %v3756_v50 = vsel %vm1837_vm11, %v3620_v22, %v3755_v18  ;;  %v3934_v17 = vunpack.c.l.b16 %v3725_v58 }
 0x402   :  { %vm7750_vm8 = vcmp.ne.s32.totalorder %v3689_v24, 0  ;;  %v3757_v25 = vsel %vm1839_vm12, %v3627_v20, %v3756_v50  ;;  %v3557_v8 = vmax.f32 %v3555_v36, %v3556_v28  ;;  %v3564_v40 = vmax.f32 %v3562_v62, %v3563_v63  ;;  %v5892_v28 = vld [vmem:[#allocation2 + $0x1c4] ss:$8 sps:$4 sm:$0xff]   ;;  %v5890_v63 = vld [vmem:[#allocation2 + $0x1c0] ss:$8 sps:$4 sm:$0xff]  }
 0x403   :  { %v3570_v26 = vrot.slane %v3569_v56, 1  ;;  %v3758_v30 = vsel %vm1841_vm13, %v3634_v45, %v3757_v25  ;;  %v3935_v57 = vunpack.c.l.b16 %v3726_v38  ;;  %v3936_v49 = vunpack.c.l.b16 %v3727_v47  ;;  %v5893_v38 = vld [vmem:[#allocation2 + $0x1d0] ss:$8 sps:$4 sm:$0xff]   ;;  %v5898_v47 = vld [vmem:[#allocation2 + $0x1e4] ss:$8 sps:$4 sm:$0xff]  }
 0x404   :  { %v3576_v5 = vmax.f32 %v3574_v16, %v3575_v33  ;;  %v3762_v24 = vrot.slane %v3758_v30, 7  ;;  %v3717_v60 = vpack.c.bf16 %v3557_v8, %v3557_v8  ;;  %v3718_v52 = vpack.c.bf16 %v3564_v40, %v3564_v40  ;;  %v5896_v50 = vld [vmem:[#allocation2 + $0x1e0] ss:$8 sps:$4 sm:$0xff]  }
 0x405   :  { %v3571_v0 = vmax.f32 %v3569_v56, %v3570_v26  ;;  %v3747_v43 = vsel %vm1833_vm9, %v7710_v34, %v7713_v39  ;;  %v3728_v61 = vpack.c.bf16 %v3634_v45, %v3634_v45  ;;  %v3940_v15 = vsel %vm1833_vm9, %v7733_v9, %v7736_v23  ;;  %v5887_v45 = vld [vmem:[#allocation2 + $0x1b0] ss:$8 sps:$4 sm:$0xff]   ;;  %v5895_v56 = vld [vmem:[#allocation2 + $0x1d4] ss:$8 sps:$4 sm:$0xff]   ;;  %v5902_v25 = vld [vmem:[#allocation2 + $0x200] ss:$8 sps:$4 sm:$0xff]  }
 0x406   :  { %v3577_v29 = vrot.slane %v3576_v5, 1  ;;  %v3748_v27 = vsel %vm1835_vm10, %v3557_v8, %v3747_v43  ;;  %v3926_v53 = vunpack.c.l.b16 %v3717_v60  ;;  %v3927_v42 = vunpack.c.l.b16 %v3718_v52  ;;  %v5907_v8 = vld [vmem:[#allocation2 + $0x214] ss:$8 sps:$4 sm:$0xff]   ;;  %v5910_v26 = vld [vmem:[#allocation2 + $0x224] ss:$8 sps:$4 sm:$0xff]  }
 0x407   :  { %v3719_v35 = vpack.c.bf16 %v3571_v0, %v3571_v0  ;;  %v3749_v31 = vsel %vm1837_vm11, %v3564_v40, %v3748_v27  ;;  %v3937_v4 = vunpack.c.l.b16 %v3728_v61  ;;  %v3947_v59 = vsel %vm1833_vm9, %v7707_v32, %v7716_v12  ;;  %vm5345_vm9 = vmpackc.low %vm7756_vm15, %vm7750_vm8  ;;  %v5905_v40 = vld [vmem:[#allocation2 + $0x210] ss:$8 sps:$4 sm:$0xff]   ;;  %v5922_v52 = vld [vmem:[#allocation2 + $0x264] ss:$8 sps:$4 sm:$0xff]  }
 0x408   :  { %v3578_v48 = vmax.f32 %v3576_v5, %v3577_v29  ;;  %v3750_v34 = vsel %vm1839_vm12, %v3571_v0, %v3749_v31  ;;  %v3941_v1 = vsel %vm1835_vm10, %v3926_v53, %v3940_v15  ;;  %v3948_v9 = vsel %vm1835_vm10, %v3934_v17, %v3947_v59  ;;  %v5901_v17 = vld [vmem:[#allocation2 + $0x1f4] ss:$8 sps:$4 sm:$0xff]   ;;  %v5916_v5 = vld [vmem:[#allocation2 + $0x244] ss:$8 sps:$4 sm:$0xff]   ;;  %v5917_v60 = vld [vmem:[#allocation2 + $0x250] ss:$8 sps:$4 sm:$0xff]  }
 0x409   :  { %v3928_v39 = vunpack.c.l.b16 %v3719_v35  ;;  %v3942_v10 = vsel %vm1837_vm11, %v3927_v42, %v3941_v1  ;;  %v3949_v6 = vsel %vm1837_vm11, %v3935_v57, %v3948_v9  ;;  %v3773_v46 = vrot.slane %v3758_v30, 1  ;;  %v5908_v30 = vld [vmem:[#allocation2 + $0x220] ss:$8 sps:$4 sm:$0xff]   ;;  %v5913_v57 = vld [vmem:[#allocation2 + $0x234] ss:$8 sps:$4 sm:$0xff]  }
 0x40a   :  { %v3751_v23 = vsel %vm1841_vm13, %v3578_v48, %v3750_v34  ;;  %v3720_v21 = vpack.c.bf16 %v3578_v48, %v3578_v48  ;;  %v3950_v16 = vsel %vm1839_vm12, %v3936_v49, %v3949_v6  ;;  %v5911_v49 = vld [vmem:[#allocation2 + $0x230] ss:$8 sps:$4 sm:$0xff]   ;;  %v5919_v0 = vld [vmem:[#allocation2 + $0x254] ss:$8 sps:$4 sm:$0xff]   ;;  %v5920_v29 = vld [vmem:[#allocation2 + $0x260] ss:$8 sps:$4 sm:$0xff]  }
 0x40b   :  { %v3761_v55 = vrot.slane %v3751_v23, 7  ;;  %v3943_v44 = vsel %vm1839_vm12, %v3928_v39, %v3942_v10  ;;  %v3772_v32 = vrot.slane %v3751_v23, 1  ;;  %v3951_v3 = vsel %vm1841_vm13, %v3937_v4, %v3950_v16  ;;  %v5925_v43 = vld [vmem:[#allocation2 + $0x274] ss:$8 sps:$4 sm:$0xff]   ;;  %v5923_v61 = vld [vmem:[#allocation2 + $0x270] ss:$8 sps:$4 sm:$0xff]  }
 0x40c   :  { %v3929_v12 = vunpack.c.l.b16 %v3720_v21  ;;  %v5928_v15 = vld [vmem:[#allocation2 + $0x284] ss:$8 sps:$4 sm:$0xff]   ;;  %v5931_v35 = vld [vmem:[#allocation2 + $0x294] ss:$8 sps:$4 sm:$0xff]   ;;  %v5929_v27 = vld [vmem:[#allocation2 + $0x290] ss:$8 sps:$4 sm:$0xff]  }
 0x40d   :  { %v3763_v36 = vsel %vm329_vm0, %v3761_v55, %v3762_v24  ;;  %v3764_v7 = vsel %vm329_vm0, %v3762_v24, %v3761_v55  ;;  %v7793_v22 = vsel %vm378_vm1, %v3772_v32, %v3773_v46  ;;  %v7797_v20 = vsel %vm378_vm1, %v3773_v46, %v3772_v32  ;;  %v5914_v24 = vld [vmem:[#allocation2 + $0x240] ss:$8 sps:$4 sm:$0xff]   ;;  %v5935_v31 = vld [vmem:[#allocation2 + $0x330] ss:$8 sps:$4 sm:$0xff]  }
 0x40e   :  { %v5346_v62 = vpack.c.bf16 %v3763_v36, %v3764_v7  ;;  %v3944_v33 = vsel %vm1841_vm13, %v3929_v12, %v3943_v44  ;;  %v5381_v18 = vpack.c.bf16 %v7797_v20, %v7793_v22  ;;  %v5932_v53 = vld [vmem:[#allocation2 + $0x320] ss:$8 sps:$4 sm:$0xff]   ;;  %v5937_v59 = vld [vmem:[#allocation2 + $0x2b0] ss:$8 sps:$4 sm:$0xff]   ;;  %vm6060_vm0 = vmmov 0  }
 0x40f   :  { %v3952_v58 = vpack.c.b16 %v3951_v3, %v3944_v33  ;;  %5491 = vmatprep.subr.bf16.mxu1 %v5932_v53  ;;  %v5933_v42 = vld [vmem:[#allocation2 + $0x2a0] ss:$8 sps:$4 sm:$0xff]   ;;  %v5938_v34 = vld [vmem:[#allocation2 + $0x630] ss:$8 sps:$4 sm:$0xff]   ;;  %vm5275_vm1 = vcmask 74752  }
 0x410   :  { %5347 = vmatmul.mubr.msk.bf16.vlgmr.msra.gmra.mrb[8].mxu0 %vm5345_vm9, %v5346_v62  ;;  %5492 = vmatpush3.bf16.msra.mxu1 %v5933_v42  ;;  %v5934_v48 = vld [vmem:[#allocation2 + $0x620] ss:$8 sps:$4 sm:$0xff]   ;;  %v5940_v1 = vld [vmem:[#allocation2 + $0x5b0] ss:$8 sps:$4 sm:$0xff]  }
 0x411   :  { %4035 = vmatpush1.bf16.msra.mxu0 %v5884_v11  ;;  %4066 = vmatprep.mubr.bf16.mxu0 %v8040_v37  ;;  %v5936_v4 = vld [vmem:[#allocation2 + $0x5a0] ss:$8 sps:$4 sm:$0xff]   ;;  %v5943_v9 = vld [vmem:[#allocation2 + $0x350] ss:$8 sps:$4 sm:$0xff]  }
 0x412   :  { %4036 = vmatprep.subr.bf16.mxu0 %v5889_v13  ;;  %5493 = vmatprep.subr.bf16.mxu1 %v5935_v31  ;;  %v5939_v39 = vld [vmem:[#allocation2 + $0x340] ss:$8 sps:$4 sm:$0xff]   ;;  %v5945_v21 = vld [vmem:[#allocation2 + $0x2d0] ss:$8 sps:$4 sm:$0xff]  }
 0x413   :  { %v5944_v23 = vld [vmem:[#allocation2 + $0x5c0] ss:$8 sps:$4 sm:$0xff]   ;;  %v5946_v10 = vld [vmem:[#allocation2 + $0x650] ss:$8 sps:$4 sm:$0xff]  }
 0x414   :  { %5494 = vmatpush3.bf16.msra.mxu1 %v5937_v59  ;;  %v5947_v6 = vld [vmem:[#allocation2 + $0x360] ss:$8 sps:$4 sm:$0xff]   ;;  %v5948_v55 = vld [vmem:[#allocation2 + $0x5d0] ss:$8 sps:$4 sm:$0xff]  }
 0x415   :  { %4037 = vmatpush1.bf16.msra.mxu0 %v5887_v45  ;;  %5495 = vmatprep.subr.bf16.mxu1 %v5939_v39  ;;  %v5949_v44 = vld [vmem:[#allocation2 + $0x2e0] ss:$8 sps:$4 sm:$0xff]   ;;  %v5951_v32 = vld [vmem:[#allocation2 + $0x370] ss:$8 sps:$4 sm:$0xff]  }
 0x416   :  { %4038 = vmatprep.subr.bf16.mxu0 %v5892_v28  ;;  %v5950_v16 = vld [vmem:[#allocation2 + $0x660] ss:$8 sps:$4 sm:$0xff]   ;;  %v5953_v3 = vld [vmem:[#allocation2 + $0x2f0] ss:$8 sps:$4 sm:$0xff]   ;;  %v8062_v28 = vsub.s32 0, %v6096_v2 }
 0x417   :  { %v5952_v12 = vld [vmem:[#allocation2 + $0x5e0] ss:$8 sps:$4 sm:$0xff]   ;;  %v5954_v46 = vld [vmem:[#allocation2 + $0x670] ss:$8 sps:$4 sm:$0xff]  }
 0x418   :  { %5496 = vmatpush3.bf16.msra.mxu1 %v5941_v41  ;;  %v5955_v11 = vld [vmem:[#allocation2 + $0x380] ss:$8 sps:$4 sm:$0xff]   ;;  %v5956_v36 = vld [vmem:[#allocation2 + $0x5f0] ss:$8 sps:$4 sm:$0xff]  }
 0x419   :  { %4039 = vmatpush1.bf16.msra.mxu0 %v5890_v63  ;;  %5497 = vmatprep.subr.bf16.mxu1 %v5943_v9  ;;  %v5957_v7 = vld [vmem:[#allocation2 + $0x300] ss:$8 sps:$4 sm:$0xff]   ;;  %v5959_v13 = vld [vmem:[#allocation2 + $0x390] ss:$8 sps:$4 sm:$0xff]  }
 0x41a   :  { %4040 = vmatprep.subr.bf16.mxu0 %v5895_v56  ;;  %v5958_v62 = vld [vmem:[#allocation2 + $0x680] ss:$8 sps:$4 sm:$0xff]   ;;  %v5961_v22 = vld [vmem:[#allocation2 + $0x310] ss:$8 sps:$4 sm:$0xff]   ;;  %v8063_v56 = vsub.s32 1, %v6096_v2 }
 0x41b   :  { %v5960_v33 = vld [vmem:[#allocation2 + $0x600] ss:$8 sps:$4 sm:$0xff]   ;;  %v5962_v20 = vld [vmem:[#allocation2 + $0x690] ss:$8 sps:$4 sm:$0xff]  }
 0x41c   :  { %5498 = vmatpush3.bf16.msra.mxu1 %v5945_v21  ;;  %v5328_v45 = vld [vmem:[%s7892_s2 + $0x6] ss:$8 sm:$0x3] }
 0x41d   :  { %4041 = vmatpush1.bf16.msra.mxu0 %v5893_v38  ;;  %5499 = vmatprep.subr.bf16.mxu1 %v5947_v6  ;;  %v4208_v63 = vrot.slane %v5328_v45, %v8062_v28  ;;  %v4212_v38 = vrot.slane %v5328_v45, %v8063_v56 }
 0x41e   :  { %4042 = vmatprep.subr.bf16.mxu0 %v5898_v47 }
 0x420   :  { %5500 = vmatpush3.bf16.msra.mxu1 %v5949_v44 }
 0x421   :  { %4043 = vmatpush1.bf16.msra.mxu0 %v5896_v50  ;;  %5501 = vmatprep.subr.bf16.mxu1 %v5951_v32 }
 0x422   :  { %4044 = vmatprep.subr.bf16.mxu0 %v5901_v17 }
 0x424   :  { %5502 = vmatpush3.bf16.msra.mxu1 %v5953_v3 }
 0x425   :  { %4045 = vmatpush1.bf16.msra.mxu0 %v5899_v51  ;;  %5503 = vmatprep.subr.bf16.mxu1 %v5955_v11 }
 0x426   :  { %4046 = vmatprep.subr.bf16.mxu0 %v5904_v14 }
 0x428   :  { %5504 = vmatpush3.bf16.msra.mxu1 %v5957_v7 }
 0x429   :  { %4047 = vmatpush1.bf16.msra.mxu0 %v5902_v25  ;;  %5505 = vmatprep.subr.bf16.mxu1 %v5959_v13 }
 0x42a   :  { %4048 = vmatprep.subr.bf16.mxu0 %v5907_v8 }
 0x42c   :  { %5506 = vmatpush3.bf16.msra.mxu1 %v5961_v22 }
 0x42d   :  { %4049 = vmatpush1.bf16.msra.mxu0 %v5905_v40 }
 0x42e   :  { %4157 = vmatprep.subr.bf16.mxu0 %v5910_v26 }
 0x430   :  { %4067 = vmatmul.mubr.bf16.vlgmr.msra.gmra.mrb[8].mxu0 %v3952_v58  ;;  %v5963_v58 = vld [vmem:[#allocation2 + $0x420] ss:$8 sps:$4 sm:$0xff]  }
 0x431   :  { %4158 = vmatpush1.bf16.msra.mxu0 %v5908_v30  ;;  %4189 = vmatprep.mubr.bf16.mxu0 %v8040_v37  ;;  %v5926_v37 = vld [vmem:[#allocation2 + $0x280] ss:$8 sps:$4 sm:$0xff]  }
 0x432   :  { %4159 = vmatprep.subr.bf16.mxu0 %v5913_v57  ;;  %5513 = vmatprep.subr.bf16.mxu1 %v5963_v58 }
 0x435   :  { %4160 = vmatpush1.bf16.msra.mxu0 %v5911_v49 }
 0x436   :  { %4161 = vmatprep.subr.bf16.mxu0 %v5916_v5 }
 0x439   :  { %4162 = vmatpush1.bf16.msra.mxu0 %v5914_v24 }
 0x43a   :  { %4163 = vmatprep.subr.bf16.mxu0 %v5919_v0 }
 0x43d   :  { %4164 = vmatpush1.bf16.msra.mxu0 %v5917_v60 }
 0x43e   :  { %4165 = vmatprep.subr.bf16.mxu0 %v5922_v52 }
 0x441   :  { %4166 = vmatpush1.bf16.msra.mxu0 %v5920_v29 }
 0x442   :  { %4167 = vmatprep.subr.bf16.mxu0 %v5925_v43 }
 0x445   :  { %4168 = vmatpush1.bf16.msra.mxu0 %v5923_v61 }
 0x446   :  { %4169 = vmatprep.subr.bf16.mxu0 %v5928_v15 }
 0x449   :  { %4170 = vmatpush1.bf16.msra.mxu0 %v5926_v37 }
 0x44a   :  { %4171 = vmatprep.subr.bf16.mxu0 %v5931_v35 }
 0x44d   :  { %4172 = vmatpush1.bf16.msra.mxu0 %v5929_v27 }
 0x44e   :  { %5557 = vmatprep.subr.bf16.mxu0 %v5934_v48 }
 0x450   :  { %5382 = vmatmul.mubr.msk.bf16.vlgmr.msra.gmra.mrb[8].mxu0 %vm5380_vm6, %v5381_v18  ;;  %v5964_v18 = vld [vmem:[#allocation2 + $0x610] ss:$8 sps:$4 sm:$0xff]  }
 0x451   :  { %5558 = vmatpush3.bf16.msra.mxu0 %v5936_v4 }
 0x452   :  { %5559 = vmatprep.subr.bf16.mxu0 %v5938_v34 }
 0x455   :  { %5560 = vmatpush3.bf16.msra.mxu0 %v5940_v1 }
 0x456   :  { %5561 = vmatprep.subr.bf16.mxu0 %v5942_v19 }
 0x459   :  { %5562 = vmatpush3.bf16.msra.mxu0 %v5944_v23 }
 0x45a   :  { %5563 = vmatprep.subr.bf16.mxu0 %v5946_v10 }
 0x45d   :  { %5564 = vmatpush3.bf16.msra.mxu0 %v5948_v55 }
 0x45e   :  { %5565 = vmatprep.subr.bf16.mxu0 %v5950_v16 }
 0x461   :  { %5566 = vmatpush3.bf16.msra.mxu0 %v5952_v12 }
 0x462   :  { %5567 = vmatprep.subr.bf16.mxu0 %v5954_v46 }
 0x465   :  { %5568 = vmatpush3.bf16.msra.mxu0 %v5956_v36 }
 0x466   :  { %5569 = vmatprep.subr.bf16.mxu0 %v5958_v62 }
 0x469   :  { %5570 = vmatpush3.bf16.msra.mxu0 %v5960_v33 }
 0x46a   :  { %5571 = vmatprep.subr.bf16.mxu0 %v5962_v20 }
 0x46d   :  { %5572 = vmatpush3.bf16.msra.mxu0 %v5964_v18 }
 0x523   :  { %v4191_v47 = vpop.f32.mrb[8].mxu0 }
 0x524   :  { %v4215_v50 = vadd.f32 %v4208_v63, %v4191_v47  ;;  %v4193_v17 = vpop.f32.mrb[9].mxu0 }
 0x525   :  { %v4216_v51 = vadd.f32 %v4212_v38, %v4193_v17  ;;  %v4195_v14 = vpop.f32.mrb[10].mxu0 }
 0x526   :  { %v4219_v25 = vmax.f32 %v4215_v50, 0.0  ;;  %v4217_v8 = vadd.f32 %v4208_v63, %v4195_v14  ;;  %v4197_v40 = vpop.f32.mrb[11].mxu0 }
 0x527   :  { %v4220_v26 = vmax.f32 %v4216_v51, 0.0  ;;  %v4218_v30 = vadd.f32 %v4212_v38, %v4197_v40 }
 0x528   :  { %v4221_v57 = vmax.f32 %v4217_v8, 0.0 }
 0x529   :  { %v4227_v49 = vcombine.low %v4219_v25, %v4220_v26  ;;  %v4228_v5 = vcombine.high %v4219_v25, %v4220_v26  ;;  %v4222_v24 = vmax.f32 %v4218_v30, 0.0 }
 0x52b   :  { %v4235_v0 = vrot.slane %v4227_v49, %v8041_v54  ;;  %v4242_v60 = vrot.slane %v4228_v5, %v8041_v54  ;;  %v4245_v2 = vcombine.low %v4221_v57, %v4222_v24  ;;  %v4246_v52 = vcombine.high %v4221_v57, %v4222_v24 }
 0x52d   :  { %v4243_v29 = vcombine.high %v4235_v0, %v4235_v0  ;;  %v4244_v43 = vcombine.high %v4242_v60, %v4242_v60  ;;  %v4269_v61 = vrot.slane %v4235_v0, %v8041_v54  ;;  %v4285_v15 = vrot.slane %v4242_v60, %v8041_v54 }
 0x52e   :  { %v4253_v37 = vrot.slane %v4245_v2, %v8041_v54  ;;  %v4260_v4 = vrot.slane %v4246_v52, %v8041_v54 }
 0x52f   :  { %v4270_v35 = vcombine.high %v4269_v61, %v4269_v61  ;;  %v4277_v27 = vrot.slane %v4243_v29, %v8041_v54  ;;  %v4286_v53 = vcombine.high %v4285_v15, %v4285_v15  ;;  %v4293_v42 = vrot.slane %v4244_v43, %v8041_v54 }
 0x530   :  { %v4343_v48 = vsel %vm3522_vm14, %v4269_v61, -inf  ;;  %v4371_v31 = vsel %vm3522_vm14, %v4285_v15, -inf  ;;  %v4261_v59 = vcombine.high %v4253_v37, %v4253_v37  ;;  %v4262_v3 = vcombine.high %v4260_v4, %v4260_v4 }
 0x531   :  { %v4278_v34 = vcombine.high %v4277_v27, %v4277_v27  ;;  %v4294_v39 = vcombine.high %v4293_v42, %v4293_v42  ;;  %v4344_v1 = vrot.slane %v4343_v48, 4  ;;  %v4350_v41 = vsel %vm3522_vm14, %v4270_v35, -inf }
 0x532   :  { %v4351_v19 = vrot.slane %v4350_v41, 4  ;;  %v4357_v9 = vsel %vm3522_vm14, %v4277_v27, -inf  ;;  %v4372_v23 = vrot.slane %v4371_v31, 4  ;;  %v4378_v21 = vsel %vm3522_vm14, %v4286_v53, -inf }
 0x533   :  { %v4345_v10 = vmax.f32 %v4343_v48, %v4344_v1  ;;  %v4358_v6 = vrot.slane %v4357_v9, 4  ;;  %v4364_v55 = vsel %vm3522_vm14, %v4278_v34, -inf  ;;  %v4379_v44 = vrot.slane %v4378_v21, 4 }
 0x534   :  { %v4352_v16 = vmax.f32 %v4350_v41, %v4351_v19  ;;  %v4373_v32 = vmax.f32 %v4371_v31, %v4372_v23  ;;  %v4385_v12 = vsel %vm3522_vm14, %v4293_v42, -inf  ;;  %v4365_v36 = vrot.slane %v4364_v55, 4 }
 0x535   :  { %v4346_v46 = vrot.slane %v4345_v10, 2  ;;  %v4359_v11 = vmax.f32 %v4357_v9, %v4358_v6  ;;  %v4386_v7 = vrot.slane %v4385_v12, 4  ;;  %v4392_v13 = vsel %vm3522_vm14, %v4294_v39, -inf }
 0x536   :  { %v4374_v62 = vrot.slane %v4373_v32, 2  ;;  %v4301_v33 = vrot.slane %v4253_v37, %v8041_v54  ;;  %v4309_v22 = vrot.slane %v4261_v59, %v8041_v54  ;;  %v7836_v18 = vmax.f32 %v4378_v21, %v4379_v44 }
 0x537   :  { %v4347_v20 = vmax.f32 %v4345_v10, %v4346_v46  ;;  %v4360_v58 = vrot.slane %v4359_v11, 2  ;;  %v4387_v45 = vmax.f32 %v4385_v12, %v4386_v7  ;;  %v4317_v38 = vrot.slane %v4260_v4, %v8041_v54 }
 0x538   :  { %v7838_v28 = vmax.f32 %v4373_v32, %v4374_v62  ;;  %v4302_v63 = vcombine.high %v4301_v33, %v4301_v33  ;;  %v4310_v56 = vcombine.high %v4309_v22, %v4309_v22  ;;  %v4393_v17 = vrot.slane %v4392_v13, 4 }
 0x539   :  { %v4348_v47 = vrot.slane %v4347_v20, 1  ;;  %v4388_v50 = vrot.slane %v4387_v45, 2  ;;  %v4325_v51 = vrot.slane %v4262_v3, %v8041_v54  ;;  %v7842_v14 = vmax.f32 %v4359_v11, %v4360_v58 }
 0x53a   :  { %v4318_v25 = vcombine.high %v4317_v38, %v4317_v38  ;;  %v4399_v8 = vsel %vm3522_vm14, %v4301_v33, -inf  ;;  %v4406_v40 = vsel %vm3522_vm14, %v4302_v63, -inf  ;;  %v4376_v26 = vrot.slane %v7838_v28, 1 }
 0x53b   :  { %v4326_v30 = vcombine.high %v4325_v51, %v4325_v51  ;;  %v4400_v57 = vrot.slane %v4399_v8, 4  ;;  %v4407_v49 = vrot.slane %v4406_v40, 4  ;;  %v4413_v5 = vsel %vm3522_vm14, %v4309_v22, -inf }
 0x53c   :  { %v4420_v24 = vsel %vm3522_vm14, %v4310_v56, -inf  ;;  %v4427_v0 = vsel %vm3522_vm14, %v4317_v38, -inf  ;;  %v4434_v54 = vsel %vm3522_vm14, %v4318_v25, -inf  ;;  %v7851_v60 = vmax.f32 %v4387_v45, %v4388_v50 }
 0x53d   :  { %v4401_v2 = vmax.f32 %v4399_v8, %v4400_v57  ;;  %v4408_v52 = vmax.f32 %v4406_v40, %v4407_v49  ;;  %v4414_v29 = vrot.slane %v4413_v5, 4  ;;  %v4428_v43 = vrot.slane %v4427_v0, 4  ;;  %v5965_v8 = vld [vmem:[#allocation2 + $0x3a0] ss:$8 sps:$4 sm:$0xff]  }
 0x53e   :  { %v4435_v61 = vrot.slane %v4434_v54, 4  ;;  %v4441_v15 = vsel %vm3522_vm14, %v4325_v51, -inf  ;;  %v4448_v37 = vsel %vm3522_vm14, %v4326_v30, -inf  ;;  %v4421_v53 = vrot.slane %v4420_v24, 4 }
 0x53f   :  { %v4402_v35 = vrot.slane %v4401_v2, 2  ;;  %v4415_v27 = vmax.f32 %v4413_v5, %v4414_v29  ;;  %v4442_v42 = vrot.slane %v4441_v15, 4  ;;  %v4429_v48 = vmax.f32 %v4427_v0, %v4428_v43  ;;  %v5966_v5 = vld [vmem:[#allocation2 + $0x430] ss:$8 sps:$4 sm:$0xff]  }
 0x540   :  { %v4449_v31 = vrot.slane %v4448_v37, 4  ;;  %v4353_v4 = vrot.slane %v4352_v16, 2  ;;  %v4409_v59 = vrot.slane %v4408_v52, 2  ;;  %v4436_v1 = vmax.f32 %v4434_v54, %v4435_v61 }
 0x541   :  { %v4403_v34 = vmax.f32 %v4401_v2, %v4402_v35  ;;  %v4416_v39 = vrot.slane %v4415_v27, 2  ;;  %v4443_v41 = vmax.f32 %v4441_v15, %v4442_v42  ;;  %v4430_v19 = vrot.slane %v4429_v48, 2 }
 0x542   :  { %v4354_v9 = vmax.f32 %v4352_v16, %v4353_v4  ;;  %v4410_v23 = vmax.f32 %v4408_v52, %v4409_v59  ;;  %v4366_v21 = vmax.f32 %v4364_v55, %v4365_v36  ;;  %v4349_v44 = vmax.f32 %v4347_v20, %v4348_v47  ;;  %v5968_v4 = vld [vmem:[#allocation2 + $0x440] ss:$8 sps:$4 sm:$0xff]  }
 0x543   :  { %v4404_v10 = vrot.slane %v4403_v34, 1  ;;  %v4444_v6 = vrot.slane %v4443_v41, 2  ;;  %v4422_v32 = vmax.f32 %v4420_v24, %v4421_v53  ;;  %v4431_v12 = vmax.f32 %v4429_v48, %v4430_v19 }
 0x544   :  { %v4355_v3 = vrot.slane %v4354_v9, 1  ;;  %v4411_v46 = vrot.slane %v4410_v23, 1  ;;  %v4367_v11 = vrot.slane %v4366_v21, 2  ;;  %v4417_v7 = vmax.f32 %v4415_v27, %v4416_v39  ;;  %v5967_v27 = vld [vmem:[#allocation2 + $0x3b0] ss:$8 sps:$4 sm:$0xff]  }
 0x545   :  { %v4405_v62 = vmax.f32 %v4403_v34, %v4404_v10  ;;  %v4423_v33 = vrot.slane %v4422_v32, 2  ;;  %v4394_v22 = vmax.f32 %v4392_v13, %v4393_v17  ;;  %v4445_v58 = vmax.f32 %v4443_v41, %v4444_v6  ;;  %v5969_v10 = vld [vmem:[#allocation2 + $0x3c0] ss:$8 sps:$4 sm:$0xff]  }
 0x546   :  { %v4356_v45 = vmax.f32 %v4354_v9, %v4355_v3  ;;  %v4412_v63 = vmax.f32 %v4410_v23, %v4411_v46  ;;  %v4368_v56 = vmax.f32 %v4366_v21, %v4367_v11  ;;  %v4450_v36 = vmax.f32 %v4448_v37, %v4449_v31  ;;  %v5971_v11 = vld [vmem:[#allocation2 + $0x3d0] ss:$8 sps:$4 sm:$0xff]  }
 0x547   :  { %v4459_v16 = vsel %vm1829_vm7, %v4405_v62, %v4349_v44  ;;  %v4424_v38 = vmax.f32 %v4422_v32, %v4423_v33  ;;  %v4395_v55 = vrot.slane %v4394_v22, 2  ;;  %v4432_v50 = vrot.slane %v4431_v12, 1  ;;  %v5976_v62 = vld [vmem:[#allocation2 + $0x480] ss:$8 sps:$4 sm:$0xff]  }
 0x548   :  { %v4460_v20 = vsel %vm1829_vm7, %v4412_v63, %v4356_v45  ;;  %v4369_v47 = vrot.slane %v4368_v56, 1  ;;  %v4390_v51 = vrot.slane %v7851_v60, 1  ;;  %v4451_v13 = vrot.slane %v4450_v36, 2  ;;  %v5977_v33 = vld [vmem:[#allocation2 + $0x400] ss:$8 sps:$4 sm:$0xff]  }
 0x549   :  { %v4488_v25 = vpack.c.bf16 %v4460_v20, %v4460_v20  ;;  %v4425_v40 = vrot.slane %v4424_v38, 1  ;;  %v4396_v30 = vmax.f32 %v4394_v22, %v4395_v55  ;;  %v4487_v17 = vpack.c.bf16 %v4459_v16, %v4459_v16  ;;  %v5978_v22 = vld [vmem:[#allocation2 + $0x490] ss:$8 sps:$4 sm:$0xff]   ;;  %v5980_v45 = vld [vmem:[#allocation2 + $0x520] ss:$8 sps:$4 sm:$0xff]  }
 0x54a   :  { %v4370_v57 = vmax.f32 %v4368_v56, %v4369_v47  ;;  %v4446_v49 = vrot.slane %v4445_v58, 1  ;;  %v4362_v24 = vrot.slane %v7842_v14, 1  ;;  %v4452_v2 = vmax.f32 %v4450_v36, %v4451_v13  ;;  %v5981_v63 = vld [vmem:[#allocation2 + $0x4a0] ss:$8 sps:$4 sm:$0xff]   ;;  %v5982_v16 = vld [vmem:[#allocation2 + $0x530] ss:$8 sps:$4 sm:$0xff]  }
 0x54b   :  { %5040 = vmatprep.mubr.bf16.mxu1 %v4488_v25  ;;  %v4426_v0 = vmax.f32 %v4424_v38, %v4425_v40  ;;  %v4397_v54 = vrot.slane %v4396_v30, 1  ;;  %v4418_v52 = vrot.slane %v4417_v7, 1  ;;  %v4391_v29 = vmax.f32 %v7851_v60, %v4390_v51  ;;  %v5983_v55 = vld [vmem:[#allocation2 + $0x4b0] ss:$8 sps:$4 sm:$0xff]   ;;  %v5984_v36 = vld [vmem:[#allocation2 + $0x540] ss:$8 sps:$4 sm:$0xff]  }
 0x54c   :  { %5041 = vmatmul.mubr.bf16.vlgmr.msra.gmra.mrb[4].mxu1 %v4487_v17  ;;  %v4447_v43 = vmax.f32 %v4445_v58, %v4446_v49  ;;  %v4381_v61 = vrot.slane %v7836_v18, 2  ;;  %v4437_v15 = vrot.slane %v4436_v1, 2  ;;  %v4453_v35 = vrot.slane %v4452_v2, 1  ;;  %v5979_v58 = vld [vmem:[#allocation2 + $0x410] ss:$8 sps:$4 sm:$0xff]  }
 0x54d   :  { %5514 = vmatpush3.bf16.msra.mxu1 %v5965_v8  ;;  %v4468_v37 = vsel %vm1829_vm7, %v4426_v0, %v4370_v57  ;;  %v4363_v53 = vmax.f32 %v7842_v14, %v4362_v24  ;;  %v4419_v42 = vmax.f32 %v4417_v7, %v4418_v52  ;;  %v4398_v34 = vmax.f32 %v4396_v30, %v4397_v54  ;;  %v5975_v7 = vld [vmem:[#allocation2 + $0x3f0] ss:$8 sps:$4 sm:$0xff]   ;;  %v5988_v51 = vld [vmem:[#allocation2 + $0x560] ss:$8 sps:$4 sm:$0xff]  }
 0x54e   :  { %v4490_v48 = vpack.c.bf16 %v4468_v37, %v4468_v37  ;;  %v4483_v31 = vsel %vm1829_vm7, %v4447_v43, %v4391_v29  ;;  %5515 = vmatprep.subr.bf16.mxu1 %v5966_v5  ;;  %v4382_v59 = vmax.f32 %v7836_v18, %v4381_v61  ;;  %v4438_v60 = vmax.f32 %v4436_v1, %v4437_v15  ;;  %v5970_v18 = vld [vmem:[#allocation2 + $0x450] ss:$8 sps:$4 sm:$0xff]   ;;  %v5989_v25 = vld [vmem:[#allocation2 + $0x4e0] ss:$8 sps:$4 sm:$0xff]  }
 0x54f   :  { %v4454_v39 = vmax.f32 %v4452_v2, %v4453_v35  ;;  %v4467_v41 = vsel %vm1829_vm7, %v4419_v42, %v4363_v53  ;;  %v4377_v14 = vmax.f32 %v7838_v28, %v4376_v26  ;;  %v4433_v23 = vmax.f32 %v4431_v12, %v4432_v50  ;;  %v5972_v28 = vld [vmem:[#allocation2 + $0x460] ss:$8 sps:$4 sm:$0xff]   ;;  %v5974_v12 = vld [vmem:[#allocation2 + $0x470] ss:$8 sps:$4 sm:$0xff]  }
 0x550   :  { %5080 = vmatprep.mubr.bf16.mxu1 %v4490_v48  ;;  %v4383_v19 = vrot.slane %v4382_v59, 1  ;;  %v4439_v9 = vrot.slane %v4438_v60, 1  ;;  %v4493_v3 = vpack.c.bf16 %v4483_v31, %v4483_v31  ;;  %v5973_v26 = vld [vmem:[#allocation2 + $0x3e0] ss:$8 sps:$4 sm:$0xff]   ;;  %v4489_v56 = vpack.c.bf16 %v4467_v41, %v4467_v41  ;;  %v5986_v20 = vld [vmem:[#allocation2 + $0x550] ss:$8 sps:$4 sm:$0xff]  }
 0x551   :  { %v4484_v21 = vsel %vm1829_vm7, %v4454_v39, %v4398_v34  ;;  %5516 = vmatpush3.bf16.msra.mxu1 %v5967_v27  ;;  %v4475_v32 = vsel %vm1829_vm7, %v4433_v23, %v4377_v14  ;;  %v5985_v50 = vld [vmem:[#allocation2 + $0x4c0] ss:$8 sps:$4 sm:$0xff]   ;;  %v5987_v47 = vld [vmem:[#allocation2 + $0x4d0] ss:$8 sps:$4 sm:$0xff]   ;;  %v6059_v24 = vmov 0.0  }
 0x552   :  { %v4494_v6 = vpack.c.bf16 %v4484_v21, %v4484_v21  ;;  %5517 = vmatprep.subr.bf16.mxu1 %v5968_v4  ;;  %v4384_v1 = vmax.f32 %v4382_v59, %v4383_v19  ;;  %v4440_v44 = vmax.f32 %v4438_v60, %v4439_v9  ;;  %v5990_v8 = vld [vmem:[#allocation2 + $0x570] ss:$8 sps:$4 sm:$0xff]   ;;  %v5992_v30 = vld [vmem:[#allocation2 + $0x580] ss:$8 sps:$4 sm:$0xff]   ;;  %v4491_v49 = vpack.c.bf16 %v4475_v32, %v4475_v32  ;;  %v4623_v60 = vld [vmem:[%s7892_s2 + $0x7] ss:$0 sm:$0xff] }
 0x553   :  { %v5991_v40 = vld [vmem:[#allocation2 + $0x4f0] ss:$8 sps:$4 sm:$0xff]   ;;  %v5993_v13 = vld [vmem:[#allocation2 + $0x500] ss:$8 sps:$4 sm:$0xff]  }
 0x554   :  { %5160 = vmatprep.mubr.bf16.mxu0 %v4494_v6  ;;  %v4476_v46 = vsel %vm1829_vm7, %v4440_v44, %v4384_v1  ;;  %v5994_v17 = vld [vmem:[#allocation2 + $0x590] ss:$8 sps:$4 sm:$0xff]   ;;  %v5996_v5 = vld [vmem:[#allocation2 + $0x6a0] ss:$8 sps:$4 sm:$0xff]  }
 0x555   :  { %5161 = vmatmul.mubr.bf16.vlgmr.msra.gmra.mrb[12].mxu0 %v4493_v3  ;;  %5518 = vmatpush3.bf16.msra.mxu1 %v5969_v10  ;;  %v4492_v38 = vpack.c.bf16 %v4476_v46, %v4476_v46  ;;  %v5995_v57 = vld [vmem:[#allocation2 + $0x510] ss:$8 sps:$4 sm:$0xff]   ;;  %v5998_v54 = vld [vmem:[#allocation2 + $0x6c0] ss:$8 sps:$4 sm:$0xff]  }
 0x556   :  { %5519 = vmatprep.subr.bf16.mxu1 %v5970_v18  ;;  %v5997_v0 = vld [vmem:[#allocation2 + $0x6b0] ss:$8 sps:$4 sm:$0xff]   ;;  %v6000_v52 = vld [vmem:[#allocation2 + $0x6e0] ss:$8 sps:$4 sm:$0xff]  }
 0x557   :  { %v5999_v2 = vld [vmem:[#allocation2 + $0x6d0] ss:$8 sps:$4 sm:$0xff]   ;;  %v6002_v43 = vld [vmem:[#allocation2 + $0x700] ss:$8 sps:$4 sm:$0xff]  }
 0x558   :  { %v6001_v29 = vld [vmem:[#allocation2 + $0x6f0] ss:$8 sps:$4 sm:$0xff]  }
 0x559   :  { %5520 = vmatpush3.bf16.msra.mxu1 %v5971_v11  ;;  %v6003_v61 = vld [vmem:[#allocation2 + $0x710] ss:$8 sps:$4 sm:$0xff]  }
 0x55a   :  { %5521 = vmatprep.subr.bf16.mxu1 %v5972_v28  ;;  %v5185_v11 = vld [vmem:[%s7892_s2 + $0x10] ss:$0 sm:$0xff] }
 0x55d   :  { %5522 = vmatpush3.bf16.msra.mxu1 %v5973_v26 }
 0x55e   :  { %5523 = vmatprep.subr.bf16.mxu1 %v5974_v12 }
 0x561   :  { %5524 = vmatpush3.bf16.msra.mxu1 %v5975_v7 }
 0x562   :  { %5525 = vmatprep.subr.bf16.mxu1 %v5976_v62 }
 0x565   :  { %5526 = vmatpush3.bf16.msra.mxu1 %v5977_v33 }
 0x566   :  { %5527 = vmatprep.subr.bf16.mxu1 %v5978_v22 }
 0x569   :  { %5528 = vmatpush3.bf16.msra.mxu1 %v5979_v58 }
 0x56a   :  { %5535 = vmatprep.subr.bf16.mxu1 %v5980_v45 }
 0x56c   :  { %5081 = vmatmul.mubr.bf16.vlgmr.msra.gmra.mrb[8].mxu1 %v4489_v56 }
 0x56d   :  { %5536 = vmatpush3.bf16.msra.mxu1 %v5981_v63  ;;  %5120 = vmatprep.mubr.bf16.mxu1 %v4492_v38 }
 0x56e   :  { %5537 = vmatprep.subr.bf16.mxu1 %v5982_v16 }
 0x571   :  { %5538 = vmatpush3.bf16.msra.mxu1 %v5983_v55 }
 0x572   :  { %5539 = vmatprep.subr.bf16.mxu1 %v5984_v36 }
 0x575   :  { %5540 = vmatpush3.bf16.msra.mxu1 %v5985_v50 }
 0x576   :  { %5541 = vmatprep.subr.bf16.mxu1 %v5986_v20 }
 0x579   :  { %5542 = vmatpush3.bf16.msra.mxu1 %v5987_v47 }
 0x57a   :  { %5543 = vmatprep.subr.bf16.mxu1 %v5988_v51 }
 0x57d   :  { %5544 = vmatpush3.bf16.msra.mxu1 %v5989_v25 }
 0x57e   :  { %5545 = vmatprep.subr.bf16.mxu1 %v5990_v8 }
 0x581   :  { %5546 = vmatpush3.bf16.msra.mxu1 %v5991_v40 }
 0x582   :  { %5547 = vmatprep.subr.bf16.mxu1 %v5992_v30 }
 0x585   :  { %5548 = vmatpush3.bf16.msra.mxu1 %v5993_v13 }
 0x586   :  { %5549 = vmatprep.subr.bf16.mxu1 %v5994_v17 }
 0x589   :  { %5550 = vmatpush3.bf16.msra.mxu1 %v5995_v57 }
 0x58a   :  { %5660 = vmatprep.subr.bf16.mxu1 %v6059_v24 }
 0x58c   :  { %5121 = vmatmul.mubr.bf16.vlgmr.msra.gmra.mrb[12].mxu1 %v4491_v49 }
 0x58d   :  { %5661 = vmatpush3.bf16.msra.mxu1 %v5996_v5  ;;  %5676 = vmatprep.mubr.msk.bf16.mxu1 %vm6060_vm0, %v6059_v24 }
 0x58e   :  { %5662 = vmatprep.subr.bf16.mxu1 %v6059_v24 }
 0x591   :  { %5663 = vmatpush3.bf16.msra.mxu1 %v5997_v0 }
 0x592   :  { %5664 = vmatprep.subr.bf16.mxu1 %v6059_v24 }
 0x595   :  { %5665 = vmatpush3.bf16.msra.mxu1 %v5998_v54 }
 0x596   :  { %5666 = vmatprep.subr.bf16.mxu1 %v6059_v24 }
 0x599   :  { %5667 = vmatpush3.bf16.msra.mxu1 %v5999_v2 }
 0x59a   :  { %5668 = vmatprep.subr.bf16.mxu1 %v6059_v24 }
 0x59d   :  { %5669 = vmatpush3.bf16.msra.mxu1 %v6000_v52 }
 0x59e   :  { %5670 = vmatprep.subr.bf16.mxu1 %v6059_v24 }
 0x5a1   :  { %5671 = vmatpush3.bf16.msra.mxu1 %v6001_v29 }
 0x5a2   :  { %5672 = vmatprep.subr.bf16.mxu1 %v6059_v24 }
 0x5a5   :  { %5673 = vmatpush3.bf16.msra.mxu1 %v6002_v43 }
 0x5a6   :  { %5674 = vmatprep.subr.bf16.mxu1 %v6059_v24 }
 0x5a9   :  { %5675 = vmatpush3.bf16.msra.mxu1 %v6003_v61 }
 0x61f   :  { %v5507_v15 = vpop.f32.mrb[4].mxu1 }
 0x620   :  { %v5508_v37 = vpop.f32.mrb[5].mxu1 }
 0x621   :  { %v5509_v35 = vadd.f32 %v5508_v37, %v5507_v15  ;;  %v5510_v27 = vpop.f32.mrb[6].mxu1 }
 0x622   :  { %v5511_v53 = vpop.f32.mrb[7].mxu1 }
 0x623   :  { %v5043_v41 = vadd.f32 %v5509_v35, %v4623_v60 }
 0x628   :  { %v5573_v42 = vpop.f32.mrb[12].mxu0 }
 0x629   :  { %v5574_v48 = vpop.f32.mrb[13].mxu0 }
 0x62a   :  { %v5575_v31 = vadd.f32 %v5574_v48, %v5573_v42  ;;  %v5576_v4 = vpop.f32.mrb[14].mxu0 }
 0x62b   :  { %v5577_v59 = vpop.f32.mrb[15].mxu0 }
 0x63f   :  { %v5529_v34 = vpop.f32.mrb[8].mxu1 }
 0x640   :  { %v5530_v39 = vpop.f32.mrb[9].mxu1 }
 0x641   :  { %v5531_v19 = vadd.f32 %v5530_v39, %v5529_v34  ;;  %v5532_v9 = vpop.f32.mrb[10].mxu1 }
 0x642   :  { %v5533_v14 = vpop.f32.mrb[11].mxu1 }
 0x643   :  { %v5083_v23 = vadd.f32 %v5531_v19, %v5043_v41 }
 0x65f   :  { %v5551_v21 = vpop.f32.mrb[12].mxu1 }
 0x660   :  { %v5552_v10 = vpop.f32.mrb[13].mxu1 }
 0x661   :  { %v5553_v6 = vadd.f32 %v5552_v10, %v5551_v21  ;;  %v5554_v18 = vpop.f32.mrb[14].mxu1 }
 0x662   :  { %v5555_v1 = vpop.f32.mrb[15].mxu1 }
 0x663   :  { %v5123_v44 = vadd.f32 %v5553_v6, %v5083_v23 }
 0x665   :  { %v5163_v32 = vadd.f32 %v5575_v31, %v5123_v44 }
 0x667   :  { %v5168_v3 = vmax.f32 %v5163_v32, 0.0 }
 0x669   :  { %v5186_v46 = vpack.c.bf16 %v5168_v3, %v5168_v3 }
 0x66b   :  { %5677 = vmatmul.mubr.bf16.vlgmr.msra.gmra.mrb[16].mxu1 %v5186_v46 }
 0x73e   :  { %v5269_v28 = vpop.f32.mrb[16].mxu1 }
 0x73f   :  { %v5270_v26 = vadd.f32 %v5269_v28, %v5185_v11  ;;  %v5678_v12 = vpop.f32.mrb[17].mxu1 }
 0x740   :  { %v5272_v7 = vpop.f32.mrb[18].mxu1 }
 0x741   :  { %v5679_v62 = vpop.f32.mrb[19].mxu1  ;;  %5276 = vst.msk [vmem:[#allocation5] sm:$0x3] %vm5275_vm1, %v5270_v26 }
 0x742   :  { %6039 = shalt.err (!%p6036_p12)
}
 0x743   :  { %s6040_s2 = scalar_lea.hbm %s7893_s3, 32 }
 0x744   :  { %p6041_p13 = scmp.ne.s32.totalorder %s7893_s3, %s6040_s2  ;;  %p6044_p0 = scmp.lt.u32.totalorder %s6040_s2, %s7893_s3 }
 0x746   :  { %p6046_p1 = pnand %p6044_p0, %p6041_p13 }
 0x748   :  { %6049 = shalt.err (!%p6046_p1)
}
 0x749   :  { %5286 = dma.vmem_to_hbm [thread:$0]  %s5284_s18, 32, %s7893_s3, [#allocation4]  }
 0x74a   :  { %6052 = dma.done.wait [#allocation4], 32  }
 0x74b   :  { %6053 = vsyncadd [#allocation4], 4294967264 }
 0x74c   :  { %5290 = vsyncpa [#allocation3], 1 }
 0x74d   :  { %5291 = vsyncpa [#allocation4], 1 }

</bundles_post_ra>
